<compile_context>
chip_gen: v6e
topology: v6e:2x2x1
jax: 0.10.0
libtpu: 0.0.40
codegen_flags: <defaults>
</compile_context>

<pallas_src>
import jax
import jax.numpy as jnp
from jax.experimental import pallas as pl
from jax.experimental.pallas import tpu as pltpu

LATENT_DIM = 100
LATENT_PAD = 128                       # 100 -> 128 (MXU / lane aligned)
IMG_SHAPE = (1, 28, 28)
IMG_FLAT = IMG_SHAPE[0] * IMG_SHAPE[1] * IMG_SHAPE[2]   # 784
OUT_PAD = 896                          # 784 -> 7*128 (lane-dense store)
BN_EPS = 0.8
LRELU_SLOPE = 0.2


def _leaky_relu(x):
    return jnp.where(x > 0, x, LRELU_SLOPE * x)


def _batchnorm_train(x, gamma, beta):
    # BatchNorm1d training-mode forward: batch mean, biased variance, eps=0.8.
    # One-pass variance E[x^2] - mean^2 (eps=0.8 dwarfs any cancellation error).
    mean = jnp.mean(x, axis=0, keepdims=True)
    mean_sq = jnp.mean(x * x, axis=0, keepdims=True)
    var = mean_sq - mean * mean
    inv = jax.lax.rsqrt(var + BN_EPS)
    return (x - mean) * inv * gamma + beta


def generator_kernel(z_ref,
                     w1_ref, b1_ref,
                     w2_ref, g2_ref, be2_ref,
                     w3_ref, g3_ref, be3_ref,
                     w4_hbm, g4_ref, be4_ref,
                     w5_hbm, b5_ref,
                     out_ref,
                     w4_vmem, w5_vmem, dma_sem):
    # Kick off DMA of the two large weight matrices (~85% of the bytes) so the
    # transfers overlap with the compute of layers 1-3.
    cp4 = pltpu.make_async_copy(w4_hbm, w4_vmem, dma_sem.at[0])
    cp5 = pltpu.make_async_copy(w5_hbm, w5_vmem, dma_sem.at[1])
    cp4.start()
    cp5.start()

    z = z_ref[...]  # bf16, (B, 128) zero-padded latent

    # block(latent_dim, 128, normalize=False): Linear + LeakyReLU
    h = jnp.dot(z, w1_ref[...], preferred_element_type=jnp.float32) + b1_ref[...]
    h = _leaky_relu(h).astype(jnp.bfloat16)

    # block(128, 256): Linear (bias folded away by BN) + BatchNorm1d + LeakyReLU
    h = jnp.dot(h, w2_ref[...], preferred_element_type=jnp.float32)
    h = _leaky_relu(_batchnorm_train(h, g2_ref[...], be2_ref[...])).astype(jnp.bfloat16)

    # block(256, 512)
    h = jnp.dot(h, w3_ref[...], preferred_element_type=jnp.float32)
    h = _leaky_relu(_batchnorm_train(h, g3_ref[...], be3_ref[...])).astype(jnp.bfloat16)

    # block(512, 1024) — uses the manually prefetched w4
    cp4.wait()
    h = jnp.dot(h, w4_vmem[...], preferred_element_type=jnp.float32)
    h = _leaky_relu(_batchnorm_train(h, g4_ref[...], be4_ref[...])).astype(jnp.bfloat16)

    # Linear(1024, 784->896 padded) + Tanh — uses the manually prefetched w5
    cp5.wait()
    h = jnp.dot(h, w5_vmem[...], preferred_element_type=jnp.float32) + b5_ref[...]
    out_ref[...] = jnp.tanh(h)


def init_params(key):
    """Deterministic PyTorch-default-style init (uniform +-1/sqrt(fan_in)), f32."""
    dims = [(LATENT_DIM, 128), (128, 256), (256, 512), (512, 1024), (1024, IMG_FLAT)]
    params = {}
    for i, (fin, fout) in enumerate(dims, start=1):
        key, kw, kb = jax.random.split(key, 3)
        bound = 1.0 / float(fin) ** 0.5
        params[f"w{i}"] = jax.random.uniform(kw, (fin, fout), jnp.float32, -bound, bound)
        params[f"b{i}"] = jax.random.uniform(kb, (1, fout), jnp.float32, -bound, bound)
    for i, fout in zip((2, 3, 4), (256, 512, 1024)):
        params[f"g{i}"] = jnp.ones((1, fout), jnp.float32)    # BN weight
        params[f"be{i}"] = jnp.zeros((1, fout), jnp.float32)  # BN bias
    return params


def generator_forward(z, params):
    B = z.shape[0]
    bf16 = jnp.bfloat16
    f32 = jnp.float32

    # Zero-pad the latent K dimension 100 -> 128 (exact: padded cols are zero).
    z_p = jnp.zeros((B, LATENT_PAD), bf16).at[:, :LATENT_DIM].set(z.astype(bf16))
    w1_p = jnp.zeros((LATENT_PAD, 128), bf16).at[:LATENT_DIM, :].set(
        params["w1"].astype(bf16))
    # Zero-pad output columns 784 -> 896; padded columns produce tanh(0)=0 and
    # are sliced off below.
    w5_p = jnp.zeros((1024, OUT_PAD), bf16).at[:, :IMG_FLAT].set(
        params["w5"].astype(bf16))
    b5_p = jnp.zeros((1, OUT_PAD), f32).at[:, :IMG_FLAT].set(params["b5"])

    args = (z_p,
            w1_p, params["b1"],
            params["w2"].astype(bf16), params["g2"], params["be2"],
            params["w3"].astype(bf16), params["g3"], params["be3"],
            params["w4"].astype(bf16), params["g4"], params["be4"],
            w5_p, b5_p)

    def vspec(shape):
        nd = len(shape)
        return pl.BlockSpec(shape, lambda i, _nd=nd: (0,) * _nd)

    any_spec = pl.BlockSpec(memory_space=pl.ANY)
    in_specs = []
    for idx, a in enumerate(args):
        if idx in (9, 12):              # w4, w5: raw HBM refs, DMA'd manually
            in_specs.append(any_spec)
        else:
            in_specs.append(vspec(a.shape))

    flat = pl.pallas_call(
        generator_kernel,
        out_shape=jax.ShapeDtypeStruct((B, OUT_PAD), jnp.float32),
        grid=(1,),  # whole problem fits in VMEM (~3 MB of bf16 weights, tiny batch)
        in_specs=in_specs,
        out_specs=vspec((B, OUT_PAD)),
        scratch_shapes=[
            pltpu.VMEM((512, 1024), bf16),          # w4 prefetch buffer
            pltpu.VMEM((1024, OUT_PAD), bf16),      # w5 prefetch buffer
            pltpu.SemaphoreType.DMA((2,)),
        ],
        compiler_params=pltpu.CompilerParams(
            dimension_semantics=("arbitrary",),
            vmem_limit_bytes=24 << 20,
        ),
    )(*args)

    # PyTorch: img.view(img.size(0), *img_shape)  -> NCHW, dropping padded cols.
    return flat[:, :IMG_FLAT].reshape((B,) + IMG_SHAPE)


if __name__ == "__main__":
    key = jax.random.PRNGKey(0)
    k_z, k_p = jax.random.split(key)

    batch = 8
    z = jax.random.normal(k_z, (batch, LATENT_DIM), dtype=jnp.float32)
    params = init_params(k_p)

    img = generator_forward(z, params)
    jax.block_until_ready(img)

    assert img.shape == (batch,) + IMG_SHAPE
    assert img.dtype == jnp.float32
    assert bool(jnp.all(jnp.isfinite(img)))
    print("KERNEL_OK")
</pallas_src>

<mosaic_0001>
module attributes {stable_mosaic.version = 11 : i64} {
  func.func @generator_kernel(%arg0: i32, %arg1: memref<8x128xbf16, #tpu.memory_space<vmem>>, %arg2: memref<128x128xbf16, #tpu.memory_space<vmem>>, %arg3: memref<1x128xf32, #tpu.memory_space<vmem>>, %arg4: memref<128x256xbf16, #tpu.memory_space<vmem>>, %arg5: memref<1x256xf32, #tpu.memory_space<vmem>>, %arg6: memref<1x256xf32, #tpu.memory_space<vmem>>, %arg7: memref<256x512xbf16, #tpu.memory_space<vmem>>, %arg8: memref<1x512xf32, #tpu.memory_space<vmem>>, %arg9: memref<1x512xf32, #tpu.memory_space<vmem>>, %arg10: memref<512x1024xbf16, #tpu.memory_space<any>>, %arg11: memref<1x1024xf32, #tpu.memory_space<vmem>>, %arg12: memref<1x1024xf32, #tpu.memory_space<vmem>>, %arg13: memref<1024x896xbf16, #tpu.memory_space<any>>, %arg14: memref<1x896xf32, #tpu.memory_space<vmem>>, %arg15: memref<8x896xf32, #tpu.memory_space<vmem>>, %arg16: memref<512x1024xbf16, #tpu.memory_space<vmem>>, %arg17: memref<1024x896xbf16, #tpu.memory_space<vmem>>, %arg18: memref<2x!tpu.dma_semaphore, #tpu.memory_space<semaphore_mem>>) attributes {dimension_semantics = [#tpu.dimension_semantics<arbitrary>], iteration_bounds = array<i64: 1>, scalar_prefetch = 0 : i64, scratch_operands = 3 : i64, tpu.core_type = #tpu.core_type<tc>, window_params = [{pipeline_mode = #tpu.pipeline_mode<synchronous>, transform_indices = @transform_0, window_bounds = array<i64: 8, 128>}, {pipeline_mode = #tpu.pipeline_mode<synchronous>, transform_indices = @transform_1, window_bounds = array<i64: 128, 128>}, {pipeline_mode = #tpu.pipeline_mode<synchronous>, transform_indices = @transform_2, window_bounds = array<i64: 1, 128>}, {pipeline_mode = #tpu.pipeline_mode<synchronous>, transform_indices = @transform_3, window_bounds = array<i64: 128, 256>}, {pipeline_mode = #tpu.pipeline_mode<synchronous>, transform_indices = @transform_4, window_bounds = array<i64: 1, 256>}, {pipeline_mode = #tpu.pipeline_mode<synchronous>, transform_indices = @transform_5, window_bounds = array<i64: 1, 256>}, {pipeline_mode = #tpu.pipeline_mode<synchronous>, transform_indices = @transform_6, window_bounds = array<i64: 256, 512>}, {pipeline_mode = #tpu.pipeline_mode<synchronous>, transform_indices = @transform_7, window_bounds = array<i64: 1, 512>}, {pipeline_mode = #tpu.pipeline_mode<synchronous>, transform_indices = @transform_8, window_bounds = array<i64: 1, 512>}, {}, {pipeline_mode = #tpu.pipeline_mode<synchronous>, transform_indices = @transform_10, window_bounds = array<i64: 1, 1024>}, {pipeline_mode = #tpu.pipeline_mode<synchronous>, transform_indices = @transform_11, window_bounds = array<i64: 1, 1024>}, {}, {pipeline_mode = #tpu.pipeline_mode<synchronous>, transform_indices = @transform_13, window_bounds = array<i64: 1, 896>}, {pipeline_mode = #tpu.pipeline_mode<synchronous>, transform_indices = @transform_14, window_bounds = array<i64: 8, 896>}]} {
    %c0_i32 = arith.constant 0 : i32
    %0 = tpu.memref_slice %arg18[%c0_i32] : memref<2x!tpu.dma_semaphore, #tpu.memory_space<semaphore_mem>> -> memref<1x!tpu.dma_semaphore, #tpu.memory_space<semaphore_mem>>
    %1 = tpu.memref_squeeze %0 : memref<1x!tpu.dma_semaphore, #tpu.memory_space<semaphore_mem>> -> memref<!tpu.dma_semaphore, #tpu.memory_space<semaphore_mem>>
    tpu.enqueue_dma source(%arg10 : memref<512x1024xbf16, #tpu.memory_space<any>>) target(%arg16 : memref<512x1024xbf16, #tpu.memory_space<vmem>>) target_semaphore(%1 : memref<!tpu.dma_semaphore, #tpu.memory_space<semaphore_mem>>)
    %c1_i32 = arith.constant 1 : i32
    %2 = tpu.memref_slice %arg18[%c1_i32] : memref<2x!tpu.dma_semaphore, #tpu.memory_space<semaphore_mem>> -> memref<1x!tpu.dma_semaphore, #tpu.memory_space<semaphore_mem>>
    %3 = tpu.memref_squeeze %2 : memref<1x!tpu.dma_semaphore, #tpu.memory_space<semaphore_mem>> -> memref<!tpu.dma_semaphore, #tpu.memory_space<semaphore_mem>>
    tpu.enqueue_dma source(%arg13 : memref<1024x896xbf16, #tpu.memory_space<any>>) target(%arg17 : memref<1024x896xbf16, #tpu.memory_space<vmem>>) target_semaphore(%3 : memref<!tpu.dma_semaphore, #tpu.memory_space<semaphore_mem>>)
    %c0 = arith.constant 0 : index
    %c0_0 = arith.constant 0 : index
    %4 = vector.load %arg1[%c0, %c0_0] : memref<8x128xbf16, #tpu.memory_space<vmem>>, vector<8x128xbf16>
    %c0_1 = arith.constant 0 : index
    %c0_2 = arith.constant 0 : index
    %5 = vector.load %arg2[%c0_1, %c0_2] : memref<128x128xbf16, #tpu.memory_space<vmem>>, vector<128x128xbf16>
    %cst = arith.constant dense<0.000000e+00> : vector<8x128xf32>
    %6 = tpu.matmul %4, %5, %cst {dimension_numbers = #tpu.dot_dimension_numbers<[1], [0], [0], [1], [0, 0, 1, 1], [], []>} : vector<8x128xbf16>, vector<128x128xbf16>, vector<8x128xf32> -> vector<8x128xf32>
    %c0_3 = arith.constant 0 : index
    %c0_4 = arith.constant 0 : index
    %7 = vector.load %arg3[%c0_3, %c0_4] : memref<1x128xf32, #tpu.memory_space<vmem>>, vector<1x128xf32>
    %8 = vector.broadcast %7 : vector<1x128xf32> to vector<8x128xf32>
    %9 = arith.addf %6, %8 : vector<8x128xf32>
    %cst_5 = arith.constant 0.000000e+00 : f32
    %10 = vector.broadcast %cst_5 : f32 to vector<8x128xf32>
    %11 = arith.cmpf ogt, %9, %10 : vector<8x128xf32>
    %cst_6 = arith.constant 2.000000e-01 : f32
    %12 = vector.broadcast %cst_6 : f32 to vector<8x128xf32>
    %13 = arith.mulf %12, %9 : vector<8x128xf32>
    %14 = arith.select %11, %9, %13 : vector<8x128xi1>, vector<8x128xf32>
    %15 = arith.truncf %14 : vector<8x128xf32> to vector<8x128xbf16>
    %c0_7 = arith.constant 0 : index
    %c0_8 = arith.constant 0 : index
    %16 = vector.load %arg4[%c0_7, %c0_8] : memref<128x256xbf16, #tpu.memory_space<vmem>>, vector<128x256xbf16>
    %cst_9 = arith.constant dense<0.000000e+00> : vector<8x256xf32>
    %17 = tpu.matmul %15, %16, %cst_9 {dimension_numbers = #tpu.dot_dimension_numbers<[1], [0], [0], [1], [0, 0, 1, 1], [], []>} : vector<8x128xbf16>, vector<128x256xbf16>, vector<8x256xf32> -> vector<8x256xf32>
    %c0_10 = arith.constant 0 : index
    %c0_11 = arith.constant 0 : index
    %18 = vector.load %arg5[%c0_10, %c0_11] : memref<1x256xf32, #tpu.memory_space<vmem>>, vector<1x256xf32>
    %c0_12 = arith.constant 0 : index
    %c0_13 = arith.constant 0 : index
    %19 = vector.load %arg6[%c0_12, %c0_13] : memref<1x256xf32, #tpu.memory_space<vmem>>, vector<1x256xf32>
    %cst_14 = arith.constant dense<0.000000e+00> : vector<256xf32>
    %20 = vector.multi_reduction <add>, %17, %cst_14 [0] : vector<8x256xf32> to vector<256xf32>
    %21 = vector.shape_cast %20 : vector<256xf32> to vector<1x256xf32>
    %cst_15 = arith.constant 8.000000e+00 : f32
    %22 = vector.broadcast %cst_15 : f32 to vector<1x256xf32>
    %23 = arith.divf %21, %22 : vector<1x256xf32>
    %24 = arith.mulf %17, %17 : vector<8x256xf32>
    %cst_16 = arith.constant dense<0.000000e+00> : vector<256xf32>
    %25 = vector.multi_reduction <add>, %24, %cst_16 [0] : vector<8x256xf32> to vector<256xf32>
    %26 = vector.shape_cast %25 : vector<256xf32> to vector<1x256xf32>
    %cst_17 = arith.constant 8.000000e+00 : f32
    %27 = vector.broadcast %cst_17 : f32 to vector<1x256xf32>
    %28 = arith.divf %26, %27 : vector<1x256xf32>
    %29 = arith.mulf %23, %23 : vector<1x256xf32>
    %30 = arith.subf %28, %29 : vector<1x256xf32>
    %cst_18 = arith.constant 8.000000e-01 : f32
    %31 = vector.broadcast %cst_18 : f32 to vector<1x256xf32>
    %32 = arith.addf %30, %31 : vector<1x256xf32>
    %33 = math.rsqrt %32 : vector<1x256xf32>
    %34 = vector.broadcast %23 : vector<1x256xf32> to vector<8x256xf32>
    %35 = arith.subf %17, %34 : vector<8x256xf32>
    %36 = vector.broadcast %33 : vector<1x256xf32> to vector<8x256xf32>
    %37 = arith.mulf %35, %36 : vector<8x256xf32>
    %38 = vector.broadcast %18 : vector<1x256xf32> to vector<8x256xf32>
    %39 = arith.mulf %37, %38 : vector<8x256xf32>
    %40 = vector.broadcast %19 : vector<1x256xf32> to vector<8x256xf32>
    %41 = arith.addf %39, %40 : vector<8x256xf32>
    %cst_19 = arith.constant 0.000000e+00 : f32
    %42 = vector.broadcast %cst_19 : f32 to vector<8x256xf32>
    %43 = arith.cmpf ogt, %41, %42 : vector<8x256xf32>
    %cst_20 = arith.constant 2.000000e-01 : f32
    %44 = vector.broadcast %cst_20 : f32 to vector<8x256xf32>
    %45 = arith.mulf %44, %41 : vector<8x256xf32>
    %46 = arith.select %43, %41, %45 : vector<8x256xi1>, vector<8x256xf32>
    %47 = arith.truncf %46 : vector<8x256xf32> to vector<8x256xbf16>
    %c0_21 = arith.constant 0 : index
    %c0_22 = arith.constant 0 : index
    %48 = vector.load %arg7[%c0_21, %c0_22] : memref<256x512xbf16, #tpu.memory_space<vmem>>, vector<256x512xbf16>
    %cst_23 = arith.constant dense<0.000000e+00> : vector<8x512xf32>
    %49 = tpu.matmul %47, %48, %cst_23 {dimension_numbers = #tpu.dot_dimension_numbers<[1], [0], [0], [1], [0, 0, 1, 1], [], []>} : vector<8x256xbf16>, vector<256x512xbf16>, vector<8x512xf32> -> vector<8x512xf32>
    %c0_24 = arith.constant 0 : index
    %c0_25 = arith.constant 0 : index
    %50 = vector.load %arg8[%c0_24, %c0_25] : memref<1x512xf32, #tpu.memory_space<vmem>>, vector<1x512xf32>
    %c0_26 = arith.constant 0 : index
    %c0_27 = arith.constant 0 : index
    %51 = vector.load %arg9[%c0_26, %c0_27] : memref<1x512xf32, #tpu.memory_space<vmem>>, vector<1x512xf32>
    %cst_28 = arith.constant dense<0.000000e+00> : vector<512xf32>
    %52 = vector.multi_reduction <add>, %49, %cst_28 [0] : vector<8x512xf32> to vector<512xf32>
    %53 = vector.shape_cast %52 : vector<512xf32> to vector<1x512xf32>
    %cst_29 = arith.constant 8.000000e+00 : f32
    %54 = vector.broadcast %cst_29 : f32 to vector<1x512xf32>
    %55 = arith.divf %53, %54 : vector<1x512xf32>
    %56 = arith.mulf %49, %49 : vector<8x512xf32>
    %cst_30 = arith.constant dense<0.000000e+00> : vector<512xf32>
    %57 = vector.multi_reduction <add>, %56, %cst_30 [0] : vector<8x512xf32> to vector<512xf32>
    %58 = vector.shape_cast %57 : vector<512xf32> to vector<1x512xf32>
    %cst_31 = arith.constant 8.000000e+00 : f32
    %59 = vector.broadcast %cst_31 : f32 to vector<1x512xf32>
    %60 = arith.divf %58, %59 : vector<1x512xf32>
    %61 = arith.mulf %55, %55 : vector<1x512xf32>
    %62 = arith.subf %60, %61 : vector<1x512xf32>
    %cst_32 = arith.constant 8.000000e-01 : f32
    %63 = vector.broadcast %cst_32 : f32 to vector<1x512xf32>
    %64 = arith.addf %62, %63 : vector<1x512xf32>
    %65 = math.rsqrt %64 : vector<1x512xf32>
    %66 = vector.broadcast %55 : vector<1x512xf32> to vector<8x512xf32>
    %67 = arith.subf %49, %66 : vector<8x512xf32>
    %68 = vector.broadcast %65 : vector<1x512xf32> to vector<8x512xf32>
    %69 = arith.mulf %67, %68 : vector<8x512xf32>
    %70 = vector.broadcast %50 : vector<1x512xf32> to vector<8x512xf32>
    %71 = arith.mulf %69, %70 : vector<8x512xf32>
    %72 = vector.broadcast %51 : vector<1x512xf32> to vector<8x512xf32>
    %73 = arith.addf %71, %72 : vector<8x512xf32>
    %cst_33 = arith.constant 0.000000e+00 : f32
    %74 = vector.broadcast %cst_33 : f32 to vector<8x512xf32>
    %75 = arith.cmpf ogt, %73, %74 : vector<8x512xf32>
    %cst_34 = arith.constant 2.000000e-01 : f32
    %76 = vector.broadcast %cst_34 : f32 to vector<8x512xf32>
    %77 = arith.mulf %76, %73 : vector<8x512xf32>
    %78 = arith.select %75, %73, %77 : vector<8x512xi1>, vector<8x512xf32>
    %79 = arith.truncf %78 : vector<8x512xf32> to vector<8x512xbf16>
    %c0_i32_35 = arith.constant 0 : i32
    %80 = tpu.memref_slice %arg18[%c0_i32_35] : memref<2x!tpu.dma_semaphore, #tpu.memory_space<semaphore_mem>> -> memref<1x!tpu.dma_semaphore, #tpu.memory_space<semaphore_mem>>
    %81 = tpu.memref_squeeze %80 : memref<1x!tpu.dma_semaphore, #tpu.memory_space<semaphore_mem>> -> memref<!tpu.dma_semaphore, #tpu.memory_space<semaphore_mem>>
    tpu.wait_dma2 semaphore(%81 : memref<!tpu.dma_semaphore, #tpu.memory_space<semaphore_mem>>) src(%arg10 : memref<512x1024xbf16, #tpu.memory_space<any>>) dst(%arg16 : memref<512x1024xbf16, #tpu.memory_space<vmem>>)
    %c0_36 = arith.constant 0 : index
    %c0_37 = arith.constant 0 : index
    %82 = vector.load %arg16[%c0_36, %c0_37] : memref<512x1024xbf16, #tpu.memory_space<vmem>>, vector<512x1024xbf16>
    %cst_38 = arith.constant dense<0.000000e+00> : vector<8x1024xf32>
    %83 = tpu.matmul %79, %82, %cst_38 {dimension_numbers = #tpu.dot_dimension_numbers<[1], [0], [0], [1], [0, 0, 1, 1], [], []>} : vector<8x512xbf16>, vector<512x1024xbf16>, vector<8x1024xf32> -> vector<8x1024xf32>
    %c0_39 = arith.constant 0 : index
    %c0_40 = arith.constant 0 : index
    %84 = vector.load %arg11[%c0_39, %c0_40] : memref<1x1024xf32, #tpu.memory_space<vmem>>, vector<1x1024xf32>
    %c0_41 = arith.constant 0 : index
    %c0_42 = arith.constant 0 : index
    %85 = vector.load %arg12[%c0_41, %c0_42] : memref<1x1024xf32, #tpu.memory_space<vmem>>, vector<1x1024xf32>
    %cst_43 = arith.constant dense<0.000000e+00> : vector<1024xf32>
    %86 = vector.multi_reduction <add>, %83, %cst_43 [0] : vector<8x1024xf32> to vector<1024xf32>
    %87 = vector.shape_cast %86 : vector<1024xf32> to vector<1x1024xf32>
    %cst_44 = arith.constant 8.000000e+00 : f32
    %88 = vector.broadcast %cst_44 : f32 to vector<1x1024xf32>
    %89 = arith.divf %87, %88 : vector<1x1024xf32>
    %90 = arith.mulf %83, %83 : vector<8x1024xf32>
    %cst_45 = arith.constant dense<0.000000e+00> : vector<1024xf32>
    %91 = vector.multi_reduction <add>, %90, %cst_45 [0] : vector<8x1024xf32> to vector<1024xf32>
    %92 = vector.shape_cast %91 : vector<1024xf32> to vector<1x1024xf32>
    %cst_46 = arith.constant 8.000000e+00 : f32
    %93 = vector.broadcast %cst_46 : f32 to vector<1x1024xf32>
    %94 = arith.divf %92, %93 : vector<1x1024xf32>
    %95 = arith.mulf %89, %89 : vector<1x1024xf32>
    %96 = arith.subf %94, %95 : vector<1x1024xf32>
    %cst_47 = arith.constant 8.000000e-01 : f32
    %97 = vector.broadcast %cst_47 : f32 to vector<1x1024xf32>
    %98 = arith.addf %96, %97 : vector<1x1024xf32>
    %99 = math.rsqrt %98 : vector<1x1024xf32>
    %100 = vector.broadcast %89 : vector<1x1024xf32> to vector<8x1024xf32>
    %101 = arith.subf %83, %100 : vector<8x1024xf32>
    %102 = vector.broadcast %99 : vector<1x1024xf32> to vector<8x1024xf32>
    %103 = arith.mulf %101, %102 : vector<8x1024xf32>
    %104 = vector.broadcast %84 : vector<1x1024xf32> to vector<8x1024xf32>
    %105 = arith.mulf %103, %104 : vector<8x1024xf32>
    %106 = vector.broadcast %85 : vector<1x1024xf32> to vector<8x1024xf32>
    %107 = arith.addf %105, %106 : vector<8x1024xf32>
    %cst_48 = arith.constant 0.000000e+00 : f32
    %108 = vector.broadcast %cst_48 : f32 to vector<8x1024xf32>
    %109 = arith.cmpf ogt, %107, %108 : vector<8x1024xf32>
    %cst_49 = arith.constant 2.000000e-01 : f32
    %110 = vector.broadcast %cst_49 : f32 to vector<8x1024xf32>
    %111 = arith.mulf %110, %107 : vector<8x1024xf32>
    %112 = arith.select %109, %107, %111 : vector<8x1024xi1>, vector<8x1024xf32>
    %113 = arith.truncf %112 : vector<8x1024xf32> to vector<8x1024xbf16>
    %c1_i32_50 = arith.constant 1 : i32
    %114 = tpu.memref_slice %arg18[%c1_i32_50] : memref<2x!tpu.dma_semaphore, #tpu.memory_space<semaphore_mem>> -> memref<1x!tpu.dma_semaphore, #tpu.memory_space<semaphore_mem>>
    %115 = tpu.memref_squeeze %114 : memref<1x!tpu.dma_semaphore, #tpu.memory_space<semaphore_mem>> -> memref<!tpu.dma_semaphore, #tpu.memory_space<semaphore_mem>>
    tpu.wait_dma2 semaphore(%115 : memref<!tpu.dma_semaphore, #tpu.memory_space<semaphore_mem>>) src(%arg13 : memref<1024x896xbf16, #tpu.memory_space<any>>) dst(%arg17 : memref<1024x896xbf16, #tpu.memory_space<vmem>>)
    %c0_51 = arith.constant 0 : index
    %c0_52 = arith.constant 0 : index
    %116 = vector.load %arg17[%c0_51, %c0_52] : memref<1024x896xbf16, #tpu.memory_space<vmem>>, vector<1024x896xbf16>
    %cst_53 = arith.constant dense<0.000000e+00> : vector<8x896xf32>
    %117 = tpu.matmul %113, %116, %cst_53 {dimension_numbers = #tpu.dot_dimension_numbers<[1], [0], [0], [1], [0, 0, 1, 1], [], []>} : vector<8x1024xbf16>, vector<1024x896xbf16>, vector<8x896xf32> -> vector<8x896xf32>
    %c0_54 = arith.constant 0 : index
    %c0_55 = arith.constant 0 : index
    %118 = vector.load %arg14[%c0_54, %c0_55] : memref<1x896xf32, #tpu.memory_space<vmem>>, vector<1x896xf32>
    %119 = vector.broadcast %118 : vector<1x896xf32> to vector<8x896xf32>
    %120 = arith.addf %117, %119 : vector<8x896xf32>
    %121 = math.tanh %120 : vector<8x896xf32>
    %c0_56 = arith.constant 0 : index
    %c0_57 = arith.constant 0 : index
    %122 = vector.load %arg15[%c0_56, %c0_57] : memref<8x896xf32, #tpu.memory_space<vmem>>, vector<8x896xf32>
    tpu.vector_store %arg15[%c0_56, %c0_57], %121 {strides = array<i32>} : memref<8x896xf32, #tpu.memory_space<vmem>>, vector<8x896xf32>,
    return
  }
  func.func @transform_0(%arg0: i32) -> (i32, i32) {
    %c0_i32 = arith.constant 0 : i32
    %c0_i32_0 = arith.constant 0 : i32
    %c0_i32_1 = arith.constant 0 : i32
    return %c0_i32, %c0_i32_0 : i32, i32
  }
  func.func @transform_1(%arg0: i32) -> (i32, i32) {
    %c0_i32 = arith.constant 0 : i32
    %c0_i32_0 = arith.constant 0 : i32
    %c0_i32_1 = arith.constant 0 : i32
    return %c0_i32, %c0_i32_0 : i32, i32
  }
  func.func @transform_2(%arg0: i32) -> (i32, i32) {
    %c0_i32 = arith.constant 0 : i32
    %c0_i32_0 = arith.constant 0 : i32
    %c0_i32_1 = arith.constant 0 : i32
    return %c0_i32, %c0_i32_0 : i32, i32
  }
  func.func @transform_3(%arg0: i32) -> (i32, i32) {
    %c0_i32 = arith.constant 0 : i32
    %c0_i32_0 = arith.constant 0 : i32
    %c0_i32_1 = arith.constant 0 : i32
    return %c0_i32, %c0_i32_0 : i32, i32
  }
  func.func @transform_4(%arg0: i32) -> (i32, i32) {
    %c0_i32 = arith.constant 0 : i32
    %c0_i32_0 = arith.constant 0 : i32
    %c0_i32_1 = arith.constant 0 : i32
    return %c0_i32, %c0_i32_0 : i32, i32
  }
  func.func @transform_5(%arg0: i32) -> (i32, i32) {
    %c0_i32 = arith.constant 0 : i32
    %c0_i32_0 = arith.constant 0 : i32
    %c0_i32_1 = arith.constant 0 : i32
    return %c0_i32, %c0_i32_0 : i32, i32
  }
  func.func @transform_6(%arg0: i32) -> (i32, i32) {
    %c0_i32 = arith.constant 0 : i32
    %c0_i32_0 = arith.constant 0 : i32
    %c0_i32_1 = arith.constant 0 : i32
    return %c0_i32, %c0_i32_0 : i32, i32
  }
  func.func @transform_7(%arg0: i32) -> (i32, i32) {
    %c0_i32 = arith.constant 0 : i32
    %c0_i32_0 = arith.constant 0 : i32
    %c0_i32_1 = arith.constant 0 : i32
    return %c0_i32, %c0_i32_0 : i32, i32
  }
  func.func @transform_8(%arg0: i32) -> (i32, i32) {
    %c0_i32 = arith.constant 0 : i32
    %c0_i32_0 = arith.constant 0 : i32
    %c0_i32_1 = arith.constant 0 : i32
    return %c0_i32, %c0_i32_0 : i32, i32
  }
  func.func @transform_10(%arg0: i32) -> (i32, i32) {
    %c0_i32 = arith.constant 0 : i32
    %c0_i32_0 = arith.constant 0 : i32
    %c0_i32_1 = arith.constant 0 : i32
    return %c0_i32, %c0_i32_0 : i32, i32
  }
  func.func @transform_11(%arg0: i32) -> (i32, i32) {
    %c0_i32 = arith.constant 0 : i32
    %c0_i32_0 = arith.constant 0 : i32
    %c0_i32_1 = arith.constant 0 : i32
    return %c0_i32, %c0_i32_0 : i32, i32
  }
  func.func @transform_13(%arg0: i32) -> (i32, i32) {
    %c0_i32 = arith.constant 0 : i32
    %c0_i32_0 = arith.constant 0 : i32
    %c0_i32_1 = arith.constant 0 : i32
    return %c0_i32, %c0_i32_0 : i32, i32
  }
  func.func @transform_14(%arg0: i32) -> (i32, i32) {
    %c0_i32 = arith.constant 0 : i32
    %c0_i32_0 = arith.constant 0 : i32
    %c0_i32_1 = arith.constant 0 : i32
    return %c0_i32, %c0_i32_0 : i32, i32
  }
}

</mosaic_0001>

<bundles_post_ra>
// kernel: tpu_custom_call.1
= control target key start
LH: loop header
LB: loop body
LE: loop exit
PB: predicated region body
PF: predicated region fallthrough
CT: control target
= control target key end

     0   :  { %19 = vsyncpa [#allocation6], 0  ;;  %s9308_s0 = inlined_call_operand.hbm [shape: bf16[8,128], index: 0, kind: input, shape index: {}]   ;;  %s9309_s1 = inlined_call_operand.hbm [shape: bf16[128,128], index: 1, kind: input, shape index: {}]   ;;  %s9310_s2 = inlined_call_operand.hbm [shape: f32[1,128], index: 2, kind: input, shape index: {}]   ;;  %s9311_s3 = inlined_call_operand.hbm [shape: bf16[128,256], index: 3, kind: input, shape index: {}]   ;;  %s9312_s4 = inlined_call_operand.hbm [shape: f32[1,256], index: 4, kind: input, shape index: {}]   ;;  %s9313_s5 = inlined_call_operand.hbm [shape: f32[1,256], index: 5, kind: input, shape index: {}]   ;;  %s9314_s6 = inlined_call_operand.hbm [shape: bf16[256,512], index: 6, kind: input, shape index: {}]   ;;  %s9315_s7 = inlined_call_operand.hbm [shape: f32[1,512], index: 7, kind: input, shape index: {}]   ;;  %s9316_s8 = inlined_call_operand.hbm [shape: f32[1,512], index: 8, kind: input, shape index: {}]   ;;  %s9317_s9 = inlined_call_operand.hbm [shape: bf16[512,1024], index: 9, kind: input, shape index: {}]   ;;  %s9318_s10 = inlined_call_operand.hbm [shape: f32[1,1024], index: 10, kind: input, shape index: {}]   ;;  %s9319_s11 = inlined_call_operand.hbm [shape: f32[1,1024], index: 11, kind: input, shape index: {}]   ;;  %s9320_s12 = inlined_call_operand.hbm [shape: bf16[1024,896], index: 12, kind: input, shape index: {}]   ;;  %s9321_s13 = inlined_call_operand.hbm [shape: f32[1,896], index: 13, kind: input, shape index: {}]   ;;  %s9322_s14 = inlined_call_operand.hbm [shape: f32[8,896], index: 14, kind: output, shape index: {}]  }
   0x1   :  { %20 = vsyncpa [#allocation9], 0 }
   0x2   :  { %21 = vsyncpa [#allocation12], 0 }
   0x3   :  { %22 = vsyncpa [#allocation15], 0 }
   0x4   :  { %23 = vsyncpa [#allocation18], 0 }
   0x5   :  { %24 = vsyncpa [#allocation21], 0 }
   0x6   :  { %25 = vsyncpa [#allocation24], 0 }
   0x7   :  { %26 = vsyncpa [#allocation7], 0  ;;  %s8954_s29 = smov [#allocation8]  }
   0x8   :  { %s42_s30 = sshll.u32 %s8954_s29, 4  ;;  %s43_s30 = int_to_ptr.vmem [resolvable:$true] %s42_s30 }
   0x9   :  { %s8642_s15 = scalar_lea.vmem %s43_s30, 1024  ;;  %p8647_p1 = scmp.lt.s32.totalorder %s43_s30, %s43_s30 }
   0xa   :  { %p8643_p0 = scmp.ne.s32.totalorder %s43_s30, %s8642_s15  ;;  %p8648_p2 = scmp.lt.s32.totalorder %s8642_s15, %s8642_s15 }
   0xc   :  { %p8649_p3 = por %p8648_p2, %p8647_p1 }
   0xe   :  { %p8650_p4 = pnand %p8649_p3, %p8643_p0 }
  0x10   :  { %8653 = shalt.err (!%p8650_p4)
}
  0x11   :  { %s8955_s16 = smov 64   ;;  %s8956_s17 = smov 4  }
  0x12   :  { %48 = dma.hbm_to_vmem [thread:$0]  %s9309_s1, 1024, %s43_s30, [#allocation9], %s8955_s16, %s8955_s16, %s8956_s17  }
  0x13   :  { %s8957_s20 = smov [#allocation11]  }
  0x14   :  { %s64_s21 = sshll.u32 %s8957_s20, 4  ;;  %s65_s21 = int_to_ptr.vmem [resolvable:$true] %s64_s21 }
  0x15   :  { %s8662_s22 = scalar_lea.vmem %s65_s21, 2048  ;;  %p8667_p6 = scmp.lt.s32.totalorder %s65_s21, %s65_s21 }
  0x16   :  { %p8663_p5 = scmp.ne.s32.totalorder %s65_s21, %s8662_s22  ;;  %p8668_p7 = scmp.lt.s32.totalorder %s8662_s22, %s8662_s22 }
  0x18   :  { %p8669_p8 = por %p8668_p7, %p8667_p6 }
  0x1a   :  { %p8670_p9 = pnand %p8669_p8, %p8663_p5 }
  0x1c   :  { %8673 = shalt.err (!%p8670_p9)
}
  0x1d   :  { %s8958_s23 = smov 128   ;;  %s8959_s24 = smov 8  }
  0x1e   :  { %70 = dma.hbm_to_vmem [thread:$0]  %s9311_s3, 2048, %s65_s21, [#allocation12], %s8958_s23, %s8958_s23, %s8959_s24  }
  0x1f   :  { %s8960_s27 = smov [#allocation14]   ;;  %s8961_s29 = smov [#allocation17]  }
  0x20   :  { %s87_s28 = sshll.u32 %s8960_s27, 4  ;;  %s109_s1 = sshll.u32 %s8961_s29, 4  ;;  %s88_s28 = int_to_ptr.vmem [resolvable:$true] %s87_s28  ;;  %s110_s1 = int_to_ptr.vmem [resolvable:$true] %s109_s1 }
  0x21   :  { %s8682_s30 = scalar_lea.vmem %s88_s28, 32  ;;  %p8687_p11 = scmp.lt.s32.totalorder %s88_s28, %s88_s28 }
  0x22   :  { %p8683_p10 = scmp.ne.s32.totalorder %s88_s28, %s8682_s30  ;;  %p8688_p12 = scmp.lt.s32.totalorder %s8682_s30, %s8682_s30 }
  0x24   :  { %p8689_p13 = por %p8688_p12, %p8687_p11 }
  0x26   :  { %p8690_p0 = pnand %p8689_p13, %p8683_p10 }
  0x28   :  { %8693 = shalt.err (!%p8690_p0)
}
  0x29   :  { %90 = dma.hbm_to_vmem [thread:$0]  %s9313_s5, 32, %s88_s28, [#allocation15]  }
  0x2a   :  { %s8702_s17 = scalar_lea.vmem %s110_s1, 64  ;;  %p8707_p2 = scmp.lt.s32.totalorder %s110_s1, %s110_s1 }
  0x2b   :  { %p8703_p1 = scmp.ne.s32.totalorder %s110_s1, %s8702_s17  ;;  %p8708_p3 = scmp.lt.s32.totalorder %s8702_s17, %s8702_s17 }
  0x2d   :  { %p8709_p4 = por %p8708_p3, %p8707_p2 }
  0x2f   :  { %p8710_p5 = pnand %p8709_p4, %p8703_p1 }
  0x31   :  { %8713 = shalt.err (!%p8710_p5)
}
  0x32   :  { %112 = dma.hbm_to_vmem [thread:$0]  %s9315_s7, 64, %s110_s1, [#allocation18]  }
  0x33   :  { %s8962_s19 = smov [#allocation20]   ;;  %s8963_s21 = smov [#allocation5]  }
  0x34   :  { %s129_s20 = sshll.u32 %s8962_s19, 4  ;;  %s33_s22 = sshll.u32 %s8963_s21, 4  ;;  %s130_s20 = int_to_ptr.vmem [resolvable:$true] %s129_s20  ;;  %s34_s22 = int_to_ptr.vmem [resolvable:$true] %s33_s22 }
  0x35   :  { %s8722_s23 = scalar_lea.vmem %s130_s20, 128  ;;  %p8727_p7 = scmp.lt.s32.totalorder %s130_s20, %s130_s20 }
  0x36   :  { %p8723_p6 = scmp.ne.s32.totalorder %s130_s20, %s8722_s23  ;;  %p8728_p8 = scmp.lt.s32.totalorder %s8722_s23, %s8722_s23 }
  0x38   :  { %p8729_p9 = por %p8728_p8, %p8727_p7 }
  0x3a   :  { %p8730_p10 = pnand %p8729_p9, %p8723_p6 }
  0x3c   :  { %8733 = shalt.err (!%p8730_p10)
}
  0x3d   :  { %132 = dma.hbm_to_vmem [thread:$0]  %s9318_s10, 128, %s130_s20, [#allocation21]  }
  0x3e   :  { %s8742_s25 = scalar_lea.vmem %s34_s22, 64  ;;  %p8747_p12 = scmp.lt.s32.totalorder %s34_s22, %s34_s22 }
  0x3f   :  { %p8743_p11 = scmp.ne.s32.totalorder %s34_s22, %s8742_s25  ;;  %p8748_p13 = scmp.lt.s32.totalorder %s8742_s25, %s8742_s25 }
  0x41   :  { %p8749_p0 = por %p8748_p13, %p8747_p12 }
  0x43   :  { %p8750_p1 = pnand %p8749_p0, %p8743_p11 }
  0x45   :  { %8753 = shalt.err (!%p8750_p1)
}
  0x46   :  { %36 = dma.hbm_to_vmem [thread:$0]  %s9308_s0, 64, %s34_s22, [#allocation6]  }
  0x47   :  { %s8964_s27 = smov [#allocation10]   ;;  %s8965_s29 = smov [#allocation13]  }
  0x48   :  { %s55_s28 = sshll.u32 %s8964_s27, 4  ;;  %s77_s1 = sshll.u32 %s8965_s29, 4  ;;  %s56_s28 = int_to_ptr.vmem [resolvable:$true] %s55_s28  ;;  %s78_s1 = int_to_ptr.vmem [resolvable:$true] %s77_s1 }
  0x49   :  { %s8762_s30 = scalar_lea.vmem %s56_s28, 16  ;;  %s8766_s10 = scalar_lea.vmem %s56_s28, 32 }
  0x4a   :  { %p8763_p2 = scmp.ne.s32.totalorder %s56_s28, %s8762_s30  ;;  %p8767_p3 = scmp.lt.s32.totalorder %s56_s28, %s56_s28 }
  0x4b   :  { %p8768_p4 = scmp.lt.s32.totalorder %s8766_s10, %s8762_s30 }
  0x4d   :  { %p8769_p5 = por %p8768_p4, %p8767_p3 }
  0x4f   :  { %p8770_p6 = pnand %p8769_p5, %p8763_p2 }
  0x51   :  { %8773 = shalt.err (!%p8770_p6)
}
  0x52   :  { %58 = dma.hbm_to_vmem [thread:$0]  %s9310_s2, 16, %s56_s28, [#allocation9]  }
  0x53   :  { %s8782_s17 = scalar_lea.vmem %s78_s1, 32  ;;  %p8787_p8 = scmp.lt.s32.totalorder %s78_s1, %s78_s1 }
  0x54   :  { %p8783_p7 = scmp.ne.s32.totalorder %s78_s1, %s8782_s17  ;;  %p8788_p9 = scmp.lt.s32.totalorder %s8782_s17, %s8782_s17 }
  0x56   :  { %p8789_p10 = por %p8788_p9, %p8787_p8 }
  0x58   :  { %p8790_p11 = pnand %p8789_p10, %p8783_p7 }
  0x5a   :  { %8793 = shalt.err (!%p8790_p11)
}
  0x5b   :  { %80 = dma.hbm_to_vmem [thread:$0]  %s9312_s4, 32, %s78_s1, [#allocation12]  }
  0x5c   :  { %s8966_s18 = smov [#allocation16]  }
  0x5d   :  { %s96_s19 = sshll.u32 %s8966_s18, 4  ;;  %s97_s19 = int_to_ptr.vmem [resolvable:$true] %s96_s19 }
  0x5e   :  { %s8802_s20 = scalar_lea.vmem %s97_s19, 8192  ;;  %p8807_p13 = scmp.lt.s32.totalorder %s97_s19, %s97_s19 }
  0x5f   :  { %p8803_p12 = scmp.ne.s32.totalorder %s97_s19, %s8802_s20  ;;  %p8808_p0 = scmp.lt.s32.totalorder %s8802_s20, %s8802_s20 }
  0x61   :  { %p8809_p1 = por %p8808_p0, %p8807_p13 }
  0x63   :  { %p8810_p2 = pnand %p8809_p1, %p8803_p12 }
  0x65   :  { %8813 = shalt.err (!%p8810_p2)
}
  0x66   :  { %s8967_s2 = smov 256   ;;  %s8968_s21 = smov 16  }
  0x67   :  { %102 = dma.hbm_to_vmem [thread:$0]  %s9314_s6, 8192, %s97_s19, [#allocation15], %s8967_s2, %s8967_s2, %s8968_s21  }
  0x68   :  { %s8969_s5 = smov [#allocation19]   ;;  %s8970_s4 = smov [#allocation22]  }
  0x69   :  { %s119_s24 = sshll.u32 %s8969_s5, 4  ;;  %s139_s25 = sshll.u32 %s8970_s4, 4  ;;  %s120_s24 = int_to_ptr.vmem [resolvable:$true] %s119_s24  ;;  %s140_s25 = int_to_ptr.vmem [resolvable:$true] %s139_s25 }
  0x6a   :  { %s8822_s7 = scalar_lea.vmem %s120_s24, 64  ;;  %p8827_p4 = scmp.lt.s32.totalorder %s120_s24, %s120_s24 }
  0x6b   :  { %p8823_p3 = scmp.ne.s32.totalorder %s120_s24, %s8822_s7  ;;  %p8828_p5 = scmp.lt.s32.totalorder %s8822_s7, %s8822_s7 }
  0x6d   :  { %p8829_p6 = por %p8828_p5, %p8827_p4 }
  0x6f   :  { %p8830_p7 = pnand %p8829_p6, %p8823_p3 }
  0x71   :  { %8833 = shalt.err (!%p8830_p7)
}
  0x72   :  { %122 = dma.hbm_to_vmem [thread:$0]  %s9316_s8, 64, %s120_s24, [#allocation18]  }
  0x73   :  { %s8842_s28 = scalar_lea.vmem %s140_s25, 128  ;;  %p8847_p9 = scmp.lt.s32.totalorder %s140_s25, %s140_s25 }
  0x74   :  { %p8843_p8 = scmp.ne.s32.totalorder %s140_s25, %s8842_s28  ;;  %p8848_p10 = scmp.lt.s32.totalorder %s8842_s28, %s8842_s28 }
  0x76   :  { %p8849_p11 = por %p8848_p10, %p8847_p9 }
  0x78   :  { %p8850_p12 = pnand %p8849_p11, %p8843_p8 }
  0x7a   :  { %8853 = shalt.err (!%p8850_p12)
}
  0x7b   :  { %142 = dma.hbm_to_vmem [thread:$0]  %s9319_s11, 128, %s140_s25, [#allocation21]  }
  0x7c   :  { %s8971_s1 = smov [#allocation23]  }
  0x7d   :  { %s149_s30 = sshll.u32 %s8971_s1, 4  ;;  %s150_s30 = int_to_ptr.vmem [resolvable:$true] %s149_s30 }
  0x7e   :  { %s8862_s10 = scalar_lea.vmem %s150_s30, 112  ;;  %s8866_s15 = scalar_lea.vmem %s150_s30, 128 }
  0x7f   :  { %p8863_p13 = scmp.ne.s32.totalorder %s150_s30, %s8862_s10  ;;  %p8867_p0 = scmp.lt.s32.totalorder %s150_s30, %s150_s30 }
  0x80   :  { %p8868_p1 = scmp.lt.s32.totalorder %s8866_s15, %s8862_s10 }
  0x82   :  { %p8869_p2 = por %p8868_p1, %p8867_p0 }
  0x84   :  { %p8870_p3 = pnand %p8869_p2, %p8863_p13 }
  0x86   :  { %8873 = shalt.err (!%p8870_p3)
}
  0x87   :  { %152 = dma.hbm_to_vmem [thread:$0]  %s9321_s13, 112, %s150_s30, [#allocation24]  }
  0x88   :  { %8934 = dma.done.wait [#allocation6], 64  }
  0x89   :  { %8935 = vsyncadd [#allocation6], 4294967232 }
  0x8a   :  { %8936 = dma.done.wait [#allocation9], 1040  }
  0x8b   :  { %8937 = vsyncadd [#allocation9], 4294966256 }
  0x8c   :  { %8938 = dma.done.wait [#allocation12], 2080  }
  0x8d   :  { %8939 = vsyncadd [#allocation12], 4294965216 }
  0x8e   :  { %8940 = dma.done.wait [#allocation15], 8224  }
  0x8f   :  { %8941 = vsyncadd [#allocation15], 4294959072 }
  0x90   :  { %8942 = dma.done.wait [#allocation18], 128  }
  0x91   :  { %8943 = vsyncadd [#allocation18], 4294967168 }
  0x92   :  { %8944 = dma.done.wait [#allocation21], 256  }
  0x93   :  { %8945 = vsyncadd [#allocation21], 4294967040 }
  0x94   :  { %8946 = dma.done.wait [#allocation24], 112  }
  0x95   :  { %8947 = vsyncadd [#allocation24], 4294967184  ;;  %v8972_v0 = vmov 0.0   ;;  %vm8973_vm0 = vmmov 0   ;;  %v7824_v1 = vld [vmem:[#allocation8 + $0x38] sm:$0xff]   ;;  %v7825_v2 = vld [vmem:[#allocation8 + $0x30] sm:$0xff]  }
  0x96   :  { %7780 = vmatprep.subr.bf16.mxu0 %v8972_v0  ;;  %7796 = vmatprep.mubr.msk.bf16.mxu0 %vm8973_vm0, %v8972_v0  ;;  %v7826_v3 = vld [vmem:[#allocation8 + $0x28] sm:$0xff]   ;;  %v7832_v4 = vld [vmem:[#allocation11 + $0x74] ss:$8 sps:$4 sm:$0xff]   ;;  %v7834_v5 = vld [vmem:[#allocation11 + $0x70] ss:$8 sps:$4 sm:$0xff]   ;;  %v8974_v26 = vmov 0  }
  0x97   :  { %7781 = vmatpush3.bf16.msra.mxu0 %v7824_v1  ;;  %v7827_v6 = vld [vmem:[#allocation8 + $0x20] sm:$0xff]   ;;  %425 = vmatprep.subr.bf16.mxu1 %v7832_v4  ;;  %v7828_v10 = vld [vmem:[#allocation8 + $0x18] sm:$0xff]   ;;  %v7829_v11 = vld [vmem:[#allocation8 + $0x10] sm:$0xff]   ;;  %s8975_s11 = smov [#allocation2]   ;;  %s8976_s17 = smov [#allocation3]  }
  0x98   :  { %7782 = vmatprep.subr.bf16.mxu0 %v8972_v0  ;;  %v7835_v7 = vld [vmem:[#allocation11 + $0x64] ss:$8 sps:$4 sm:$0xff]   ;;  %426 = vmatpush1.bf16.msra.mxu1 %v7834_v5  ;;  %v7837_v8 = vld [vmem:[#allocation11 + $0x60] ss:$8 sps:$4 sm:$0xff]   ;;  %v7838_v9 = vld [vmem:[#allocation11 + $0x54] ss:$8 sps:$4 sm:$0xff]  }
  0x99   :  { %427 = vmatprep.subr.bf16.mxu1 %v7835_v7  ;;  %v7840_v12 = vld [vmem:[#allocation11 + $0x50] ss:$8 sps:$4 sm:$0xff]   ;;  %v7841_v13 = vld [vmem:[#allocation11 + $0x44] ss:$8 sps:$4 sm:$0xff]   ;;  %v7843_v14 = vld [vmem:[#allocation11 + $0x40] ss:$8 sps:$4 sm:$0xff]   ;;  %457 = vmatprep.mubr.bf16.mxu1 %v8974_v26 }
  0x9a   :  { %v7844_v15 = vld [vmem:[#allocation11 + $0x34] ss:$8 sps:$4 sm:$0xff]   ;;  %v7830_v16 = vld [vmem:[#allocation8 + $0x8] sm:$0xff]   ;;  %v7846_v17 = vld [vmem:[#allocation11 + $0x30] ss:$8 sps:$4 sm:$0xff]   ;;  %s197_s13 = sshll.u32 %s8975_s11, 4  ;;  %s198_s13 = int_to_ptr.vmem [resolvable:$true] %s197_s13 }
  0x9b   :  { %7783 = vmatpush3.bf16.msra.mxu0 %v7825_v2  ;;  %v7847_v18 = vld [vmem:[#allocation11 + $0x24] ss:$8 sps:$4 sm:$0xff]   ;;  %v7849_v20 = vld [vmem:[#allocation11 + $0x20] ss:$8 sps:$4 sm:$0xff]   ;;  %v213_v21 = vld [vmem:[#allocation5] sm:$0xf]  ;;  %p8887_p5 = scmp.lt.s32.totalorder %s198_s13, %s198_s13 }
  0x9c   :  { %7784 = vmatprep.subr.bf16.mxu0 %v8972_v0  ;;  %428 = vmatpush1.bf16.msra.mxu1 %v7837_v8  ;;  %v7831_v19 = vld [vmem:[#allocation8] sm:$0xff]   ;;  %v7852_v23 = vld [vmem:[#allocation11 + $0x10] ss:$8 sps:$4 sm:$0xff]   ;;  %s209_s0 = sshll.u32 %s8976_s17, 4  ;;  %s8882_s3 = scalar_lea.vmem %s198_s13, 32768  ;;  %s210_s0 = int_to_ptr.vmem [resolvable:$true] %s209_s0 }
  0x9d   :  { %429 = vmatprep.subr.bf16.mxu1 %v7838_v9  ;;  %v7850_v22 = vld [vmem:[#allocation11 + $0x14] ss:$8 sps:$4 sm:$0xff]   ;;  %v7853_v24 = vld [vmem:[#allocation11 + $0x4] ss:$8 sps:$4 sm:$0xff]   ;;  %v7855_v25 = vld [vmem:[#allocation11] ss:$8 sps:$4 sm:$0xff]   ;;  %p8883_p4 = scmp.ne.s32.totalorder %s198_s13, %s8882_s3  ;;  %p8888_p6 = scmp.lt.s32.totalorder %s8882_s3, %s8882_s3 }
  0x9e   :  { %v7856_v27 = vld [vmem:[#allocation16 + $0xe0] ss:$16 sps:$4 sm:$0xff]   ;;  %v7858_v28 = vld [vmem:[#allocation16 + $0xe4] ss:$16 sps:$4 sm:$0xff]   ;;  %v7861_v29 = vld [vmem:[#allocation16 + $0xec] ss:$16 sps:$4 sm:$0xff]  }
  0x9f   :  { %7785 = vmatpush3.bf16.msra.mxu0 %v7826_v3  ;;  %v7864_v30 = vld [vmem:[#allocation16 + $0xc4] ss:$16 sps:$4 sm:$0xff]   ;;  %v7862_v31 = vld [vmem:[#allocation16 + $0xc0] ss:$16 sps:$4 sm:$0xff]   ;;  %v6888_v36 = vld [vmem:[#allocation10] ss:$0 sm:$0xff]  ;;  %p8889_p7 = por %p8888_p6, %p8887_p5 }
  0xa0   :  { %7786 = vmatprep.subr.bf16.mxu0 %v8972_v0  ;;  %430 = vmatpush1.bf16.msra.mxu1 %v7840_v12  ;;  %v7870_v32 = vld [vmem:[#allocation16 + $0xa4] ss:$16 sps:$4 sm:$0xff]   ;;  %v7868_v33 = vld [vmem:[#allocation16 + $0xa0] ss:$16 sps:$4 sm:$0xff]   ;;  %v7859_v43 = vld [vmem:[#allocation16 + $0xe8] ss:$16 sps:$4 sm:$0xff]  }
  0xa1   :  { %431 = vmatprep.subr.bf16.mxu1 %v7841_v13  ;;  %v7876_v34 = vld [vmem:[#allocation16 + $0x84] ss:$16 sps:$4 sm:$0xff]   ;;  %v7874_v35 = vld [vmem:[#allocation16 + $0x80] ss:$16 sps:$4 sm:$0xff]   ;;  %v7867_v46 = vld [vmem:[#allocation16 + $0xcc] ss:$16 sps:$4 sm:$0xff]   ;;  %p8890_p8 = pnand %p8889_p7, %p8883_p4 }
  0xa2   :  { %v7865_v47 = vld [vmem:[#allocation16 + $0xc8] ss:$16 sps:$4 sm:$0xff]   ;;  %v7873_v48 = vld [vmem:[#allocation16 + $0xac] ss:$16 sps:$4 sm:$0xff]   ;;  %v7882_v52 = vld [vmem:[#allocation16 + $0x64] ss:$16 sps:$4 sm:$0xff]  }
  0xa3   :  { %7787 = vmatpush3.bf16.msra.mxu0 %v7827_v6  ;;  %v7871_v49 = vld [vmem:[#allocation16 + $0xa8] ss:$16 sps:$4 sm:$0xff]   ;;  %v7879_v50 = vld [vmem:[#allocation16 + $0x8c] ss:$16 sps:$4 sm:$0xff]   ;;  %v7880_v54 = vld [vmem:[#allocation16 + $0x60] ss:$16 sps:$4 sm:$0xff]  }
  0xa4   :  { %7788 = vmatprep.subr.bf16.mxu0 %v8972_v0  ;;  %432 = vmatpush1.bf16.msra.mxu1 %v7843_v14  ;;  %v7877_v51 = vld [vmem:[#allocation16 + $0x88] ss:$16 sps:$4 sm:$0xff]   ;;  %v7885_v53 = vld [vmem:[#allocation16 + $0x6c] ss:$16 sps:$4 sm:$0xff]   ;;  %v7888_v56 = vld [vmem:[#allocation16 + $0x44] ss:$16 sps:$4 sm:$0xff]  }
  0xa5   :  { %433 = vmatprep.subr.bf16.mxu1 %v7844_v15  ;;  %v7883_v55 = vld [vmem:[#allocation16 + $0x68] ss:$16 sps:$4 sm:$0xff]   ;;  %v7891_v57 = vld [vmem:[#allocation16 + $0x4c] ss:$16 sps:$4 sm:$0xff]   ;;  %v7886_v58 = vld [vmem:[#allocation16 + $0x40] ss:$16 sps:$4 sm:$0xff]  }
  0xa6   :  { %v7889_v59 = vld [vmem:[#allocation16 + $0x48] ss:$16 sps:$4 sm:$0xff]   ;;  %v7894_v60 = vld [vmem:[#allocation16 + $0x24] ss:$16 sps:$4 sm:$0xff]   ;;  %v7897_v61 = vld [vmem:[#allocation16 + $0x2c] ss:$16 sps:$4 sm:$0xff]  }
  0xa7   :  { %7789 = vmatpush3.bf16.msra.mxu0 %v7828_v10  ;;  %v7892_v62 = vld [vmem:[#allocation16 + $0x20] ss:$16 sps:$4 sm:$0xff]   ;;  %v7895_v63 = vld [vmem:[#allocation16 + $0x28] ss:$16 sps:$4 sm:$0xff]   ;;  %v7903_v1 = vld [vmem:[#allocation16 + $0xc] ss:$16 sps:$4 sm:$0xff]  }
  0xa8   :  { %7790 = vmatprep.subr.bf16.mxu0 %v8972_v0  ;;  %434 = vmatpush1.bf16.msra.mxu1 %v7846_v17  ;;  %v7898_v2 = vld [vmem:[#allocation16] ss:$16 sps:$4 sm:$0xff]   ;;  %v7901_v3 = vld [vmem:[#allocation16 + $0x8] ss:$16 sps:$4 sm:$0xff]   ;;  %v7906_v4 = vld [vmem:[#allocation16 + $0x1e4] ss:$16 sps:$4 sm:$0xff]  }
  0xa9   :  { %435 = vmatprep.subr.bf16.mxu1 %v7847_v18  ;;  %v7909_v5 = vld [vmem:[#allocation16 + $0x1ec] ss:$16 sps:$4 sm:$0xff]   ;;  %v7904_v6 = vld [vmem:[#allocation16 + $0x1e0] ss:$16 sps:$4 sm:$0xff]   ;;  %v7907_v7 = vld [vmem:[#allocation16 + $0x1e8] ss:$16 sps:$4 sm:$0xff]  }
  0xaa   :  { %v7912_v8 = vld [vmem:[#allocation16 + $0x1c4] ss:$16 sps:$4 sm:$0xff]   ;;  %v7915_v9 = vld [vmem:[#allocation16 + $0x1cc] ss:$16 sps:$4 sm:$0xff]   ;;  %v7910_v10 = vld [vmem:[#allocation16 + $0x1c0] ss:$16 sps:$4 sm:$0xff]  }
  0xab   :  { %7791 = vmatpush3.bf16.msra.mxu0 %v7829_v11  ;;  %v7913_v11 = vld [vmem:[#allocation16 + $0x1c8] ss:$16 sps:$4 sm:$0xff]   ;;  %v7918_v12 = vld [vmem:[#allocation16 + $0x1a4] ss:$16 sps:$4 sm:$0xff]   ;;  %v7921_v13 = vld [vmem:[#allocation16 + $0x1ac] ss:$16 sps:$4 sm:$0xff]  }
  0xac   :  { %7792 = vmatprep.subr.bf16.mxu0 %v8972_v0  ;;  %436 = vmatpush1.bf16.msra.mxu1 %v7849_v20  ;;  %v7916_v14 = vld [vmem:[#allocation16 + $0x1a0] ss:$16 sps:$4 sm:$0xff]   ;;  %v7919_v15 = vld [vmem:[#allocation16 + $0x1a8] ss:$16 sps:$4 sm:$0xff]   ;;  %v7927_v17 = vld [vmem:[#allocation16 + $0x18c] ss:$16 sps:$4 sm:$0xff]  }
  0xad   :  { %437 = vmatprep.subr.bf16.mxu1 %v7850_v22  ;;  %v7922_v18 = vld [vmem:[#allocation16 + $0x180] ss:$16 sps:$4 sm:$0xff]   ;;  %v7930_v20 = vld [vmem:[#allocation16 + $0x164] ss:$16 sps:$4 sm:$0xff]  }
  0xae   :  { %v7928_v22 = vld [vmem:[#allocation16 + $0x160] ss:$16 sps:$4 sm:$0xff]  }
  0xaf   :  { %7793 = vmatpush3.bf16.msra.mxu0 %v7830_v16  ;;  %v7924_v16 = vld [vmem:[#allocation16 + $0x184] ss:$16 sps:$4 sm:$0xff]   ;;  %v7934_v26 = vld [vmem:[#allocation16 + $0x140] ss:$16 sps:$4 sm:$0xff]  }
  0xb0   :  { %7794 = vmatprep.subr.bf16.mxu0 %v8972_v0  ;;  %438 = vmatpush1.bf16.msra.mxu1 %v7852_v23  ;;  %v7900_v0 = vld [vmem:[#allocation16 + $0x4] ss:$16 sps:$4 sm:$0xff]   ;;  %v7931_v23 = vld [vmem:[#allocation16 + $0x168] ss:$16 sps:$4 sm:$0xff]  }
  0xb1   :  { %439 = vmatprep.subr.bf16.mxu1 %v7853_v24  ;;  %v7936_v24 = vld [vmem:[#allocation16 + $0x144] ss:$16 sps:$4 sm:$0xff]  }
  0xb3   :  { %7795 = vmatpush3.bf16.msra.mxu0 %v7831_v19  ;;  %v7925_v19 = vld [vmem:[#allocation16 + $0x188] ss:$16 sps:$4 sm:$0xff]  }
  0xb4   :  { %440 = vmatpush1.bf16.msra.mxu1 %v7855_v25  ;;  %929 = vmatprep.subr.bf16.mxu0 %v7858_v28  ;;  %v7939_v25 = vld [vmem:[#allocation16 + $0x14c] ss:$16 sps:$4 sm:$0xff]   ;;  %v7940_v28 = vld [vmem:[#allocation16 + $0x120] ss:$16 sps:$4 sm:$0xff]  }
  0xb5   :  { %970 = vmatprep.subr.bf16.mxu1 %v7861_v29  ;;  %v7942_v29 = vld [vmem:[#allocation16 + $0x124] ss:$16 sps:$4 sm:$0xff]  }
  0xb6   :  { %7797 = vmatmul.mubr.bf16.vlgmr.msra.gmra.mxu0 %v213_v21  ;;  %v7933_v21 = vld [vmem:[#allocation16 + $0x16c] ss:$16 sps:$4 sm:$0xff]  }
  0xb7   :  { %930 = vmatpush1.bf16.msra.mxu0 %v7856_v27  ;;  %v7937_v27 = vld [vmem:[#allocation16 + $0x148] ss:$16 sps:$4 sm:$0xff]  }
  0xb8   :  { %931 = vmatprep.subr.bf16.mxu0 %v7864_v30  ;;  %v7943_v30 = vld [vmem:[#allocation16 + $0x128] ss:$16 sps:$4 sm:$0xff]  }
  0xbb   :  { %932 = vmatpush1.bf16.msra.mxu0 %v7862_v31  ;;  %v7945_v31 = vld [vmem:[#allocation16 + $0x12c] ss:$16 sps:$4 sm:$0xff]  }
  0xbc   :  { %933 = vmatprep.subr.bf16.mxu0 %v7870_v32  ;;  %v7948_v32 = vld [vmem:[#allocation16 + $0x104] ss:$16 sps:$4 sm:$0xff]  }
  0xbf   :  { %934 = vmatpush1.bf16.msra.mxu0 %v7868_v33  ;;  %v7951_v33 = vld [vmem:[#allocation16 + $0x10c] ss:$16 sps:$4 sm:$0xff]  }
  0xc0   :  { %935 = vmatprep.subr.bf16.mxu0 %v7876_v34  ;;  %v7946_v34 = vld [vmem:[#allocation16 + $0x100] ss:$16 sps:$4 sm:$0xff]  }
  0xc3   :  { %936 = vmatpush1.bf16.msra.mxu0 %v7874_v35  ;;  %v7949_v35 = vld [vmem:[#allocation16 + $0x108] ss:$16 sps:$4 sm:$0xff]  }
  0xc4   :  { %937 = vmatprep.subr.bf16.mxu0 %v7882_v52 }
  0xc7   :  { %938 = vmatpush1.bf16.msra.mxu0 %v7880_v54 }
  0xc8   :  { %939 = vmatprep.subr.bf16.mxu0 %v7888_v56 }
  0xcb   :  { %940 = vmatpush1.bf16.msra.mxu0 %v7886_v58 }
  0xcc   :  { %941 = vmatprep.subr.bf16.mxu0 %v7894_v60 }
  0xcf   :  { %942 = vmatpush1.bf16.msra.mxu0 %v7892_v62 }
  0xd0   :  { %943 = vmatprep.subr.bf16.mxu0 %v7900_v0 }
  0xd3   :  { %944 = vmatpush1.bf16.msra.mxu0 %v7898_v2 }
  0xd4   :  { %945 = vmatprep.subr.bf16.mxu0 %v7906_v4 }
  0xd7   :  { %946 = vmatpush2.bf16.msra.mxu0 %v7904_v6 }
  0xd8   :  { %947 = vmatprep.subr.bf16.mxu0 %v7912_v8 }
  0xdb   :  { %948 = vmatpush2.bf16.msra.mxu0 %v7910_v10 }
  0xdc   :  { %949 = vmatprep.subr.bf16.mxu0 %v7918_v12 }
  0xdf   :  { %950 = vmatpush2.bf16.msra.mxu0 %v7916_v14 }
  0xe0   :  { %951 = vmatprep.subr.bf16.mxu0 %v7924_v16  ;;  %v467_v16 = vld [vmem:[#allocation14] sm:$0x3] }
  0xe3   :  { %952 = vmatpush2.bf16.msra.mxu0 %v7922_v18 }
  0xe4   :  { %953 = vmatprep.subr.bf16.mxu0 %v7930_v20 }
  0xe7   :  { %954 = vmatpush2.bf16.msra.mxu0 %v7928_v22 }
  0xe8   :  { %955 = vmatprep.subr.bf16.mxu0 %v7936_v24 }
  0xeb   :  { %956 = vmatpush2.bf16.msra.mxu0 %v7934_v26 }
  0xec   :  { %957 = vmatprep.subr.bf16.mxu0 %v7942_v29 }
  0xef   :  { %958 = vmatpush2.bf16.msra.mxu0 %v7940_v28 }
  0xf0   :  { %959 = vmatprep.subr.bf16.mxu0 %v7948_v32 }
  0xf3   :  { %960 = vmatpush2.bf16.msra.mxu0 %v7946_v34 }
 0x176   :  { %v319_v37 = vpop.f32.mrf.mxu0 }
 0x177   :  { %v320_v38 = vadd.f32 %v6888_v36, %v319_v37 }
 0x178   :  { %v7798_v39 = vpop.f32.mrf.mxu0 }
 0x179   :  { %vm325_vm1 = vcmp.gt.f32.partialorder %v320_v38, 0.0  ;;  %v326_v40 = vmul.f32 0.2, %v320_v38 }
 0x17a   :  { %v322_v41 = vpop.f32.mrf.mxu0 }
 0x17b   :  { %v327_v42 = vsel %vm325_vm1, %v320_v38, %v326_v40 }
 0x17c   :  { %v7799_v44 = vpop.f32.mrf.mxu0  ;;  %v328_v45 = vpack.c.bf16 %v327_v42, %v327_v42 }
 0x17e   :  { %458 = vmatmul.mubr.bf16.vlgmr.msra.gmra.mxu1 %v328_v45 }
 0x17f   :  { %971 = vmatpush1.bf16.msra.mxu1 %v7859_v43 }
 0x180   :  { %972 = vmatprep.subr.bf16.mxu1 %v7867_v46 }
 0x183   :  { %973 = vmatpush1.bf16.msra.mxu1 %v7865_v47 }
 0x184   :  { %974 = vmatprep.subr.bf16.mxu1 %v7873_v48 }
 0x187   :  { %975 = vmatpush1.bf16.msra.mxu1 %v7871_v49 }
 0x188   :  { %976 = vmatprep.subr.bf16.mxu1 %v7879_v50 }
 0x18b   :  { %977 = vmatpush1.bf16.msra.mxu1 %v7877_v51 }
 0x18c   :  { %978 = vmatprep.subr.bf16.mxu1 %v7885_v53 }
 0x18f   :  { %979 = vmatpush1.bf16.msra.mxu1 %v7883_v55 }
 0x190   :  { %980 = vmatprep.subr.bf16.mxu1 %v7891_v57 }
 0x193   :  { %981 = vmatpush1.bf16.msra.mxu1 %v7889_v59 }
 0x194   :  { %982 = vmatprep.subr.bf16.mxu1 %v7897_v61 }
 0x197   :  { %983 = vmatpush1.bf16.msra.mxu1 %v7895_v63 }
 0x198   :  { %984 = vmatprep.subr.bf16.mxu1 %v7903_v1 }
 0x19b   :  { %985 = vmatpush1.bf16.msra.mxu1 %v7901_v3 }
 0x19c   :  { %986 = vmatprep.subr.bf16.mxu1 %v7909_v5 }
 0x19f   :  { %987 = vmatpush2.bf16.msra.mxu1 %v7907_v7 }
 0x1a0   :  { %988 = vmatprep.subr.bf16.mxu1 %v7915_v9 }
 0x1a3   :  { %989 = vmatpush2.bf16.msra.mxu1 %v7913_v11  ;;  %v512_v11 = vlaneseq }
 0x1a4   :  { %990 = vmatprep.subr.bf16.mxu1 %v7921_v13 }
 0x1a5   :  { %v9089_v13 = vshrl.u32 %v512_v11, 7 }
 0x1a7   :  { %991 = vmatpush2.bf16.msra.mxu1 %v7919_v15  ;;  %v9092_v14 = vsub.s32 0, %v9089_v13  ;;  %v466_v15 = vld [vmem:[#allocation13] sm:$0x3] }
 0x1a8   :  { %992 = vmatprep.subr.bf16.mxu1 %v7927_v17  ;;  %v9095_v17 = vsub.s32 1, %v9089_v13 }
 0x1a9   :  { %v528_v22 = vrot.slane %v467_v16, %v9092_v14 }
 0x1aa   :  { %v519_v24 = vrot.slane %v466_v15, %v9095_v17  ;;  %v532_v28 = vrot.slane %v467_v16, %v9095_v17 }
 0x1ab   :  { %993 = vmatpush2.bf16.msra.mxu1 %v7925_v19  ;;  %v515_v19 = vrot.slane %v466_v15, %v9092_v14 }
 0x1ac   :  { %994 = vmatprep.subr.bf16.mxu1 %v7933_v21 }
 0x1af   :  { %995 = vmatpush2.bf16.msra.mxu1 %v7931_v23 }
 0x1b0   :  { %996 = vmatprep.subr.bf16.mxu1 %v7939_v25 }
 0x1b3   :  { %997 = vmatpush2.bf16.msra.mxu1 %v7937_v27 }
 0x1b4   :  { %998 = vmatprep.subr.bf16.mxu1 %v7945_v31 }
 0x1b7   :  { %999 = vmatpush2.bf16.msra.mxu1 %v7943_v30 }
 0x1b8   :  { %1000 = vmatprep.subr.bf16.mxu1 %v7951_v33 }
 0x1bb   :  { %1001 = vmatpush2.bf16.msra.mxu1 %v7949_v35 }
 0x23e   :  { %v459_v36 = vpop.f32.mrf.mxu1 }
 0x23f   :  { %v468_v37 = vrot.slane %v459_v36, 4  ;;  %v483_v38 = vmul.f32 %v459_v36, %v459_v36 }
 0x240   :  { %v461_v39 = vpop.f32.mrf.mxu1 }
 0x241   :  { %v469_v40 = vadd.f32 %v468_v37, %v459_v36  ;;  %v485_v41 = vrot.slane %v483_v38, 4  ;;  %v474_v42 = vrot.slane %v461_v39, 4  ;;  %v484_v43 = vmul.f32 %v461_v39, %v461_v39 }
 0x242   :  { %v463_v44 = vpop.f32.mrf.mxu1 }
 0x243   :  { %v470_v45 = vrot.slane %v469_v40, 2  ;;  %v486_v46 = vadd.f32 %v485_v41, %v483_v38  ;;  %v475_v47 = vadd.f32 %v474_v42, %v461_v39  ;;  %v491_v48 = vrot.slane %v484_v43, 4 }
 0x244   :  { %v464_v49 = vpop.f32.mrf.mxu1 }
 0x245   :  { %v471_v50 = vadd.f32 %v470_v45, %v469_v40  ;;  %v487_v51 = vrot.slane %v486_v46, 2  ;;  %v476_v52 = vrot.slane %v475_v47, 2  ;;  %v492_v53 = vadd.f32 %v491_v48, %v484_v43 }
 0x247   :  { %v472_v54 = vrot.slane %v471_v50, 1  ;;  %v488_v55 = vadd.f32 %v487_v51, %v486_v46  ;;  %v477_v56 = vadd.f32 %v476_v52, %v475_v47  ;;  %v493_v57 = vrot.slane %v492_v53, 2 }
 0x249   :  { %v473_v58 = vadd.f32 %v472_v54, %v471_v50  ;;  %v489_v59 = vrot.slane %v488_v55, 1  ;;  %v478_v60 = vrot.slane %v477_v56, 1  ;;  %v494_v61 = vadd.f32 %v493_v57, %v492_v53 }
 0x24b   :  { %v481_v62 = vmul.f32 0.125, %v473_v58  ;;  %v490_v63 = vadd.f32 %v489_v59, %v488_v55  ;;  %v479_v0 = vadd.f32 %v478_v60, %v477_v56  ;;  %v495_v1 = vrot.slane %v494_v61, 1 }
 0x24d   :  { %v497_v2 = vmul.f32 0.125, %v490_v63  ;;  %v499_v3 = vmul.f32 %v481_v62, %v481_v62  ;;  %v482_v4 = vmul.f32 0.125, %v479_v0  ;;  %v496_v5 = vadd.f32 %v495_v1, %v494_v61 }
 0x24e   :  { %v507_v18 = vsub.f32 %v459_v36, %v481_v62 }
 0x24f   :  { %v501_v6 = vsub.f32 %v497_v2, %v499_v3  ;;  %v500_v7 = vmul.f32 %v482_v4, %v482_v4  ;;  %v498_v8 = vmul.f32 0.125, %v496_v5  ;;  %v508_v23 = vsub.f32 %v461_v39, %v482_v4 }
 0x251   :  { %v503_v9 = vadd.f32 0.8, %v501_v6  ;;  %v502_v10 = vsub.f32 %v498_v8, %v500_v7 }
 0x253   :  { %7952 = vrsqrt.f32 %v503_v9  ;;  %v504_v12 = vadd.f32 0.8, %v502_v10 }
 0x255   :  { %7954 = vrsqrt.f32 %v504_v12 }
 0x260   :  { %v7953_v20 = vpop.eup %7952 }
 0x261   :  { %v509_v21 = vmul.f32 %v7953_v20, %v507_v18 }
 0x262   :  { %v7955_v25 = vpop.eup %7954 }
 0x263   :  { %v522_v26 = vmul.f32 %v515_v19, %v509_v21  ;;  %v510_v27 = vmul.f32 %v7955_v25, %v508_v23 }
 0x265   :  { %v535_v29 = vadd.f32 %v528_v22, %v522_v26  ;;  %v523_v30 = vmul.f32 %v519_v24, %v510_v27 }
 0x267   :  { %v539_v31 = vmul.f32 0.2, %v535_v29  ;;  %v536_v32 = vadd.f32 %v532_v28, %v523_v30  ;;  %vm537_vm2 = vcmp.gt.f32.partialorder %v535_v29, 0.0 }
 0x269   :  { %vm538_vm3 = vcmp.gt.f32.partialorder %v536_v32, 0.0  ;;  %v540_v33 = vmul.f32 0.2, %v536_v32  ;;  %v541_v34 = vsel %vm537_vm2, %v535_v29, %v539_v31 }
 0x26a   :  { %v543_v37 = vpack.c.bf16 %v541_v34, %v541_v34 }
 0x26b   :  { %v542_v35 = vsel %vm538_vm3, %v536_v32, %v540_v33 }
 0x26c   :  { %v544_v36 = vpack.c.bf16 %v542_v35, %v542_v35 }
 0x26e   :  { %961 = vmatprep.mubr.bf16.mxu0 %v544_v36  ;;  %1002 = vmatprep.mubr.bf16.mxu1 %v544_v36 }
 0x26f   :  { %962 = vmatmul.mubr.bf16.vlgmr.msra.gmra.mxu0 %v543_v37  ;;  %1003 = vmatmul.mubr.bf16.vlgmr.msra.gmra.mxu1 %v543_v37 }
 0x270   :  { %8893 = shalt.err (!%p8890_p8)  }
 0x271   :  { %200 = dma.hbm_to_vmem [thread:$0]  %s9317_s9, 32768, %s198_s13, [#allocation4] }
 0x272   :  { %s8902_s20 = scalar_lea.vmem %s210_s0, 57344  ;;  %p8907_p10 = scmp.lt.s32.totalorder %s210_s0, %s210_s0 }
 0x273   :  { %p8903_p9 = scmp.ne.s32.totalorder %s210_s0, %s8902_s20  ;;  %p8908_p11 = scmp.lt.s32.totalorder %s8902_s20, %s8902_s20 }
 0x275   :  { %p8909_p12 = por %p8908_p11, %p8907_p10 }
 0x277   :  { %p8910_p13 = pnand %p8909_p12, %p8903_p9 }
 0x279   :  { %8913 = shalt.err (!%p8910_p13)  }
 0x27a   :  { %212 = dma.hbm_to_vmem [thread:$0]  %s9320_s12, 57344, %s210_s0, [#allocation4 + $0x1] }
 0x32f   :  { %v9107_v38 = vpop.f32.mrf.mxu0  ;;  %v9109_v39 = vpop.f32.mrf.mxu1 }
 0x330   :  { %v1013_v40 = vrot.slane %v9107_v38, 4  ;;  %v1041_v41 = vmul.f32 %v9107_v38, %v9107_v38  ;;  %v1025_v42 = vrot.slane %v9109_v39, 4  ;;  %v1043_v43 = vmul.f32 %v9109_v39, %v9109_v39 }
 0x331   :  { %v9117_v44 = vpop.f32.mrf.mxu0  ;;  %v9119_v45 = vpop.f32.mrf.mxu1 }
 0x332   :  { %v1014_v46 = vadd.f32 %v1013_v40, %v9107_v38  ;;  %v1045_v47 = vrot.slane %v1041_v41, 4  ;;  %v1026_v48 = vadd.f32 %v1025_v42, %v9109_v39  ;;  %v1057_v49 = vrot.slane %v1043_v43, 4 }
 0x333   :  { %v1019_v50 = vrot.slane %v9117_v44, 4  ;;  %v1042_v51 = vmul.f32 %v9117_v44, %v9117_v44  ;;  %v1031_v52 = vrot.slane %v9119_v45, 4  ;;  %v1044_v53 = vmul.f32 %v9119_v45, %v9119_v45  ;;  %v967_v54 = vpop.f32.mrf.mxu0  ;;  %v1008_v55 = vpop.f32.mrf.mxu1 }
 0x334   :  { %v1015_v56 = vrot.slane %v1014_v46, 2  ;;  %v1046_v57 = vadd.f32 %v1045_v47, %v1041_v41  ;;  %v1027_v58 = vrot.slane %v1026_v48, 2  ;;  %v1058_v59 = vadd.f32 %v1057_v49, %v1043_v43 }
 0x335   :  { %v1020_v60 = vadd.f32 %v1019_v50, %v9117_v44  ;;  %v1051_v61 = vrot.slane %v1042_v51, 4  ;;  %v1032_v62 = vadd.f32 %v1031_v52, %v9119_v45  ;;  %v1063_v63 = vrot.slane %v1044_v53, 4  ;;  %v968_v0 = vpop.f32.mrf.mxu0  ;;  %v1009_v1 = vpop.f32.mrf.mxu1 }
 0x336   :  { %v1016_v2 = vadd.f32 %v1015_v56, %v1014_v46  ;;  %v1047_v3 = vrot.slane %v1046_v57, 2  ;;  %v1028_v4 = vadd.f32 %v1027_v58, %v1026_v48  ;;  %v1059_v5 = vrot.slane %v1058_v59, 2 }
 0x337   :  { %v1021_v6 = vrot.slane %v1020_v60, 2  ;;  %v1052_v7 = vadd.f32 %v1051_v61, %v1042_v51  ;;  %v1033_v8 = vrot.slane %v1032_v62, 2  ;;  %v1064_v9 = vadd.f32 %v1063_v63, %v1044_v53  ;;  %v1011_v61 = vld [vmem:[#allocation17] sm:$0xf]  ;;  %v1012_v63 = vld [vmem:[#allocation19] sm:$0xf] }
 0x338   :  { %v1017_v10 = vrot.slane %v1016_v2, 1  ;;  %v1048_v11 = vadd.f32 %v1047_v3, %v1046_v57  ;;  %v1029_v12 = vrot.slane %v1028_v4, 1  ;;  %v1060_v15 = vadd.f32 %v1059_v5, %v1058_v59 }
 0x339   :  { %v1022_v16 = vadd.f32 %v1021_v6, %v1020_v60  ;;  %v1053_v18 = vrot.slane %v1052_v7, 2  ;;  %v1034_v19 = vadd.f32 %v1033_v8, %v1032_v62  ;;  %v1065_v20 = vrot.slane %v1064_v9, 2 }
 0x33a   :  { %v1018_v21 = vadd.f32 %v1017_v10, %v1016_v2  ;;  %v1049_v22 = vrot.slane %v1048_v11, 1  ;;  %v1030_v23 = vadd.f32 %v1029_v12, %v1028_v4  ;;  %v1061_v24 = vrot.slane %v1060_v15, 1 }
 0x33b   :  { %v1023_v25 = vrot.slane %v1022_v16, 1  ;;  %v1054_v26 = vadd.f32 %v1053_v18, %v1052_v7  ;;  %v1035_v27 = vrot.slane %v1034_v19, 1  ;;  %v1066_v28 = vadd.f32 %v1065_v20, %v1064_v9 }
 0x33c   :  { %v1037_v29 = vmul.f32 0.125, %v1018_v21  ;;  %v1050_v30 = vadd.f32 %v1049_v22, %v1048_v11  ;;  %v1039_v31 = vmul.f32 0.125, %v1030_v23  ;;  %v1062_v32 = vadd.f32 %v1061_v24, %v1060_v15 }
 0x33d   :  { %v1024_v33 = vadd.f32 %v1023_v25, %v1022_v16  ;;  %v1055_v34 = vrot.slane %v1054_v26, 1  ;;  %v1036_v35 = vadd.f32 %v1035_v27, %v1034_v19  ;;  %v1067_v36 = vrot.slane %v1066_v28, 1 }
 0x33e   :  { %v1069_v37 = vmul.f32 0.125, %v1050_v30  ;;  %v1073_v40 = vmul.f32 %v1037_v29, %v1037_v29  ;;  %v1071_v41 = vmul.f32 0.125, %v1062_v32  ;;  %v1075_v42 = vmul.f32 %v1039_v31, %v1039_v31 }
 0x33f   :  { %v1038_v43 = vmul.f32 0.125, %v1024_v33  ;;  %v1056_v46 = vadd.f32 %v1055_v34, %v1054_v26  ;;  %v1040_v48 = vmul.f32 0.125, %v1036_v35  ;;  %v1068_v49 = vadd.f32 %v1067_v36, %v1066_v28 }
 0x340   :  { %v1077_v47 = vsub.f32 %v1069_v37, %v1073_v40  ;;  %v1079_v50 = vsub.f32 %v1071_v41, %v1075_v42  ;;  %v9132_v62 = vsub.s32 2, %v9089_v13  ;;  %v1089_v0 = vsub.f32 %v9107_v38, %v1037_v29 }
 0x341   :  { %v1070_v51 = vmul.f32 0.125, %v1056_v46  ;;  %v1074_v52 = vmul.f32 %v1038_v43, %v1038_v43  ;;  %v1072_v54 = vmul.f32 0.125, %v1068_v49  ;;  %v1076_v55 = vmul.f32 %v1040_v48, %v1040_v48 }
 0x342   :  { %v1081_v53 = vadd.f32 0.8, %v1077_v47  ;;  %v1083_v56 = vadd.f32 0.8, %v1079_v50  ;;  %v1101_v1 = vrot.slane %v1011_v61, %v9092_v14  ;;  %v9137_v2 = vsub.s32 3, %v9089_v13 }
 0x343   :  { %v1078_v57 = vsub.f32 %v1070_v51, %v1074_v52  ;;  %v1080_v58 = vsub.f32 %v1072_v54, %v1076_v55  ;;  %v1091_v4 = vsub.f32 %v9109_v39, %v1039_v31  ;;  %v1109_v5 = vrot.slane %v1011_v61, %v9132_v62 }
 0x344   :  { %7956 = vrsqrt.f32 %v1081_v53  ;;  %v1126_v8 = vrot.slane %v1012_v63, %v9092_v14  ;;  %v1134_v10 = vrot.slane %v1012_v63, %v9132_v62  ;;  %v1090_v11 = vsub.f32 %v9117_v44, %v1038_v43 }
 0x345   :  { %7958 = vrsqrt.f32 %v1083_v56  ;;  %v1082_v59 = vadd.f32 0.8, %v1078_v57  ;;  %v1084_v60 = vadd.f32 0.8, %v1080_v58  ;;  %v1105_v38 = vrot.slane %v1011_v61, %v9095_v17 }
 0x346   :  { %v1092_v16 = vsub.f32 %v9119_v45, %v1040_v48  ;;  %v1113_v18 = vrot.slane %v1011_v61, %v9137_v2  ;;  %v1130_v21 = vrot.slane %v1012_v63, %v9095_v17  ;;  %v1138_v24 = vrot.slane %v1012_v63, %v9137_v2 }
 0x347   :  { %7960 = vrsqrt.f32 %v1082_v59 }
 0x348   :  { %7962 = vrsqrt.f32 %v1084_v60 }
 0x351   :  { %v7957_v3 = vpop.eup %7956 }
 0x352   :  { %v7959_v6 = vpop.eup %7958  ;;  %v1093_v7 = vmul.f32 %v7957_v3, %v1089_v0 }
 0x353   :  { %v1095_v9 = vmul.f32 %v7959_v6, %v1091_v4 }
 0x354   :  { %v7961_v12 = vpop.eup %7960  ;;  %v1118_v15 = vmul.f32 %v1101_v1, %v1093_v7 }
 0x355   :  { %v7963_v39 = vpop.eup %7962  ;;  %v1120_v19 = vmul.f32 %v1109_v5, %v1095_v9  ;;  %v1094_v20 = vmul.f32 %v7961_v12, %v1090_v11 }
 0x356   :  { %v1143_v22 = vadd.f32 %v1126_v8, %v1118_v15  ;;  %v1096_v23 = vmul.f32 %v7963_v39, %v1092_v16 }
 0x357   :  { %v1145_v25 = vadd.f32 %v1134_v10, %v1120_v19  ;;  %v1119_v26 = vmul.f32 %v1105_v38, %v1094_v20 }
 0x358   :  { %vm1147_vm4 = vcmp.gt.f32.partialorder %v1143_v22, 0.0  ;;  %v1151_v44 = vmul.f32 0.2, %v1143_v22  ;;  %v1121_v27 = vmul.f32 %v1113_v18, %v1096_v23 }
 0x359   :  { %vm1149_vm5 = vcmp.gt.f32.partialorder %v1145_v25, 0.0  ;;  %v1153_v28 = vmul.f32 0.2, %v1145_v25  ;;  %v1144_v29 = vadd.f32 %v1130_v21, %v1119_v26 }
 0x35a   :  { %v1155_v45 = vsel %vm1147_vm4, %v1143_v22, %v1151_v44  ;;  %v1146_v30 = vadd.f32 %v1138_v24, %v1121_v27 }
 0x35b   :  { %v9149_v31 = vpack.c.bf16 %v1155_v45, %v1155_v45  ;;  %v1157_v32 = vsel %vm1149_vm5, %v1145_v25, %v1153_v28  ;;  %vm1148_vm6 = vcmp.gt.f32.partialorder %v1144_v29, 0.0  ;;  %v1152_v33 = vmul.f32 0.2, %v1144_v29 }
 0x35c   :  { %v9151_v34 = vpack.c.bf16 %v1157_v32, %v1157_v32  ;;  %vm1150_vm7 = vcmp.gt.f32.partialorder %v1146_v30, 0.0  ;;  %v1154_v35 = vmul.f32 0.2, %v1146_v30 }
 0x35d   :  { %v1156_v36 = vsel %vm1148_vm6, %v1144_v29, %v1152_v33 }
 0x35e   :  { %v9153_v37 = vpack.c.bf16 %v1156_v36, %v1156_v36  ;;  %v1158_v40 = vsel %vm1150_vm7, %v1146_v30, %v1154_v35 }
 0x35f   :  { %v9155_v41 = vpack.c.bf16 %v1158_v40, %v1158_v40 }
 0x360   :  { %8948 = dma.done.wait [#allocation4], 32768 }
 0x361   :  { %8949 = vsyncadd [#allocation4], 4294934528  ;;  %2735 = vmatprep.mubr.bf16.mxu0 %v9153_v37  ;;  %2776 = vmatprep.mubr.bf16.mxu1 %v9155_v41  ;;  %v1223_v42 = vld [vmem:[#allocation2 + $0x1c0] sm:$0xff] }
 0x362   :  { %v1227_v43 = vld [vmem:[#allocation2 + $0x1e0] sm:$0xff] }
 0x363   :  { %v1351_v46 = vld [vmem:[#allocation2 + $0x5c0] sm:$0xff]  ;;  %v7034_v47 = vcombine.high %v1223_v42, %v1227_v43  ;;  %v7033_v49 = vcombine.low %v1223_v42, %v1227_v43 }
 0x364   :  { %v1355_v48 = vld [vmem:[#allocation2 + $0x5e0] sm:$0xff] }
 0x365   :  { %v1215_v50 = vld [vmem:[#allocation2 + $0x180] sm:$0xff]  ;;  %v7162_v52 = vcombine.high %v1351_v46, %v1355_v48  ;;  %v7161_v53 = vcombine.low %v1351_v46, %v1355_v48  ;;  %2703 = vmatprep.subr.bf16.mxu0 %v7034_v47 }
 0x366   :  { %v1219_v51 = vld [vmem:[#allocation2 + $0x1a0] sm:$0xff]  ;;  %2704 = vmatpush1.bf16.msra.mxu0 %v7033_v49 }
 0x367   :  { %v7026_v54 = vcombine.high %v1215_v50, %v1219_v51  ;;  %v1343_v55 = vld [vmem:[#allocation2 + $0x580] sm:$0xff]  ;;  %2744 = vmatprep.subr.bf16.mxu1 %v7162_v52  ;;  %v7025_v63 = vcombine.low %v1215_v50, %v1219_v51 }
 0x368   :  { %v1347_v56 = vld [vmem:[#allocation2 + $0x5a0] sm:$0xff]  ;;  %2745 = vmatpush1.bf16.msra.mxu1 %v7161_v53 }
 0x369   :  { %v1207_v57 = vld [vmem:[#allocation2 + $0x140] sm:$0xff]  ;;  %v7154_v58 = vcombine.high %v1343_v55, %v1347_v56  ;;  %2705 = vmatprep.subr.bf16.mxu0 %v7026_v54  ;;  %v7153_v0 = vcombine.low %v1343_v55, %v1347_v56 }
 0x36a   :  { %v1211_v59 = vld [vmem:[#allocation2 + $0x160] sm:$0xff]  ;;  %2706 = vmatpush1.bf16.msra.mxu0 %v7025_v63 }
 0x36b   :  { %v1335_v60 = vld [vmem:[#allocation2 + $0x540] sm:$0xff]  ;;  %v7018_v1 = vcombine.high %v1207_v57, %v1211_v59  ;;  %2746 = vmatprep.subr.bf16.mxu1 %v7154_v58  ;;  %v7017_v8 = vcombine.low %v1207_v57, %v1211_v59 }
 0x36c   :  { %v1339_v61 = vld [vmem:[#allocation2 + $0x560] sm:$0xff]  ;;  %2747 = vmatpush1.bf16.msra.mxu1 %v7153_v0 }
 0x36d   :  { %v7146_v3 = vcombine.high %v1335_v60, %v1339_v61  ;;  %v1199_v4 = vld [vmem:[#allocation2 + $0x100] sm:$0xff]  ;;  %2707 = vmatprep.subr.bf16.mxu0 %v7018_v1  ;;  %v7145_v9 = vcombine.low %v1335_v60, %v1339_v61 }
 0x36e   :  { %v1203_v5 = vld [vmem:[#allocation2 + $0x120] sm:$0xff]  ;;  %2708 = vmatpush1.bf16.msra.mxu0 %v7017_v8 }
 0x36f   :  { %v1327_v6 = vld [vmem:[#allocation2 + $0x500] sm:$0xff]  ;;  %v7010_v10 = vcombine.high %v1199_v4, %v1203_v5  ;;  %2748 = vmatprep.subr.bf16.mxu1 %v7146_v3  ;;  %v7009_v18 = vcombine.low %v1199_v4, %v1203_v5 }
 0x370   :  { %v1331_v7 = vld [vmem:[#allocation2 + $0x520] sm:$0xff]  ;;  %2749 = vmatpush1.bf16.msra.mxu1 %v7145_v9 }
 0x371   :  { %v7138_v11 = vcombine.high %v1327_v6, %v1331_v7  ;;  %v1191_v38 = vld [vmem:[#allocation2 + $0xc0] sm:$0xff]  ;;  %2709 = vmatprep.subr.bf16.mxu0 %v7010_v10  ;;  %v7137_v39 = vcombine.low %v1327_v6, %v1331_v7 }
 0x372   :  { %v1195_v12 = vld [vmem:[#allocation2 + $0xe0] sm:$0xff]  ;;  %2710 = vmatpush1.bf16.msra.mxu0 %v7009_v18 }
 0x373   :  { %v1319_v15 = vld [vmem:[#allocation2 + $0x4c0] sm:$0xff]  ;;  %v7002_v19 = vcombine.high %v1191_v38, %v1195_v12  ;;  %2750 = vmatprep.subr.bf16.mxu1 %v7138_v11  ;;  %v7001_v25 = vcombine.low %v1191_v38, %v1195_v12 }
 0x374   :  { %v1323_v16 = vld [vmem:[#allocation2 + $0x4e0] sm:$0xff]  ;;  %2751 = vmatpush1.bf16.msra.mxu1 %v7137_v39 }
 0x375   :  { %v7130_v20 = vcombine.high %v1319_v15, %v1323_v16  ;;  %v1183_v21 = vld [vmem:[#allocation2 + $0x80] sm:$0xff]  ;;  %2711 = vmatprep.subr.bf16.mxu0 %v7002_v19  ;;  %v7129_v26 = vcombine.low %v1319_v15, %v1323_v16 }
 0x376   :  { %v1187_v22 = vld [vmem:[#allocation2 + $0xa0] sm:$0xff]  ;;  %2712 = vmatpush1.bf16.msra.mxu0 %v7001_v25 }
 0x377   :  { %v1311_v23 = vld [vmem:[#allocation2 + $0x480] sm:$0xff]  ;;  %v6994_v44 = vcombine.high %v1183_v21, %v1187_v22  ;;  %2752 = vmatprep.subr.bf16.mxu1 %v7130_v20  ;;  %v6993_v32 = vcombine.low %v1183_v21, %v1187_v22 }
 0x378   :  { %v1315_v24 = vld [vmem:[#allocation2 + $0x4a0] sm:$0xff]  ;;  %2753 = vmatpush1.bf16.msra.mxu1 %v7129_v26 }
 0x379   :  { %v7122_v27 = vcombine.high %v1311_v23, %v1315_v24  ;;  %v1175_v28 = vld [vmem:[#allocation2 + $0x40] sm:$0xff]  ;;  %2713 = vmatprep.subr.bf16.mxu0 %v6994_v44  ;;  %v7121_v33 = vcombine.low %v1311_v23, %v1315_v24 }
 0x37a   :  { %v1179_v29 = vld [vmem:[#allocation2 + $0x60] sm:$0xff]  ;;  %2714 = vmatpush1.bf16.msra.mxu0 %v6993_v32 }
 0x37b   :  { %v1303_v45 = vld [vmem:[#allocation2 + $0x440] sm:$0xff]  ;;  %v6986_v35 = vcombine.high %v1175_v28, %v1179_v29  ;;  %2754 = vmatprep.subr.bf16.mxu1 %v7122_v27  ;;  %v6985_v47 = vcombine.low %v1175_v28, %v1179_v29 }
 0x37c   :  { %v1307_v30 = vld [vmem:[#allocation2 + $0x460] sm:$0xff]  ;;  %2755 = vmatpush1.bf16.msra.mxu1 %v7121_v33 }
 0x37d   :  { %v7114_v36 = vcombine.high %v1303_v45, %v1307_v30  ;;  %v1167_v40 = vld [vmem:[#allocation2] sm:$0xff]  ;;  %2715 = vmatprep.subr.bf16.mxu0 %v6986_v35  ;;  %v7113_v48 = vcombine.low %v1303_v45, %v1307_v30 }
 0x37e   :  { %v1171_v42 = vld [vmem:[#allocation2 + $0x20] sm:$0xff]  ;;  %2716 = vmatpush1.bf16.msra.mxu0 %v6985_v47 }
 0x37f   :  { %v1295_v43 = vld [vmem:[#allocation2 + $0x400] sm:$0xff]  ;;  %v6978_v49 = vcombine.high %v1167_v40, %v1171_v42  ;;  %2756 = vmatprep.subr.bf16.mxu1 %v7114_v36  ;;  %v6977_v55 = vcombine.low %v1167_v40, %v1171_v42 }
 0x380   :  { %v1299_v46 = vld [vmem:[#allocation2 + $0x420] sm:$0xff]  ;;  %2757 = vmatpush1.bf16.msra.mxu1 %v7113_v48 }
 0x381   :  { %v7106_v50 = vcombine.high %v1295_v43, %v1299_v46  ;;  %v1287_v51 = vld [vmem:[#allocation2 + $0x3c0] sm:$0xff]  ;;  %2717 = vmatprep.subr.bf16.mxu0 %v6978_v49  ;;  %v7105_v56 = vcombine.low %v1295_v43, %v1299_v46 }
 0x382   :  { %v1291_v52 = vld [vmem:[#allocation2 + $0x3e0] sm:$0xff]  ;;  %2718 = vmatpush1.bf16.msra.mxu0 %v6977_v55 }
 0x383   :  { %v1415_v53 = vld [vmem:[#allocation2 + $0x7c0] sm:$0xff]  ;;  %v7098_v57 = vcombine.high %v1287_v51, %v1291_v52  ;;  %2758 = vmatprep.subr.bf16.mxu1 %v7106_v50  ;;  %v7097_v0 = vcombine.low %v1287_v51, %v1291_v52 }
 0x384   :  { %v1419_v54 = vld [vmem:[#allocation2 + $0x7e0] sm:$0xff]  ;;  %2759 = vmatpush1.bf16.msra.mxu1 %v7105_v56 }
 0x385   :  { %v7226_v58 = vcombine.high %v1415_v53, %v1419_v54  ;;  %v1279_v59 = vld [vmem:[#allocation2 + $0x380] sm:$0xff]  ;;  %2719 = vmatprep.subr.bf16.mxu0 %v7098_v57  ;;  %v7225_v1 = vcombine.low %v1415_v53, %v1419_v54 }
 0x386   :  { %v1283_v60 = vld [vmem:[#allocation2 + $0x3a0] sm:$0xff]  ;;  %2720 = vmatpush2.bf16.msra.mxu0 %v7097_v0  ;;  %v1356_v0 = vld [vmem:[#allocation2 + $0x5e8] sm:$0xff] }
 0x387   :  { %v1407_v61 = vld [vmem:[#allocation2 + $0x780] sm:$0xff]  ;;  %v7090_v3 = vcombine.high %v1279_v59, %v1283_v60  ;;  %2760 = vmatprep.subr.bf16.mxu1 %v7226_v58  ;;  %v7089_v9 = vcombine.low %v1279_v59, %v1283_v60  ;;  %v1224_v60 = vld [vmem:[#allocation2 + $0x1c8] sm:$0xff] }
 0x388   :  { %v1411_v63 = vld [vmem:[#allocation2 + $0x7a0] sm:$0xff]  ;;  %2761 = vmatpush2.bf16.msra.mxu1 %v7225_v1 }
 0x389   :  { %v7218_v4 = vcombine.high %v1407_v61, %v1411_v63  ;;  %v1271_v5 = vld [vmem:[#allocation2 + $0x340] sm:$0xff]  ;;  %2721 = vmatprep.subr.bf16.mxu0 %v7090_v3  ;;  %v7217_v10 = vcombine.low %v1407_v61, %v1411_v63  ;;  %v1228_v61 = vld [vmem:[#allocation2 + $0x1e8] sm:$0xff] }
 0x38a   :  { %v1275_v6 = vld [vmem:[#allocation2 + $0x360] sm:$0xff]  ;;  %2722 = vmatpush2.bf16.msra.mxu0 %v7089_v9  ;;  %v1352_v63 = vld [vmem:[#allocation2 + $0x5c8] sm:$0xff] }
 0x38b   :  { %v1399_v7 = vld [vmem:[#allocation2 + $0x740] sm:$0xff]  ;;  %v7082_v11 = vcombine.high %v1271_v5, %v1275_v6  ;;  %2762 = vmatprep.subr.bf16.mxu1 %v7218_v4  ;;  %v7081_v39 = vcombine.low %v1271_v5, %v1275_v6  ;;  %v7036_v4 = vcombine.high %v1224_v60, %v1228_v61  ;;  %v7164_v5 = vcombine.high %v1352_v63, %v1356_v0  ;;  %v1216_v6 = vld [vmem:[#allocation2 + $0x188] sm:$0xff] }
 0x38c   :  { %v1403_v8 = vld [vmem:[#allocation2 + $0x760] sm:$0xff]  ;;  %2763 = vmatpush2.bf16.msra.mxu1 %v7217_v10  ;;  %v1348_v9 = vld [vmem:[#allocation2 + $0x5a8] sm:$0xff]  ;;  %v7035_v10 = vcombine.low %v1224_v60, %v1228_v61 }
 0x38d   :  { %v7210_v38 = vcombine.high %v1399_v7, %v1403_v8  ;;  %v1263_v12 = vld [vmem:[#allocation2 + $0x300] sm:$0xff]  ;;  %2723 = vmatprep.subr.bf16.mxu0 %v7082_v11  ;;  %v7209_v19 = vcombine.low %v1399_v7, %v1403_v8  ;;  %v1220_v7 = vld [vmem:[#allocation2 + $0x1a8] sm:$0xff]  ;;  %v7163_v11 = vcombine.low %v1352_v63, %v1356_v0 }
 0x38e   :  { %v1267_v15 = vld [vmem:[#allocation2 + $0x320] sm:$0xff]  ;;  %2724 = vmatpush2.bf16.msra.mxu0 %v7081_v39  ;;  %v1344_v8 = vld [vmem:[#allocation2 + $0x588] sm:$0xff] }
 0x38f   :  { %v1391_v16 = vld [vmem:[#allocation2 + $0x700] sm:$0xff]  ;;  %v7074_v20 = vcombine.high %v1263_v12, %v1267_v15  ;;  %2764 = vmatprep.subr.bf16.mxu1 %v7210_v38  ;;  %v7073_v26 = vcombine.low %v1263_v12, %v1267_v15  ;;  %v7028_v38 = vcombine.high %v1216_v6, %v1220_v7  ;;  %v7156_v12 = vcombine.high %v1344_v8, %v1348_v9  ;;  %v1208_v15 = vld [vmem:[#allocation2 + $0x148] sm:$0xff] }
 0x390   :  { %v1395_v18 = vld [vmem:[#allocation2 + $0x720] sm:$0xff]  ;;  %2765 = vmatpush2.bf16.msra.mxu1 %v7209_v19  ;;  %v1340_v39 = vld [vmem:[#allocation2 + $0x568] sm:$0xff]  ;;  %v7027_v19 = vcombine.low %v1216_v6, %v1220_v7 }
 0x391   :  { %v7202_v21 = vcombine.high %v1391_v16, %v1395_v18  ;;  %v1255_v22 = vld [vmem:[#allocation2 + $0x2c0] sm:$0xff]  ;;  %2725 = vmatprep.subr.bf16.mxu0 %v7074_v20  ;;  %v7201_v44 = vcombine.low %v1391_v16, %v1395_v18  ;;  %v1212_v16 = vld [vmem:[#allocation2 + $0x168] sm:$0xff]  ;;  %v7155_v20 = vcombine.low %v1344_v8, %v1348_v9 }
 0x392   :  { %v1259_v23 = vld [vmem:[#allocation2 + $0x2e0] sm:$0xff]  ;;  %2726 = vmatpush2.bf16.msra.mxu0 %v7073_v26  ;;  %v1336_v18 = vld [vmem:[#allocation2 + $0x548] sm:$0xff] }
 0x393   :  { %v1383_v24 = vld [vmem:[#allocation2 + $0x6c0] sm:$0xff]  ;;  %v7066_v27 = vcombine.high %v1255_v22, %v1259_v23  ;;  %2766 = vmatprep.subr.bf16.mxu1 %v7202_v21  ;;  %v7065_v33 = vcombine.low %v1255_v22, %v1259_v23  ;;  %v7020_v21 = vcombine.high %v1208_v15, %v1212_v16  ;;  %v7148_v22 = vcombine.high %v1336_v18, %v1340_v39  ;;  %v1200_v23 = vld [vmem:[#allocation2 + $0x108] sm:$0xff] }
 0x394   :  { %v1387_v25 = vld [vmem:[#allocation2 + $0x6e0] sm:$0xff]  ;;  %2767 = vmatpush2.bf16.msra.mxu1 %v7201_v44  ;;  %v1332_v26 = vld [vmem:[#allocation2 + $0x528] sm:$0xff]  ;;  %v7019_v44 = vcombine.low %v1208_v15, %v1212_v16 }
 0x395   :  { %v7194_v28 = vcombine.high %v1383_v24, %v1387_v25  ;;  %v1247_v29 = vld [vmem:[#allocation2 + $0x280] sm:$0xff]  ;;  %2727 = vmatprep.subr.bf16.mxu0 %v7066_v27  ;;  %v7193_v35 = vcombine.low %v1383_v24, %v1387_v25  ;;  %v1204_v24 = vld [vmem:[#allocation2 + $0x128] sm:$0xff]  ;;  %v7147_v27 = vcombine.low %v1336_v18, %v1340_v39 }
 0x396   :  { %v1251_v45 = vld [vmem:[#allocation2 + $0x2a0] sm:$0xff]  ;;  %2728 = vmatpush2.bf16.msra.mxu0 %v7065_v33  ;;  %v1328_v25 = vld [vmem:[#allocation2 + $0x508] sm:$0xff] }
 0x397   :  { %v1375_v30 = vld [vmem:[#allocation2 + $0x680] sm:$0xff]  ;;  %v7058_v36 = vcombine.high %v1247_v29, %v1251_v45  ;;  %2768 = vmatprep.subr.bf16.mxu1 %v7194_v28  ;;  %v7057_v48 = vcombine.low %v1247_v29, %v1251_v45  ;;  %v7012_v28 = vcombine.high %v1200_v23, %v1204_v24  ;;  %v7140_v29 = vcombine.high %v1328_v25, %v1332_v26  ;;  %v1192_v45 = vld [vmem:[#allocation2 + $0xc8] sm:$0xff] }
 0x398   :  { %v1379_v32 = vld [vmem:[#allocation2 + $0x6a0] sm:$0xff]  ;;  %2769 = vmatpush2.bf16.msra.mxu1 %v7193_v35  ;;  %v1324_v33 = vld [vmem:[#allocation2 + $0x4e8] sm:$0xff]  ;;  %v7011_v35 = vcombine.low %v1200_v23, %v1204_v24 }
 0x399   :  { %v7186_v40 = vcombine.high %v1375_v30, %v1379_v32  ;;  %v1239_v42 = vld [vmem:[#allocation2 + $0x240] sm:$0xff]  ;;  %2729 = vmatprep.subr.bf16.mxu0 %v7058_v36  ;;  %v7185_v49 = vcombine.low %v1375_v30, %v1379_v32  ;;  %v1196_v30 = vld [vmem:[#allocation2 + $0xe8] sm:$0xff]  ;;  %v7139_v36 = vcombine.low %v1328_v25, %v1332_v26 }
 0x39a   :  { %v1243_v43 = vld [vmem:[#allocation2 + $0x260] sm:$0xff]  ;;  %2730 = vmatpush2.bf16.msra.mxu0 %v7057_v48  ;;  %v1320_v32 = vld [vmem:[#allocation2 + $0x4c8] sm:$0xff] }
 0x39b   :  { %v1367_v46 = vld [vmem:[#allocation2 + $0x640] sm:$0xff]  ;;  %v7050_v50 = vcombine.high %v1239_v42, %v1243_v43  ;;  %2770 = vmatprep.subr.bf16.mxu1 %v7186_v40  ;;  %v7049_v56 = vcombine.low %v1239_v42, %v1243_v43  ;;  %v7004_v40 = vcombine.high %v1192_v45, %v1196_v30  ;;  %v7132_v42 = vcombine.high %v1320_v32, %v1324_v33  ;;  %v1184_v43 = vld [vmem:[#allocation2 + $0x88] sm:$0xff] }
 0x39c   :  { %v1371_v47 = vld [vmem:[#allocation2 + $0x660] sm:$0xff]  ;;  %2771 = vmatpush2.bf16.msra.mxu1 %v7185_v49  ;;  %v1316_v48 = vld [vmem:[#allocation2 + $0x4a8] sm:$0xff]  ;;  %v7003_v49 = vcombine.low %v1192_v45, %v1196_v30 }
 0x39d   :  { %v7178_v51 = vcombine.high %v1367_v46, %v1371_v47  ;;  %v1231_v52 = vld [vmem:[#allocation2 + $0x200] sm:$0xff]  ;;  %2731 = vmatprep.subr.bf16.mxu0 %v7050_v50  ;;  %v7177_v57 = vcombine.low %v1367_v46, %v1371_v47  ;;  %v1188_v46 = vld [vmem:[#allocation2 + $0xa8] sm:$0xff]  ;;  %v7131_v50 = vcombine.low %v1320_v32, %v1324_v33 }
 0x39e   :  { %v1235_v53 = vld [vmem:[#allocation2 + $0x220] sm:$0xff]  ;;  %2732 = vmatpush2.bf16.msra.mxu0 %v7049_v56  ;;  %v1312_v47 = vld [vmem:[#allocation2 + $0x488] sm:$0xff] }
 0x39f   :  { %v1359_v54 = vld [vmem:[#allocation2 + $0x600] sm:$0xff]  ;;  %v7042_v58 = vcombine.high %v1231_v52, %v1235_v53  ;;  %2772 = vmatprep.subr.bf16.mxu1 %v7178_v51  ;;  %v7041_v1 = vcombine.low %v1231_v52, %v1235_v53  ;;  %v6996_v51 = vcombine.high %v1184_v43, %v1188_v46  ;;  %v7124_v52 = vcombine.high %v1312_v47, %v1316_v48  ;;  %v1176_v53 = vld [vmem:[#allocation2 + $0x48] sm:$0xff] }
 0x3a0   :  { %v1363_v55 = vld [vmem:[#allocation2 + $0x620] sm:$0xff]  ;;  %2773 = vmatpush2.bf16.msra.mxu1 %v7177_v57  ;;  %v1308_v56 = vld [vmem:[#allocation2 + $0x468] sm:$0xff]  ;;  %v6995_v57 = vcombine.low %v1184_v43, %v1188_v46 }
 0x3a1   :  { %v7170_v59 = vcombine.high %v1359_v54, %v1363_v55  ;;  %2733 = vmatprep.subr.bf16.mxu0 %v7042_v58  ;;  %v7169_v3 = vcombine.low %v1359_v54, %v1363_v55  ;;  %v1180_v54 = vld [vmem:[#allocation2 + $0x68] sm:$0xff]  ;;  %v7123_v58 = vcombine.low %v1312_v47, %v1316_v48 }
 0x3a2   :  { %2734 = vmatpush2.bf16.msra.mxu0 %v7041_v1  ;;  %v1304_v55 = vld [vmem:[#allocation2 + $0x448] sm:$0xff] }
 0x3a3   :  { %2774 = vmatprep.subr.bf16.mxu1 %v7170_v59  ;;  %2785 = vmatprep.subr.bf16.mxu0 %v7036_v4  ;;  %v6988_v59 = vcombine.high %v1176_v53, %v1180_v54  ;;  %v7116_v60 = vcombine.high %v1304_v55, %v1308_v56  ;;  %v1168_v61 = vld [vmem:[#allocation2 + $0x8] sm:$0xff]  ;;  %v7115_v4 = vcombine.low %v1304_v55, %v1308_v56 }
 0x3a4   :  { %2775 = vmatpush2.bf16.msra.mxu1 %v7169_v3  ;;  %v1172_v63 = vld [vmem:[#allocation2 + $0x28] sm:$0xff]  ;;  %v6987_v3 = vcombine.low %v1176_v53, %v1180_v54 }
 0x3a5   :  { %2826 = vmatprep.subr.bf16.mxu1 %v7164_v5  ;;  %2736 = vmatmul.mubr.bf16.vlgmr.msra.gmra.mxu0 %v9149_v31  ;;  %v1296_v0 = vld [vmem:[#allocation2 + $0x408] sm:$0xff]  ;;  %v6980_v5 = vcombine.high %v1168_v61, %v1172_v63 }
 0x3a6   :  { %2786 = vmatpush1.bf16.msra.mxu0 %v7035_v10  ;;  %2817 = vmatprep.mubr.bf16.mxu0 %v9153_v37  ;;  %v1300_v1 = vld [vmem:[#allocation2 + $0x428] sm:$0xff] }
 0x3a7   :  { %2777 = vmatmul.mubr.bf16.vlgmr.msra.gmra.mxu1 %v9151_v34  ;;  %2787 = vmatprep.subr.bf16.mxu0 %v7028_v38  ;;  %v7108_v6 = vcombine.high %v1296_v0, %v1300_v1  ;;  %v1288_v7 = vld [vmem:[#allocation2 + $0x3c8] sm:$0xff]  ;;  %v7107_v38 = vcombine.low %v1296_v0, %v1300_v1 }
 0x3a8   :  { %2827 = vmatpush1.bf16.msra.mxu1 %v7163_v11  ;;  %2858 = vmatprep.mubr.bf16.mxu1 %v9155_v41  ;;  %v1292_v8 = vld [vmem:[#allocation2 + $0x3e8] sm:$0xff]  ;;  %v6979_v11 = vcombine.low %v1168_v61, %v1172_v63 }
 0x3a9   :  { %2828 = vmatprep.subr.bf16.mxu1 %v7156_v12  ;;  %v1416_v9 = vld [vmem:[#allocation2 + $0x7c8] sm:$0xff]  ;;  %v7100_v12 = vcombine.high %v1288_v7, %v1292_v8 }
 0x3aa   :  { %2788 = vmatpush1.bf16.msra.mxu0 %v7027_v19  ;;  %v1420_v10 = vld [vmem:[#allocation2 + $0x7e8] sm:$0xff] }
 0x3ab   :  { %2789 = vmatprep.subr.bf16.mxu0 %v7020_v21  ;;  %v7228_v15 = vcombine.high %v1416_v9, %v1420_v10  ;;  %v1280_v16 = vld [vmem:[#allocation2 + $0x388] sm:$0xff]  ;;  %v7227_v21 = vcombine.low %v1416_v9, %v1420_v10 }
 0x3ac   :  { %2829 = vmatpush1.bf16.msra.mxu1 %v7155_v20  ;;  %v1284_v18 = vld [vmem:[#allocation2 + $0x3a8] sm:$0xff]  ;;  %v7099_v20 = vcombine.low %v1288_v7, %v1292_v8 }
 0x3ad   :  { %2830 = vmatprep.subr.bf16.mxu1 %v7148_v22  ;;  %v1408_v39 = vld [vmem:[#allocation2 + $0x788] sm:$0xff]  ;;  %v7092_v22 = vcombine.high %v1280_v16, %v1284_v18 }
 0x3ae   :  { %2790 = vmatpush1.bf16.msra.mxu0 %v7019_v44  ;;  %v1412_v19 = vld [vmem:[#allocation2 + $0x7a8] sm:$0xff] }
 0x3af   :  { %2791 = vmatprep.subr.bf16.mxu0 %v7012_v28  ;;  %v7220_v23 = vcombine.high %v1408_v39, %v1412_v19  ;;  %v1272_v24 = vld [vmem:[#allocation2 + $0x348] sm:$0xff]  ;;  %v7219_v28 = vcombine.low %v1408_v39, %v1412_v19  ;;  %v1229_v39 = vld [vmem:[#allocation2 + $0x1f0] sm:$0xff] }
 0x3b0   :  { %2831 = vmatpush1.bf16.msra.mxu1 %v7147_v27  ;;  %v1276_v25 = vld [vmem:[#allocation2 + $0x368] sm:$0xff]  ;;  %v7091_v27 = vcombine.low %v1280_v16, %v1284_v18  ;;  %v1225_v18 = vld [vmem:[#allocation2 + $0x1d0] sm:$0xff] }
 0x3b1   :  { %2832 = vmatprep.subr.bf16.mxu1 %v7140_v29  ;;  %v1400_v26 = vld [vmem:[#allocation2 + $0x748] sm:$0xff]  ;;  %v7084_v29 = vcombine.high %v1272_v24, %v1276_v25  ;;  %v1353_v19 = vld [vmem:[#allocation2 + $0x5d0] sm:$0xff] }
 0x3b2   :  { %2792 = vmatpush1.bf16.msra.mxu0 %v7011_v35  ;;  %v1404_v44 = vld [vmem:[#allocation2 + $0x768] sm:$0xff] }
 0x3b3   :  { %2793 = vmatprep.subr.bf16.mxu0 %v7004_v40  ;;  %v7212_v45 = vcombine.high %v1400_v26, %v1404_v44  ;;  %v1264_v30 = vld [vmem:[#allocation2 + $0x308] sm:$0xff]  ;;  %v7211_v40 = vcombine.low %v1400_v26, %v1404_v44  ;;  %v1221_v26 = vld [vmem:[#allocation2 + $0x1b0] sm:$0xff] }
 0x3b4   :  { %2833 = vmatpush1.bf16.msra.mxu1 %v7139_v36  ;;  %v1268_v32 = vld [vmem:[#allocation2 + $0x328] sm:$0xff]  ;;  %v7083_v36 = vcombine.low %v1272_v24, %v1276_v25  ;;  %v1217_v25 = vld [vmem:[#allocation2 + $0x190] sm:$0xff] }
 0x3b5   :  { %2834 = vmatprep.subr.bf16.mxu1 %v7132_v42  ;;  %v1392_v33 = vld [vmem:[#allocation2 + $0x708] sm:$0xff]  ;;  %v7076_v42 = vcombine.high %v1264_v30, %v1268_v32  ;;  %v1345_v44 = vld [vmem:[#allocation2 + $0x590] sm:$0xff] }
 0x3b6   :  { %2794 = vmatpush1.bf16.msra.mxu0 %v7003_v49  ;;  %v1396_v35 = vld [vmem:[#allocation2 + $0x728] sm:$0xff] }
 0x3b7   :  { %2795 = vmatprep.subr.bf16.mxu0 %v6996_v51  ;;  %v7204_v43 = vcombine.high %v1392_v33, %v1396_v35  ;;  %v1256_v46 = vld [vmem:[#allocation2 + $0x2c8] sm:$0xff]  ;;  %v7203_v51 = vcombine.low %v1392_v33, %v1396_v35  ;;  %v1213_v33 = vld [vmem:[#allocation2 + $0x170] sm:$0xff] }
 0x3b8   :  { %2835 = vmatpush1.bf16.msra.mxu1 %v7131_v50  ;;  %v1260_v47 = vld [vmem:[#allocation2 + $0x2e8] sm:$0xff]  ;;  %v7075_v50 = vcombine.low %v1264_v30, %v1268_v32  ;;  %v1209_v32 = vld [vmem:[#allocation2 + $0x150] sm:$0xff] }
 0x3b9   :  { %2836 = vmatprep.subr.bf16.mxu1 %v7124_v52  ;;  %v1384_v48 = vld [vmem:[#allocation2 + $0x6c8] sm:$0xff]  ;;  %v7068_v52 = vcombine.high %v1256_v46, %v1260_v47  ;;  %v1337_v35 = vld [vmem:[#allocation2 + $0x550] sm:$0xff] }
 0x3ba   :  { %2796 = vmatpush1.bf16.msra.mxu0 %v6995_v57  ;;  %v1388_v49 = vld [vmem:[#allocation2 + $0x6e8] sm:$0xff] }
 0x3bb   :  { %2797 = vmatprep.subr.bf16.mxu0 %v6988_v59  ;;  %v7196_v53 = vcombine.high %v1384_v48, %v1388_v49  ;;  %v1248_v54 = vld [vmem:[#allocation2 + $0x288] sm:$0xff]  ;;  %v7195_v59 = vcombine.low %v1384_v48, %v1388_v49  ;;  %v1205_v48 = vld [vmem:[#allocation2 + $0x130] sm:$0xff] }
 0x3bc   :  { %2837 = vmatpush1.bf16.msra.mxu1 %v7123_v58  ;;  %v1252_v55 = vld [vmem:[#allocation2 + $0x2a8] sm:$0xff]  ;;  %v7067_v58 = vcombine.low %v1256_v46, %v1260_v47  ;;  %v1201_v47 = vld [vmem:[#allocation2 + $0x110] sm:$0xff] }
 0x3bd   :  { %2838 = vmatprep.subr.bf16.mxu1 %v7116_v60  ;;  %v1376_v56 = vld [vmem:[#allocation2 + $0x688] sm:$0xff]  ;;  %v7060_v60 = vcombine.high %v1248_v54, %v1252_v55  ;;  %v1329_v49 = vld [vmem:[#allocation2 + $0x510] sm:$0xff] }
 0x3be   :  { %2798 = vmatpush1.bf16.msra.mxu0 %v6987_v3  ;;  %v1380_v57 = vld [vmem:[#allocation2 + $0x6a8] sm:$0xff] }
 0x3bf   :  { %2799 = vmatprep.subr.bf16.mxu0 %v6980_v5  ;;  %v7188_v61 = vcombine.high %v1376_v56, %v1380_v57  ;;  %v1240_v63 = vld [vmem:[#allocation2 + $0x248] sm:$0xff]  ;;  %v7187_v5 = vcombine.low %v1376_v56, %v1380_v57  ;;  %v1197_v56 = vld [vmem:[#allocation2 + $0xf0] sm:$0xff] }
 0x3c0   :  { %2839 = vmatpush1.bf16.msra.mxu1 %v7115_v4  ;;  %v1244_v0 = vld [vmem:[#allocation2 + $0x268] sm:$0xff]  ;;  %v7059_v4 = vcombine.low %v1248_v54, %v1252_v55  ;;  %v1193_v55 = vld [vmem:[#allocation2 + $0xd0] sm:$0xff] }
 0x3c1   :  { %2840 = vmatprep.subr.bf16.mxu1 %v7108_v6  ;;  %v1368_v1 = vld [vmem:[#allocation2 + $0x648] sm:$0xff]  ;;  %v7052_v6 = vcombine.high %v1240_v63, %v1244_v0  ;;  %v1321_v57 = vld [vmem:[#allocation2 + $0x4d0] sm:$0xff] }
 0x3c2   :  { %2800 = vmatpush1.bf16.msra.mxu0 %v6979_v11  ;;  %v1372_v3 = vld [vmem:[#allocation2 + $0x668] sm:$0xff] }
 0x3c3   :  { %2801 = vmatprep.subr.bf16.mxu0 %v7100_v12  ;;  %v7180_v7 = vcombine.high %v1368_v1, %v1372_v3  ;;  %v1232_v8 = vld [vmem:[#allocation2 + $0x208] sm:$0xff]  ;;  %v7179_v12 = vcombine.low %v1368_v1, %v1372_v3  ;;  %v1189_v1 = vld [vmem:[#allocation2 + $0xb0] sm:$0xff] }
 0x3c4   :  { %2841 = vmatpush1.bf16.msra.mxu1 %v7107_v38  ;;  %v1236_v9 = vld [vmem:[#allocation2 + $0x228] sm:$0xff]  ;;  %v7051_v38 = vcombine.low %v1240_v63, %v1244_v0  ;;  %v1185_v0 = vld [vmem:[#allocation2 + $0x90] sm:$0xff] }
 0x3c5   :  { %2842 = vmatprep.subr.bf16.mxu1 %v7228_v15  ;;  %v1360_v10 = vld [vmem:[#allocation2 + $0x608] sm:$0xff]  ;;  %v7044_v15 = vcombine.high %v1232_v8, %v1236_v9  ;;  %v1313_v3 = vld [vmem:[#allocation2 + $0x490] sm:$0xff] }
 0x3c6   :  { %2802 = vmatpush2.bf16.msra.mxu0 %v7099_v20  ;;  %v1364_v11 = vld [vmem:[#allocation2 + $0x628] sm:$0xff]  ;;  %v1357_v20 = vld [vmem:[#allocation2 + $0x5f0] sm:$0xff] }
 0x3c7   :  { %2803 = vmatprep.subr.bf16.mxu0 %v7092_v22  ;;  %v7172_v16 = vcombine.high %v1360_v10, %v1364_v11  ;;  %v7171_v22 = vcombine.low %v1360_v10, %v1364_v11  ;;  %v7166_v24 = vcombine.high %v1353_v19, %v1357_v20  ;;  %v1181_v10 = vld [vmem:[#allocation2 + $0x70] sm:$0xff] }
 0x3c8   :  { %2843 = vmatpush2.bf16.msra.mxu1 %v7227_v21  ;;  %v7043_v21 = vcombine.low %v1232_v8, %v1236_v9  ;;  %v1177_v9 = vld [vmem:[#allocation2 + $0x50] sm:$0xff] }
 0x3c9   :  { %2844 = vmatprep.subr.bf16.mxu1 %v7220_v23  ;;  %v7038_v23 = vcombine.high %v1225_v18, %v1229_v39  ;;  %v1305_v11 = vld [vmem:[#allocation2 + $0x450] sm:$0xff] }
 0x3ca   :  { %2804 = vmatpush2.bf16.msra.mxu0 %v7091_v27  ;;  %v1349_v27 = vld [vmem:[#allocation2 + $0x5b0] sm:$0xff] }
 0x3cb   :  { %2805 = vmatprep.subr.bf16.mxu0 %v7084_v29  ;;  %v7165_v29 = vcombine.low %v1353_v19, %v1357_v20  ;;  %v7158_v30 = vcombine.high %v1345_v44, %v1349_v27  ;;  %v1173_v19 = vld [vmem:[#allocation2 + $0x30] sm:$0xff] }
 0x3cc   :  { %2845 = vmatpush2.bf16.msra.mxu1 %v7219_v28  ;;  %v7037_v28 = vcombine.low %v1225_v18, %v1229_v39  ;;  %v1169_v39 = vld [vmem:[#allocation2 + $0x10] sm:$0xff] }
 0x3cd   :  { %2846 = vmatprep.subr.bf16.mxu1 %v7212_v45  ;;  %v7030_v45 = vcombine.high %v1217_v25, %v1221_v26  ;;  %v1297_v20 = vld [vmem:[#allocation2 + $0x410] sm:$0xff] }
 0x3ce   :  { %2806 = vmatpush2.bf16.msra.mxu0 %v7083_v36  ;;  %v1341_v36 = vld [vmem:[#allocation2 + $0x570] sm:$0xff] }
 0x3cf   :  { %2807 = vmatprep.subr.bf16.mxu0 %v7076_v42  ;;  %v7157_v42 = vcombine.low %v1345_v44, %v1349_v27  ;;  %v7150_v46 = vcombine.high %v1337_v35, %v1341_v36  ;;  %v1293_v44 = vld [vmem:[#allocation2 + $0x3f0] sm:$0xff] }
 0x3d0   :  { %2847 = vmatpush2.bf16.msra.mxu1 %v7211_v40  ;;  %v7029_v40 = vcombine.low %v1217_v25, %v1221_v26  ;;  %v1289_v26 = vld [vmem:[#allocation2 + $0x3d0] sm:$0xff] }
 0x3d1   :  { %2848 = vmatprep.subr.bf16.mxu1 %v7204_v43  ;;  %v7022_v43 = vcombine.high %v1209_v32, %v1213_v33  ;;  %v1417_v27 = vld [vmem:[#allocation2 + $0x7d0] sm:$0xff] }
 0x3d2   :  { %2808 = vmatpush2.bf16.msra.mxu0 %v7075_v50  ;;  %v1333_v50 = vld [vmem:[#allocation2 + $0x530] sm:$0xff] }
 0x3d3   :  { %2809 = vmatprep.subr.bf16.mxu0 %v7068_v52  ;;  %v7149_v52 = vcombine.low %v1337_v35, %v1341_v36  ;;  %v7142_v54 = vcombine.high %v1329_v49, %v1333_v50  ;;  %v1285_v35 = vld [vmem:[#allocation2 + $0x3b0] sm:$0xff] }
 0x3d4   :  { %2849 = vmatpush2.bf16.msra.mxu1 %v7203_v51  ;;  %v7021_v51 = vcombine.low %v1209_v32, %v1213_v33  ;;  %v1281_v33 = vld [vmem:[#allocation2 + $0x390] sm:$0xff] }
 0x3d5   :  { %2850 = vmatprep.subr.bf16.mxu1 %v7196_v53  ;;  %v7014_v53 = vcombine.high %v1201_v47, %v1205_v48  ;;  %v1409_v36 = vld [vmem:[#allocation2 + $0x790] sm:$0xff] }
 0x3d6   :  { %2810 = vmatpush2.bf16.msra.mxu0 %v7067_v58  ;;  %v1325_v58 = vld [vmem:[#allocation2 + $0x4f0] sm:$0xff] }
 0x3d7   :  { %2811 = vmatprep.subr.bf16.mxu0 %v7060_v60  ;;  %v7141_v60 = vcombine.low %v1329_v49, %v1333_v50  ;;  %v7134_v63 = vcombine.high %v1321_v57, %v1325_v58  ;;  %v1277_v49 = vld [vmem:[#allocation2 + $0x370] sm:$0xff] }
 0x3d8   :  { %2851 = vmatpush2.bf16.msra.mxu1 %v7195_v59  ;;  %v7013_v59 = vcombine.low %v1201_v47, %v1205_v48  ;;  %v1273_v48 = vld [vmem:[#allocation2 + $0x350] sm:$0xff] }
 0x3d9   :  { %2852 = vmatprep.subr.bf16.mxu1 %v7188_v61  ;;  %v7006_v61 = vcombine.high %v1193_v55, %v1197_v56  ;;  %v1401_v50 = vld [vmem:[#allocation2 + $0x750] sm:$0xff] }
 0x3da   :  { %2812 = vmatpush2.bf16.msra.mxu0 %v7059_v4  ;;  %v1317_v4 = vld [vmem:[#allocation2 + $0x4b0] sm:$0xff] }
 0x3db   :  { %2813 = vmatprep.subr.bf16.mxu0 %v7052_v6  ;;  %v7133_v6 = vcombine.low %v1321_v57, %v1325_v58  ;;  %v7126_v8 = vcombine.high %v1313_v3, %v1317_v4  ;;  %v1269_v57 = vld [vmem:[#allocation2 + $0x330] sm:$0xff] }
 0x3dc   :  { %2853 = vmatpush2.bf16.msra.mxu1 %v7187_v5  ;;  %v7005_v5 = vcombine.low %v1193_v55, %v1197_v56  ;;  %v1265_v56 = vld [vmem:[#allocation2 + $0x310] sm:$0xff] }
 0x3dd   :  { %2854 = vmatprep.subr.bf16.mxu1 %v7180_v7  ;;  %v6998_v7 = vcombine.high %v1185_v0, %v1189_v1  ;;  %v1393_v58 = vld [vmem:[#allocation2 + $0x710] sm:$0xff] }
 0x3de   :  { %2814 = vmatpush2.bf16.msra.mxu0 %v7051_v38  ;;  %v1309_v38 = vld [vmem:[#allocation2 + $0x470] sm:$0xff] }
 0x3df   :  { %2815 = vmatprep.subr.bf16.mxu0 %v7044_v15  ;;  %v7125_v15 = vcombine.low %v1313_v3, %v1317_v4  ;;  %v7118_v18 = vcombine.high %v1305_v11, %v1309_v38  ;;  %v1261_v3 = vld [vmem:[#allocation2 + $0x2f0] sm:$0xff] }
 0x3e0   :  { %2855 = vmatpush2.bf16.msra.mxu1 %v7179_v12  ;;  %v6997_v12 = vcombine.low %v1185_v0, %v1189_v1  ;;  %v1257_v1 = vld [vmem:[#allocation2 + $0x2d0] sm:$0xff] }
 0x3e1   :  { %2856 = vmatprep.subr.bf16.mxu1 %v7172_v16  ;;  %v6990_v16 = vcombine.high %v1177_v9, %v1181_v10  ;;  %v1385_v4 = vld [vmem:[#allocation2 + $0x6d0] sm:$0xff] }
 0x3e2   :  { %2816 = vmatpush2.bf16.msra.mxu0 %v7043_v21  ;;  %v1301_v21 = vld [vmem:[#allocation2 + $0x430] sm:$0xff] }
 0x3e3   :  { %2867 = vmatprep.subr.bf16.mxu0 %v7038_v23  ;;  %v7117_v23 = vcombine.low %v1305_v11, %v1309_v38  ;;  %v7110_v25 = vcombine.high %v1297_v20, %v1301_v21  ;;  %v1253_v11 = vld [vmem:[#allocation2 + $0x2b0] sm:$0xff] }
 0x3e4   :  { %2857 = vmatpush2.bf16.msra.mxu1 %v7171_v22  ;;  %v6989_v22 = vcombine.low %v1177_v9, %v1181_v10  ;;  %v1249_v10 = vld [vmem:[#allocation2 + $0x290] sm:$0xff] }
 0x3e5   :  { %2908 = vmatprep.subr.bf16.mxu1 %v7166_v24  ;;  %2818 = vmatmul.mubr.bf16.vlgmr.msra.gmra.mxu0 %v9149_v31  ;;  %v6982_v24 = vcombine.high %v1169_v39, %v1173_v19  ;;  %v1377_v38 = vld [vmem:[#allocation2 + $0x690] sm:$0xff] }
 0x3e6   :  { %2868 = vmatpush1.bf16.msra.mxu0 %v7037_v28  ;;  %2899 = vmatprep.mubr.bf16.mxu0 %v9153_v37  ;;  %v1421_v28 = vld [vmem:[#allocation2 + $0x7f0] sm:$0xff] }
 0x3e7   :  { %2859 = vmatmul.mubr.bf16.vlgmr.msra.gmra.mxu1 %v9151_v34  ;;  %2869 = vmatprep.subr.bf16.mxu0 %v7030_v45  ;;  %v7109_v45 = vcombine.low %v1297_v20, %v1301_v21  ;;  %v7230_v32 = vcombine.high %v1417_v27, %v1421_v28  ;;  %v1245_v20 = vld [vmem:[#allocation2 + $0x270] sm:$0xff] }
 0x3e8   :  { %2909 = vmatpush1.bf16.msra.mxu1 %v7165_v29  ;;  %2940 = vmatprep.mubr.bf16.mxu1 %v9155_v41  ;;  %v6981_v29 = vcombine.low %v1169_v39, %v1173_v19  ;;  %v1241_v19 = vld [vmem:[#allocation2 + $0x250] sm:$0xff] }
 0x3e9   :  { %2910 = vmatprep.subr.bf16.mxu1 %v7158_v30  ;;  %v7102_v30 = vcombine.high %v1289_v26, %v1293_v44  ;;  %v1369_v21 = vld [vmem:[#allocation2 + $0x650] sm:$0xff] }
 0x3ea   :  { %2870 = vmatpush1.bf16.msra.mxu0 %v7029_v40  ;;  %v1413_v40 = vld [vmem:[#allocation2 + $0x7b0] sm:$0xff] }
 0x3eb   :  { %2871 = vmatprep.subr.bf16.mxu0 %v7022_v43  ;;  %v7229_v43 = vcombine.low %v1417_v27, %v1421_v28  ;;  %v7222_v47 = vcombine.high %v1409_v36, %v1413_v40  ;;  %v1237_v27 = vld [vmem:[#allocation2 + $0x230] sm:$0xff] }
 0x3ec   :  { %2911 = vmatpush1.bf16.msra.mxu1 %v7157_v42  ;;  %v7101_v42 = vcombine.low %v1289_v26, %v1293_v44  ;;  %v1233_v44 = vld [vmem:[#allocation2 + $0x210] sm:$0xff] }
 0x3ed   :  { %2912 = vmatprep.subr.bf16.mxu1 %v7150_v46  ;;  %v7094_v46 = vcombine.high %v1281_v33, %v1285_v35  ;;  %v1361_v28 = vld [vmem:[#allocation2 + $0x610] sm:$0xff] }
 0x3ee   :  { %2872 = vmatpush1.bf16.msra.mxu0 %v7021_v51  ;;  %v1405_v51 = vld [vmem:[#allocation2 + $0x770] sm:$0xff] }
 0x3ef   :  { %2873 = vmatprep.subr.bf16.mxu0 %v7014_v53  ;;  %v7221_v53 = vcombine.low %v1409_v36, %v1413_v40  ;;  %v7214_v55 = vcombine.high %v1401_v50, %v1405_v51  ;;  %v1230_v36 = vld [vmem:[#allocation2 + $0x1f8] sm:$0xff] }
 0x3f0   :  { %2913 = vmatpush1.bf16.msra.mxu1 %v7149_v52  ;;  %v7093_v52 = vcombine.low %v1281_v33, %v1285_v35  ;;  %v1226_v35 = vld [vmem:[#allocation2 + $0x1d8] sm:$0xff] }
 0x3f1   :  { %2914 = vmatprep.subr.bf16.mxu1 %v7142_v54  ;;  %v7086_v54 = vcombine.high %v1273_v48, %v1277_v49  ;;  %v1354_v40 = vld [vmem:[#allocation2 + $0x5d8] sm:$0xff] }
 0x3f2   :  { %2874 = vmatpush1.bf16.msra.mxu0 %v7013_v59  ;;  %v1397_v59 = vld [vmem:[#allocation2 + $0x730] sm:$0xff] }
 0x3f3   :  { %2875 = vmatprep.subr.bf16.mxu0 %v7006_v61  ;;  %v7213_v61 = vcombine.low %v1401_v50, %v1405_v51  ;;  %v7206_v0 = vcombine.high %v1393_v58, %v1397_v59  ;;  %v1222_v50 = vld [vmem:[#allocation2 + $0x1b8] sm:$0xff] }
 0x3f4   :  { %2915 = vmatpush1.bf16.msra.mxu1 %v7141_v60  ;;  %v7085_v60 = vcombine.low %v1273_v48, %v1277_v49  ;;  %v1218_v49 = vld [vmem:[#allocation2 + $0x198] sm:$0xff] }
 0x3f5   :  { %2916 = vmatprep.subr.bf16.mxu1 %v7134_v63  ;;  %v7078_v63 = vcombine.high %v1265_v56, %v1269_v57  ;;  %v1346_v51 = vld [vmem:[#allocation2 + $0x598] sm:$0xff] }
 0x3f6   :  { %2876 = vmatpush1.bf16.msra.mxu0 %v7005_v5  ;;  %v1389_v5 = vld [vmem:[#allocation2 + $0x6f0] sm:$0xff] }
 0x3f7   :  { %2877 = vmatprep.subr.bf16.mxu0 %v6998_v7  ;;  %v7205_v7 = vcombine.low %v1393_v58, %v1397_v59  ;;  %v7198_v9 = vcombine.high %v1385_v4, %v1389_v5  ;;  %v1214_v58 = vld [vmem:[#allocation2 + $0x178] sm:$0xff] }
 0x3f8   :  { %2917 = vmatpush1.bf16.msra.mxu1 %v7133_v6  ;;  %v7077_v6 = vcombine.low %v1265_v56, %v1269_v57  ;;  %v1210_v57 = vld [vmem:[#allocation2 + $0x158] sm:$0xff] }
 0x3f9   :  { %2918 = vmatprep.subr.bf16.mxu1 %v7126_v8  ;;  %v7070_v8 = vcombine.high %v1257_v1, %v1261_v3  ;;  %v1338_v59 = vld [vmem:[#allocation2 + $0x558] sm:$0xff] }
 0x3fa   :  { %2878 = vmatpush1.bf16.msra.mxu0 %v6997_v12  ;;  %v1381_v12 = vld [vmem:[#allocation2 + $0x6b0] sm:$0xff] }
 0x3fb   :  { %2879 = vmatprep.subr.bf16.mxu0 %v6990_v16  ;;  %v7197_v16 = vcombine.low %v1385_v4, %v1389_v5  ;;  %v7190_v39 = vcombine.high %v1377_v38, %v1381_v12  ;;  %v1206_v4 = vld [vmem:[#allocation2 + $0x138] sm:$0xff] }
 0x3fc   :  { %2919 = vmatpush1.bf16.msra.mxu1 %v7125_v15  ;;  %v7069_v15 = vcombine.low %v1257_v1, %v1261_v3  ;;  %v1202_v3 = vld [vmem:[#allocation2 + $0x118] sm:$0xff] }
 0x3fd   :  { %2920 = vmatprep.subr.bf16.mxu1 %v7118_v18  ;;  %v7062_v18 = vcombine.high %v1249_v10, %v1253_v11  ;;  %v1330_v5 = vld [vmem:[#allocation2 + $0x518] sm:$0xff] }
 0x3fe   :  { %2880 = vmatpush1.bf16.msra.mxu0 %v6989_v22  ;;  %v1373_v22 = vld [vmem:[#allocation2 + $0x670] sm:$0xff] }
 0x3ff   :  { %2881 = vmatprep.subr.bf16.mxu0 %v6982_v24  ;;  %v7189_v24 = vcombine.low %v1377_v38, %v1381_v12  ;;  %v7182_v26 = vcombine.high %v1369_v21, %v1373_v22  ;;  %v1198_v38 = vld [vmem:[#allocation2 + $0xf8] sm:$0xff] }
 0x400   :  { %2921 = vmatpush1.bf16.msra.mxu1 %v7117_v23  ;;  %v7061_v23 = vcombine.low %v1249_v10, %v1253_v11  ;;  %v1194_v11 = vld [vmem:[#allocation2 + $0xd8] sm:$0xff] }
 0x401   :  { %2922 = vmatprep.subr.bf16.mxu1 %v7110_v25  ;;  %v7054_v25 = vcombine.high %v1241_v19, %v1245_v20  ;;  %v1322_v12 = vld [vmem:[#allocation2 + $0x4d8] sm:$0xff] }
 0x402   :  { %2882 = vmatpush1.bf16.msra.mxu0 %v6981_v29  ;;  %v1365_v29 = vld [vmem:[#allocation2 + $0x630] sm:$0xff] }
 0x403   :  { %2883 = vmatprep.subr.bf16.mxu0 %v7102_v30  ;;  %v7181_v30 = vcombine.low %v1369_v21, %v1373_v22  ;;  %v7174_v33 = vcombine.high %v1361_v28, %v1365_v29  ;;  %v1318_v21 = vld [vmem:[#allocation2 + $0x4b8] sm:$0xff]  ;;  %v7007_v22 = vcombine.low %v1194_v11, %v1198_v38 }
 0x404   :  { %2923 = vmatpush1.bf16.msra.mxu1 %v7109_v45  ;;  %v7053_v45 = vcombine.low %v1241_v19, %v1245_v20  ;;  %v1190_v19 = vld [vmem:[#allocation2 + $0xb8] sm:$0xff] }
 0x405   :  { %2924 = vmatprep.subr.bf16.mxu1 %v7230_v32  ;;  %v7046_v32 = vcombine.high %v1233_v44, %v1237_v27  ;;  %v1314_v20 = vld [vmem:[#allocation2 + $0x498] sm:$0xff] }
 0x406   :  { %2884 = vmatpush2.bf16.msra.mxu0 %v7101_v42  ;;  %v1358_v42 = vld [vmem:[#allocation2 + $0x5f8] sm:$0xff] }
 0x407   :  { %2885 = vmatprep.subr.bf16.mxu0 %v7094_v46  ;;  %v7173_v46 = vcombine.low %v1361_v28, %v1365_v29  ;;  %v7168_v48 = vcombine.high %v1354_v40, %v1358_v42  ;;  %v1310_v28 = vld [vmem:[#allocation2 + $0x478] sm:$0xff] }
 0x408   :  { %2925 = vmatpush2.bf16.msra.mxu1 %v7229_v43  ;;  %v7045_v43 = vcombine.low %v1233_v44, %v1237_v27  ;;  %v1182_v44 = vld [vmem:[#allocation2 + $0x78] sm:$0xff] }
 0x409   :  { %2926 = vmatprep.subr.bf16.mxu1 %v7222_v47  ;;  %v7040_v47 = vcombine.high %v1226_v35, %v1230_v36  ;;  %v1306_v27 = vld [vmem:[#allocation2 + $0x458] sm:$0xff] }
 0x40a   :  { %2886 = vmatpush2.bf16.msra.mxu0 %v7093_v52  ;;  %v1350_v52 = vld [vmem:[#allocation2 + $0x5b8] sm:$0xff] }
 0x40b   :  { %2887 = vmatprep.subr.bf16.mxu0 %v7086_v54  ;;  %v7167_v54 = vcombine.low %v1354_v40, %v1358_v42  ;;  %v7160_v56 = vcombine.high %v1346_v51, %v1350_v52  ;;  %v1302_v40 = vld [vmem:[#allocation2 + $0x438] sm:$0xff] }
 0x40c   :  { %2927 = vmatpush2.bf16.msra.mxu1 %v7221_v53  ;;  %v7039_v53 = vcombine.low %v1226_v35, %v1230_v36  ;;  %v1174_v35 = vld [vmem:[#allocation2 + $0x38] sm:$0xff] }
 0x40d   :  { %2928 = vmatprep.subr.bf16.mxu1 %v7214_v55  ;;  %v7032_v55 = vcombine.high %v1218_v49, %v1222_v50  ;;  %v1298_v36 = vld [vmem:[#allocation2 + $0x418] sm:$0xff] }
 0x40e   :  { %2888 = vmatpush2.bf16.msra.mxu0 %v7085_v60  ;;  %v1342_v60 = vld [vmem:[#allocation2 + $0x578] sm:$0xff] }
 0x40f   :  { %2889 = vmatprep.subr.bf16.mxu0 %v7078_v63  ;;  %v7159_v63 = vcombine.low %v1346_v51, %v1350_v52  ;;  %v7152_v1 = vcombine.high %v1338_v59, %v1342_v60  ;;  %v1422_v51 = vld [vmem:[#allocation2 + $0x7f8] sm:$0xff] }
 0x410   :  { %2929 = vmatpush2.bf16.msra.mxu1 %v7213_v61  ;;  %v7031_v61 = vcombine.low %v1218_v49, %v1222_v50  ;;  %v1294_v49 = vld [vmem:[#allocation2 + $0x3f8] sm:$0xff] }
 0x411   :  { %2930 = vmatprep.subr.bf16.mxu1 %v7206_v0  ;;  %v7024_v0 = vcombine.high %v1210_v57, %v1214_v58  ;;  %v1418_v50 = vld [vmem:[#allocation2 + $0x7d8] sm:$0xff] }
 0x412   :  { %2890 = vmatpush2.bf16.msra.mxu0 %v7077_v6  ;;  %v1334_v6 = vld [vmem:[#allocation2 + $0x538] sm:$0xff] }
 0x413   :  { %2891 = vmatprep.subr.bf16.mxu0 %v7070_v8  ;;  %v7151_v8 = vcombine.low %v1338_v59, %v1342_v60  ;;  %v7144_v10 = vcombine.high %v1330_v5, %v1334_v6  ;;  %v1414_v59 = vld [vmem:[#allocation2 + $0x7b8] sm:$0xff] }
 0x414   :  { %2931 = vmatpush2.bf16.msra.mxu1 %v7205_v7  ;;  %v7023_v7 = vcombine.low %v1210_v57, %v1214_v58  ;;  %v1286_v57 = vld [vmem:[#allocation2 + $0x3b8] sm:$0xff] }
 0x415   :  { %2932 = vmatprep.subr.bf16.mxu1 %v7198_v9  ;;  %v7016_v9 = vcombine.high %v1202_v3, %v1206_v4  ;;  %v1410_v58 = vld [vmem:[#allocation2 + $0x798] sm:$0xff] }
 0x416   :  { %2892 = vmatpush2.bf16.msra.mxu0 %v7069_v15  ;;  %v1326_v15 = vld [vmem:[#allocation2 + $0x4f8] sm:$0xff] }
 0x417   :  { %2893 = vmatprep.subr.bf16.mxu0 %v7062_v18  ;;  %v7008_v18 = vcombine.high %v1194_v11, %v1198_v38  ;;  %v1270_v11 = vld [vmem:[#allocation2 + $0x338] sm:$0xff] }
 0x418   :  { %2933 = vmatpush2.bf16.msra.mxu1 %v7197_v16  ;;  %v7015_v16 = vcombine.low %v1202_v3, %v1206_v4  ;;  %v1278_v3 = vld [vmem:[#allocation2 + $0x378] sm:$0xff] }
 0x419   :  { %2934 = vmatprep.subr.bf16.mxu1 %v7190_v39  ;;  %v1186_v39 = vld [vmem:[#allocation2 + $0x98] sm:$0xff] }
 0x41a   :  { %2894 = vmatpush2.bf16.msra.mxu0 %v7061_v23  ;;  %v7135_v23 = vcombine.low %v1322_v12, %v1326_v15  ;;  %v6999_v29 = vcombine.low %v1186_v39, %v1190_v19  ;;  %v1402_v4 = vld [vmem:[#allocation2 + $0x758] sm:$0xff] }
 0x41b   :  { %2895 = vmatprep.subr.bf16.mxu0 %v7054_v25  ;;  %v7128_v25 = vcombine.high %v1314_v20, %v1318_v21  ;;  %v1394_v38 = vld [vmem:[#allocation2 + $0x718] sm:$0xff] }
 0x41c   :  { %2935 = vmatpush2.bf16.msra.mxu1 %v7189_v24  ;;  %v7000_v24 = vcombine.high %v1186_v39, %v1190_v19  ;;  %v1262_v39 = vld [vmem:[#allocation2 + $0x2f8] sm:$0xff] }
 0x41d   :  { %2936 = vmatprep.subr.bf16.mxu1 %v7182_v26  ;;  %v1178_v26 = vld [vmem:[#allocation2 + $0x58] sm:$0xff] }
 0x41e   :  { %2896 = vmatpush2.bf16.msra.mxu0 %v7053_v45  ;;  %v7127_v45 = vcombine.low %v1314_v20, %v1318_v21  ;;  %v6991_v42 = vcombine.low %v1178_v26, %v1182_v44  ;;  %v1386_v19 = vld [vmem:[#allocation2 + $0x6d8] sm:$0xff] }
 0x41f   :  { %2897 = vmatprep.subr.bf16.mxu0 %v7046_v32  ;;  %v7120_v32 = vcombine.high %v1306_v27, %v1310_v28  ;;  %v1390_v20 = vld [vmem:[#allocation2 + $0x6f8] sm:$0xff] }
 0x420   :  { %2937 = vmatpush2.bf16.msra.mxu1 %v7181_v30  ;;  %v6992_v30 = vcombine.high %v1178_v26, %v1182_v44  ;;  %v1254_v26 = vld [vmem:[#allocation2 + $0x2b8] sm:$0xff] }
 0x421   :  { %2938 = vmatprep.subr.bf16.mxu1 %v7174_v33  ;;  %v1170_v33 = vld [vmem:[#allocation2 + $0x18] sm:$0xff] }
 0x422   :  { %2898 = vmatpush2.bf16.msra.mxu0 %v7045_v43  ;;  %v7119_v43 = vcombine.low %v1306_v27, %v1310_v28  ;;  %v6983_v52 = vcombine.low %v1170_v33, %v1174_v35  ;;  %v1378_v44 = vld [vmem:[#allocation2 + $0x698] sm:$0xff] }
 0x423   :  { %2949 = vmatprep.subr.bf16.mxu0 %v7040_v47  ;;  %v7112_v47 = vcombine.high %v1298_v36, %v1302_v40  ;;  %v1382_v27 = vld [vmem:[#allocation2 + $0x6b8] sm:$0xff] }
 0x424   :  { %2939 = vmatpush2.bf16.msra.mxu1 %v7173_v46  ;;  %v6984_v46 = vcombine.high %v1170_v33, %v1174_v35  ;;  %v1246_v33 = vld [vmem:[#allocation2 + $0x278] sm:$0xff] }
 0x425   :  { %2990 = vmatprep.subr.bf16.mxu1 %v7168_v48  ;;  %2900 = vmatmul.mubr.bf16.vlgmr.msra.gmra.mxu0 %v9149_v31  ;;  %v1290_v48 = vld [vmem:[#allocation2 + $0x3d8] sm:$0xff] }
 0x426   :  { %2950 = vmatpush1.bf16.msra.mxu0 %v7039_v53  ;;  %2981 = vmatprep.mubr.bf16.mxu0 %v9153_v37  ;;  %v7143_v37 = vcombine.low %v1330_v5, %v1334_v6  ;;  %v7111_v53 = vcombine.low %v1298_v36, %v1302_v40  ;;  %v7103_v60 = vcombine.low %v1290_v48, %v1294_v49  ;;  %v1406_v5 = vld [vmem:[#allocation2 + $0x778] sm:$0xff] }
 0x427   :  { %2941 = vmatmul.mubr.bf16.vlgmr.msra.gmra.mxu1 %v9151_v34  ;;  %2951 = vmatprep.subr.bf16.mxu0 %v7032_v55  ;;  %v7232_v55 = vcombine.high %v1418_v50, %v1422_v51  ;;  %v1370_v35 = vld [vmem:[#allocation2 + $0x658] sm:$0xff] }
 0x428   :  { %2991 = vmatpush1.bf16.msra.mxu1 %v7167_v54  ;;  %3022 = vmatprep.mubr.bf16.mxu1 %v9155_v41  ;;  %v7136_v41 = vcombine.high %v1322_v12, %v1326_v15  ;;  %v7104_v54 = vcombine.high %v1290_v48, %v1294_v49  ;;  %v1398_v12 = vld [vmem:[#allocation2 + $0x738] sm:$0xff] }
 0x429   :  { %2992 = vmatprep.subr.bf16.mxu1 %v7160_v56  ;;  %v1282_v56 = vld [vmem:[#allocation2 + $0x398] sm:$0xff] }
 0x42a   :  { %2952 = vmatpush1.bf16.msra.mxu0 %v7031_v61  ;;  %v7231_v61 = vcombine.low %v1418_v50, %v1422_v51  ;;  %v7095_v6 = vcombine.low %v1282_v56, %v1286_v57  ;;  %v1374_v36 = vld [vmem:[#allocation2 + $0x678] sm:$0xff] }
 0x42b   :  { %2953 = vmatprep.subr.bf16.mxu0 %v7024_v0  ;;  %v7224_v0 = vcombine.high %v1410_v58, %v1414_v59  ;;  %v1238_v48 = vld [vmem:[#allocation2 + $0x238] sm:$0xff] }
 0x42c   :  { %2993 = vmatpush1.bf16.msra.mxu1 %v7159_v63  ;;  %v7096_v63 = vcombine.high %v1282_v56, %v1286_v57  ;;  %v1362_v49 = vld [vmem:[#allocation2 + $0x618] sm:$0xff] }
 0x42d   :  { %2994 = vmatprep.subr.bf16.mxu1 %v7152_v1  ;;  %v1274_v1 = vld [vmem:[#allocation2 + $0x358] sm:$0xff] }
 0x42e   :  { %2954 = vmatpush1.bf16.msra.mxu0 %v7023_v7  ;;  %v7223_v7 = vcombine.low %v1410_v58, %v1414_v59  ;;  %v7087_v15 = vcombine.low %v1274_v1, %v1278_v3  ;;  %v1366_v50 = vld [vmem:[#allocation2 + $0x638] sm:$0xff] }
 0x42f   :  { %2955 = vmatprep.subr.bf16.mxu0 %v7016_v9  ;;  %v7216_v9 = vcombine.high %v1402_v4, %v1406_v5  ;;  %v7175_v56 = vcombine.low %v1362_v49, %v1366_v50 }
 0x430   :  { %2995 = vmatpush1.bf16.msra.mxu1 %v7151_v8  ;;  %v7088_v8 = vcombine.high %v1274_v1, %v1278_v3 }
 0x431   :  { %2996 = vmatprep.subr.bf16.mxu1 %v7144_v10  ;;  %v1266_v10 = vld [vmem:[#allocation2 + $0x318] sm:$0xff] }
 0x432   :  { %2956 = vmatpush1.bf16.msra.mxu0 %v7015_v16  ;;  %v7215_v16 = vcombine.low %v1402_v4, %v1406_v5  ;;  %v7079_v21 = vcombine.low %v1266_v10, %v1270_v11 }
 0x433   :  { %2957 = vmatprep.subr.bf16.mxu0 %v7008_v18  ;;  %v7208_v18 = vcombine.high %v1394_v38, %v1398_v12 }
 0x434   :  { %2997 = vmatpush1.bf16.msra.mxu1 %v7143_v37  ;;  %v7080_v37 = vcombine.high %v1266_v10, %v1270_v11 }
 0x435   :  { %2998 = vmatprep.subr.bf16.mxu1 %v7136_v41  ;;  %v1258_v41 = vld [vmem:[#allocation2 + $0x2d8] sm:$0xff] }
 0x436   :  { %2958 = vmatpush1.bf16.msra.mxu0 %v7007_v22  ;;  %v7207_v22 = vcombine.low %v1394_v38, %v1398_v12  ;;  %v7071_v28 = vcombine.low %v1258_v41, %v1262_v39 }
 0x437   :  { %2959 = vmatprep.subr.bf16.mxu0 %v7000_v24  ;;  %v7200_v24 = vcombine.high %v1386_v19, %v1390_v20 }
 0x438   :  { %2999 = vmatpush1.bf16.msra.mxu1 %v7135_v23  ;;  %v7072_v23 = vcombine.high %v1258_v41, %v1262_v39 }
 0x439   :  { %3000 = vmatprep.subr.bf16.mxu1 %v7128_v25  ;;  %v1250_v25 = vld [vmem:[#allocation2 + $0x298] sm:$0xff] }
 0x43a   :  { %2960 = vmatpush1.bf16.msra.mxu0 %v6999_v29  ;;  %v7199_v29 = vcombine.low %v1386_v19, %v1390_v20  ;;  %v7063_v40 = vcombine.low %v1250_v25, %v1254_v26 }
 0x43b   :  { %2961 = vmatprep.subr.bf16.mxu0 %v6992_v30  ;;  %v7192_v30 = vcombine.high %v1378_v44, %v1382_v27 }
 0x43c   :  { %3001 = vmatpush1.bf16.msra.mxu1 %v7127_v45  ;;  %v7064_v45 = vcombine.high %v1250_v25, %v1254_v26 }
 0x43d   :  { %3002 = vmatprep.subr.bf16.mxu1 %v7120_v32  ;;  %v1242_v32 = vld [vmem:[#allocation2 + $0x258] sm:$0xff] }
 0x43e   :  { %2962 = vmatpush1.bf16.msra.mxu0 %v6991_v42  ;;  %v7191_v42 = vcombine.low %v1378_v44, %v1382_v27  ;;  %v7055_v51 = vcombine.low %v1242_v32, %v1246_v33 }
 0x43f   :  { %2963 = vmatprep.subr.bf16.mxu0 %v6984_v46  ;;  %v7184_v46 = vcombine.high %v1370_v35, %v1374_v36 }
 0x440   :  { %3003 = vmatpush1.bf16.msra.mxu1 %v7119_v43  ;;  %v7056_v43 = vcombine.high %v1242_v32, %v1246_v33 }
 0x441   :  { %3004 = vmatprep.subr.bf16.mxu1 %v7112_v47  ;;  %v1234_v47 = vld [vmem:[#allocation2 + $0x218] sm:$0xff] }
 0x442   :  { %2964 = vmatpush1.bf16.msra.mxu0 %v6983_v52  ;;  %v7183_v52 = vcombine.low %v1370_v35, %v1374_v36 }
 0x443   :  { %2965 = vmatprep.subr.bf16.mxu0 %v7104_v54  ;;  %v7176_v54 = vcombine.high %v1362_v49, %v1366_v50 }
 0x444   :  { %3005 = vmatpush1.bf16.msra.mxu1 %v7111_v53  ;;  %v7048_v53 = vcombine.high %v1234_v47, %v1238_v48 }
 0x445   :  { %3006 = vmatprep.subr.bf16.mxu1 %v7232_v55  ;;  %v7047_v55 = vcombine.low %v1234_v47, %v1238_v48 }
 0x446   :  { %2966 = vmatpush2.bf16.msra.mxu0 %v7103_v60 }
 0x447   :  { %2967 = vmatprep.subr.bf16.mxu0 %v7096_v63 }
 0x448   :  { %3007 = vmatpush2.bf16.msra.mxu1 %v7231_v61 }
 0x449   :  { %3008 = vmatprep.subr.bf16.mxu1 %v7224_v0 }
 0x44a   :  { %2968 = vmatpush2.bf16.msra.mxu0 %v7095_v6 }
 0x44b   :  { %2969 = vmatprep.subr.bf16.mxu0 %v7088_v8 }
 0x44c   :  { %3009 = vmatpush2.bf16.msra.mxu1 %v7223_v7 }
 0x44d   :  { %3010 = vmatprep.subr.bf16.mxu1 %v7216_v9 }
 0x44e   :  { %2970 = vmatpush2.bf16.msra.mxu0 %v7087_v15 }
 0x44f   :  { %2971 = vmatprep.subr.bf16.mxu0 %v7080_v37 }
 0x450   :  { %3011 = vmatpush2.bf16.msra.mxu1 %v7215_v16 }
 0x451   :  { %3012 = vmatprep.subr.bf16.mxu1 %v7208_v18 }
 0x452   :  { %2972 = vmatpush2.bf16.msra.mxu0 %v7079_v21 }
 0x453   :  { %2973 = vmatprep.subr.bf16.mxu0 %v7072_v23 }
 0x454   :  { %3013 = vmatpush2.bf16.msra.mxu1 %v7207_v22 }
 0x455   :  { %3014 = vmatprep.subr.bf16.mxu1 %v7200_v24 }
 0x456   :  { %2974 = vmatpush2.bf16.msra.mxu0 %v7071_v28 }
 0x457   :  { %2975 = vmatprep.subr.bf16.mxu0 %v7064_v45 }
 0x458   :  { %3015 = vmatpush2.bf16.msra.mxu1 %v7199_v29 }
 0x459   :  { %3016 = vmatprep.subr.bf16.mxu1 %v7192_v30 }
 0x45a   :  { %2976 = vmatpush2.bf16.msra.mxu0 %v7063_v40 }
 0x45b   :  { %2977 = vmatprep.subr.bf16.mxu0 %v7056_v43  ;;  %v9175_v43 = vld [vmem:[#allocation22] sm:$0xff] }
 0x45c   :  { %3017 = vmatpush2.bf16.msra.mxu1 %v7191_v42  ;;  %v9173_v42 = vld [vmem:[#allocation20] sm:$0xff]  ;;  %v3254_v50 = vrot.slane %v9175_v43, %v9092_v14 }
 0x45d   :  { %3018 = vmatprep.subr.bf16.mxu1 %v7184_v46  ;;  %v3205_v47 = vrot.slane %v9173_v42, %v9092_v14 }
 0x45e   :  { %2978 = vmatpush2.bf16.msra.mxu0 %v7055_v51 }
 0x45f   :  { %2979 = vmatprep.subr.bf16.mxu0 %v7048_v53 }
 0x460   :  { %3019 = vmatpush2.bf16.msra.mxu1 %v7183_v52  ;;  %v3209_v52 = vrot.slane %v9173_v42, %v9095_v17 }
 0x461   :  { %3020 = vmatprep.subr.bf16.mxu1 %v7176_v54 }
 0x462   :  { %2980 = vmatpush2.bf16.msra.mxu0 %v7047_v55 }
 0x464   :  { %3021 = vmatpush2.bf16.msra.mxu1 %v7175_v56  ;;  %v3258_v56 = vrot.slane %v9175_v43, %v9095_v17 }
 0x465   :  { %v2737_v57 = vpop.f32.mrf.mxu0  ;;  %2982 = vmatmul.mubr.bf16.vlgmr.msra.gmra.mxu0 %v9149_v31 }
 0x467   :  { %v2778_v58 = vpop.f32.mrf.mxu1  ;;  %3023 = vmatmul.mubr.bf16.vlgmr.msra.gmra.mxu1 %v9151_v34  ;;  %v2739_v60 = vpop.f32.mrf.mxu0 }
 0x468   :  { %v2779_v59 = vadd.f32 %v2778_v58, %v2737_v57 }
 0x469   :  { %v2780_v61 = vpop.f32.mrf.mxu1  ;;  %v2741_v3 = vpop.f32.mrf.mxu0 }
 0x46a   :  { %v3033_v63 = vrot.slane %v2779_v59, 4  ;;  %v3089_v0 = vmul.f32 %v2779_v59, %v2779_v59  ;;  %v2781_v1 = vadd.f32 %v2780_v61, %v2739_v60 }
 0x46b   :  { %v2782_v4 = vpop.f32.mrf.mxu1  ;;  %v2742_v9 = vpop.f32.mrf.mxu0 }
 0x46c   :  { %v3034_v5 = vadd.f32 %v3033_v63, %v2779_v59  ;;  %v3097_v6 = vrot.slane %v3089_v0, 4  ;;  %v3039_v7 = vrot.slane %v2781_v1, 4  ;;  %v3090_v8 = vmul.f32 %v2781_v1, %v2781_v1 }
 0x46d   :  { %v2783_v10 = vpop.f32.mrf.mxu1 }
 0x46e   :  { %v3035_v11 = vrot.slane %v3034_v5, 2  ;;  %v3098_v38 = vadd.f32 %v3097_v6, %v3089_v0  ;;  %v3040_v31 = vadd.f32 %v3039_v7, %v2781_v1  ;;  %v3103_v12 = vrot.slane %v3090_v8, 4 }
 0x470   :  { %v3036_v15 = vadd.f32 %v3035_v11, %v3034_v5  ;;  %v3099_v34 = vrot.slane %v3098_v38, 2  ;;  %v3041_v16 = vrot.slane %v3040_v31, 2  ;;  %v3104_v37 = vadd.f32 %v3103_v12, %v3090_v8 }
 0x472   :  { %v3037_v18 = vrot.slane %v3036_v15, 1  ;;  %v3100_v41 = vadd.f32 %v3099_v34, %v3098_v38  ;;  %v3042_v39 = vadd.f32 %v3041_v16, %v3040_v31  ;;  %v3105_v19 = vrot.slane %v3104_v37, 2 }
 0x474   :  { %v3038_v20 = vadd.f32 %v3037_v18, %v3036_v15  ;;  %v3101_v21 = vrot.slane %v3100_v41, 1  ;;  %v3043_v22 = vrot.slane %v3042_v39, 1  ;;  %v3106_v23 = vadd.f32 %v3105_v19, %v3104_v37 }
 0x476   :  { %v3081_v24 = vmul.f32 0.125, %v3038_v20  ;;  %v3102_v25 = vadd.f32 %v3101_v21, %v3100_v41  ;;  %v3044_v26 = vadd.f32 %v3043_v22, %v3042_v39  ;;  %v3107_v44 = vrot.slane %v3106_v23, 1 }
 0x478   :  { %v3145_v27 = vmul.f32 0.125, %v3102_v25  ;;  %v3153_v28 = vmul.f32 %v3081_v24, %v3081_v24  ;;  %v3082_v29 = vmul.f32 0.125, %v3044_v26  ;;  %v3108_v45 = vadd.f32 %v3107_v44, %v3106_v23 }
 0x479   :  { %v3185_v46 = vsub.f32 %v2779_v59, %v3081_v24 }
 0x47a   :  { %v3161_v30 = vsub.f32 %v3145_v27, %v3153_v28  ;;  %v3154_v32 = vmul.f32 %v3082_v29, %v3082_v29  ;;  %v3146_v33 = vmul.f32 0.125, %v3108_v45  ;;  %v3186_v51 = vsub.f32 %v2781_v1, %v3082_v29 }
 0x47c   :  { %v3169_v35 = vadd.f32 0.8, %v3161_v30  ;;  %v3162_v36 = vsub.f32 %v3146_v33, %v3154_v32 }
 0x47e   :  { %7964 = vrsqrt.f32 %v3169_v35  ;;  %v3170_v40 = vadd.f32 0.8, %v3162_v36 }
 0x480   :  { %7966 = vrsqrt.f32 %v3170_v40 }
 0x48b   :  { %v7965_v48 = vpop.eup %7964 }
 0x48c   :  { %v3193_v49 = vmul.f32 %v7965_v48, %v3185_v46 }
 0x48d   :  { %v7967_v53 = vpop.eup %7966 }
 0x48e   :  { %v3242_v54 = vmul.f32 %v3205_v47, %v3193_v49  ;;  %v3194_v55 = vmul.f32 %v7967_v53, %v3186_v51 }
 0x490   :  { %v3291_v57 = vadd.f32 %v3254_v50, %v3242_v54  ;;  %v3243_v58 = vmul.f32 %v3209_v52, %v3194_v55 }
 0x492   :  { %vm3299_vm8 = vcmp.gt.f32.partialorder %v3291_v57, 0.0  ;;  %v3307_v59 = vmul.f32 0.2, %v3291_v57  ;;  %v3292_v60 = vadd.f32 %v3258_v56, %v3243_v58  ;;  %v3213_v56 = vrot.slane %v9173_v42, %v9132_v62 }
 0x494   :  { %v3315_v61 = vsel %vm3299_vm8, %v3291_v57, %v3307_v59  ;;  %vm3300_vm9 = vcmp.gt.f32.partialorder %v3292_v60, 0.0  ;;  %v3308_v0 = vmul.f32 0.2, %v3292_v60  ;;  %v3262_v59 = vrot.slane %v9175_v43, %v9132_v62 }
 0x495   :  { %v9185_v63 = vpack.c.bf16 %v3315_v61, %v3315_v61  ;;  %v3217_v61 = vrot.slane %v9173_v42, %v9137_v2 }
 0x496   :  { %v3316_v1 = vsel %vm3300_vm9, %v3292_v60, %v3308_v0 }
 0x497   :  { %v9187_v3 = vpack.c.bf16 %v3316_v1, %v3316_v1 }
 0x4a5   :  { %v2819_v4 = vpop.f32.mrf.mxu0 }
 0x4a7   :  { %v2860_v5 = vpop.f32.mrf.mxu1  ;;  %v2821_v7 = vpop.f32.mrf.mxu0 }
 0x4a8   :  { %v2861_v6 = vadd.f32 %v2860_v5, %v2819_v4  ;;  %v3266_v5 = vrot.slane %v9175_v43, %v9137_v2 }
 0x4a9   :  { %v2862_v8 = vpop.f32.mrf.mxu1  ;;  %v2823_v38 = vpop.f32.mrf.mxu0 }
 0x4aa   :  { %v3045_v9 = vrot.slane %v2861_v6, 4  ;;  %v3091_v10 = vmul.f32 %v2861_v6, %v2861_v6  ;;  %v2863_v11 = vadd.f32 %v2862_v8, %v2821_v7 }
 0x4ab   :  { %v2864_v31 = vpop.f32.mrf.mxu1  ;;  %v2824_v37 = vpop.f32.mrf.mxu0 }
 0x4ac   :  { %v3046_v12 = vadd.f32 %v3045_v9, %v2861_v6  ;;  %v3109_v15 = vrot.slane %v3091_v10, 4  ;;  %v3051_v34 = vrot.slane %v2863_v11, 4  ;;  %v3092_v16 = vmul.f32 %v2863_v11, %v2863_v11 }
 0x4ad   :  { %v2865_v18 = vpop.f32.mrf.mxu1 }
 0x4ae   :  { %v3047_v41 = vrot.slane %v3046_v12, 2  ;;  %v3110_v39 = vadd.f32 %v3109_v15, %v3091_v10  ;;  %v3052_v19 = vadd.f32 %v3051_v34, %v2863_v11  ;;  %v3115_v20 = vrot.slane %v3092_v16, 4 }
 0x4b0   :  { %v3048_v21 = vadd.f32 %v3047_v41, %v3046_v12  ;;  %v3111_v22 = vrot.slane %v3110_v39, 2  ;;  %v3053_v23 = vrot.slane %v3052_v19, 2  ;;  %v3116_v24 = vadd.f32 %v3115_v20, %v3092_v16 }
 0x4b2   :  { %v3049_v25 = vrot.slane %v3048_v21, 1  ;;  %v3112_v26 = vadd.f32 %v3111_v22, %v3110_v39  ;;  %v3054_v44 = vadd.f32 %v3053_v23, %v3052_v19  ;;  %v3117_v27 = vrot.slane %v3116_v24, 2 }
 0x4b4   :  { %v3050_v28 = vadd.f32 %v3049_v25, %v3048_v21  ;;  %v3113_v29 = vrot.slane %v3112_v26, 1  ;;  %v3055_v45 = vrot.slane %v3054_v44, 1  ;;  %v3118_v30 = vadd.f32 %v3117_v27, %v3116_v24 }
 0x4b6   :  { %v3083_v32 = vmul.f32 0.125, %v3050_v28  ;;  %v3114_v33 = vadd.f32 %v3113_v29, %v3112_v26  ;;  %v3056_v35 = vadd.f32 %v3055_v45, %v3054_v44  ;;  %v3119_v36 = vrot.slane %v3118_v30, 1 }
 0x4b8   :  { %v3147_v40 = vmul.f32 0.125, %v3114_v33  ;;  %v3155_v46 = vmul.f32 %v3083_v32, %v3083_v32  ;;  %v3084_v47 = vmul.f32 0.125, %v3056_v35  ;;  %v3120_v48 = vadd.f32 %v3119_v36, %v3118_v30 }
 0x4b9   :  { %v3187_v55 = vsub.f32 %v2861_v6, %v3083_v32 }
 0x4ba   :  { %v3163_v49 = vsub.f32 %v3147_v40, %v3155_v46  ;;  %v3156_v50 = vmul.f32 %v3084_v47, %v3084_v47  ;;  %v3148_v51 = vmul.f32 0.125, %v3120_v48  ;;  %v3188_v60 = vsub.f32 %v2863_v11, %v3084_v47 }
 0x4bc   :  { %v3171_v52 = vadd.f32 0.8, %v3163_v49  ;;  %v3164_v53 = vsub.f32 %v3148_v51, %v3156_v50 }
 0x4be   :  { %7968 = vrsqrt.f32 %v3171_v52  ;;  %v3172_v54 = vadd.f32 0.8, %v3164_v53 }
 0x4c0   :  { %7970 = vrsqrt.f32 %v3172_v54 }
 0x4cb   :  { %v7969_v57 = vpop.eup %7968 }
 0x4cc   :  { %v3195_v58 = vmul.f32 %v7969_v57, %v3187_v55 }
 0x4cd   :  { %v7971_v0 = vpop.eup %7970 }
 0x4ce   :  { %v3244_v1 = vmul.f32 %v3213_v56, %v3195_v58  ;;  %v3196_v4 = vmul.f32 %v7971_v0, %v3188_v60 }
 0x4d0   :  { %v3293_v7 = vadd.f32 %v3262_v59, %v3244_v1  ;;  %v3245_v6 = vmul.f32 %v3217_v61, %v3196_v4 }
 0x4d2   :  { %vm3301_vm10 = vcmp.gt.f32.partialorder %v3293_v7, 0.0  ;;  %v3309_v8 = vmul.f32 0.2, %v3293_v7  ;;  %v3294_v9 = vadd.f32 %v3266_v5, %v3245_v6  ;;  %v9205_v6 = vsub.s32 5, %v9089_v13 }
 0x4d4   :  { %v3317_v10 = vsel %vm3301_vm10, %v3293_v7, %v3309_v8  ;;  %vm3302_vm11 = vcmp.gt.f32.partialorder %v3294_v9, 0.0  ;;  %v3310_v31 = vmul.f32 0.2, %v3294_v9  ;;  %v9202_v7 = vsub.s32 4, %v9089_v13 }
 0x4d5   :  { %v9197_v38 = vpack.c.bf16 %v3317_v10, %v3317_v10 }
 0x4d6   :  { %v3318_v11 = vsel %vm3302_vm11, %v3294_v9, %v3310_v31  ;;  %v3221_v9 = vrot.slane %v9173_v42, %v9202_v7 }
 0x4d7   :  { %v9199_v12 = vpack.c.bf16 %v3318_v11, %v3318_v11  ;;  %v3270_v11 = vrot.slane %v9175_v43, %v9202_v7 }
 0x4e5   :  { %v2901_v15 = vpop.f32.mrf.mxu0 }
 0x4e7   :  { %v2942_v34 = vpop.f32.mrf.mxu1  ;;  %v2903_v37 = vpop.f32.mrf.mxu0 }
 0x4e8   :  { %v2943_v16 = vadd.f32 %v2942_v34, %v2901_v15  ;;  %v3225_v34 = vrot.slane %v9173_v42, %v9205_v6 }
 0x4e9   :  { %v2944_v18 = vpop.f32.mrf.mxu1  ;;  %v2905_v20 = vpop.f32.mrf.mxu0 }
 0x4ea   :  { %v3057_v41 = vrot.slane %v2943_v16, 4  ;;  %v3093_v39 = vmul.f32 %v2943_v16, %v2943_v16  ;;  %v2945_v19 = vadd.f32 %v2944_v18, %v2903_v37 }
 0x4eb   :  { %v2946_v21 = vpop.f32.mrf.mxu1  ;;  %v2906_v26 = vpop.f32.mrf.mxu0 }
 0x4ec   :  { %v3058_v22 = vadd.f32 %v3057_v41, %v2943_v16  ;;  %v3121_v23 = vrot.slane %v3093_v39, 4  ;;  %v3063_v24 = vrot.slane %v2945_v19, 4  ;;  %v3094_v25 = vmul.f32 %v2945_v19, %v2945_v19 }
 0x4ed   :  { %v2947_v44 = vpop.f32.mrf.mxu1 }
 0x4ee   :  { %v3059_v27 = vrot.slane %v3058_v22, 2  ;;  %v3122_v28 = vadd.f32 %v3121_v23, %v3093_v39  ;;  %v3064_v29 = vadd.f32 %v3063_v24, %v2945_v19  ;;  %v3127_v45 = vrot.slane %v3094_v25, 4 }
 0x4ef   :  { %v3274_v39 = vrot.slane %v9175_v43, %v9205_v6 }
 0x4f0   :  { %v3060_v30 = vadd.f32 %v3059_v27, %v3058_v22  ;;  %v3123_v32 = vrot.slane %v3122_v28, 2  ;;  %v3065_v33 = vrot.slane %v3064_v29, 2  ;;  %v3128_v35 = vadd.f32 %v3127_v45, %v3094_v25 }
 0x4f2   :  { %v3061_v36 = vrot.slane %v3060_v30, 1  ;;  %v3124_v40 = vadd.f32 %v3123_v32, %v3122_v28  ;;  %v3066_v46 = vadd.f32 %v3065_v33, %v3064_v29  ;;  %v3129_v47 = vrot.slane %v3128_v35, 2 }
 0x4f4   :  { %v3062_v48 = vadd.f32 %v3061_v36, %v3060_v30  ;;  %v3125_v49 = vrot.slane %v3124_v40, 1  ;;  %v3067_v50 = vrot.slane %v3066_v46, 1  ;;  %v3130_v51 = vadd.f32 %v3129_v47, %v3128_v35 }
 0x4f6   :  { %v3085_v52 = vmul.f32 0.125, %v3062_v48  ;;  %v3126_v53 = vadd.f32 %v3125_v49, %v3124_v40  ;;  %v3068_v54 = vadd.f32 %v3067_v50, %v3066_v46  ;;  %v3131_v55 = vrot.slane %v3130_v51, 1 }
 0x4f8   :  { %v3149_v56 = vmul.f32 0.125, %v3126_v53  ;;  %v3157_v57 = vmul.f32 %v3085_v52, %v3085_v52  ;;  %v3086_v58 = vmul.f32 0.125, %v3068_v54  ;;  %v3132_v59 = vadd.f32 %v3131_v55, %v3130_v51 }
 0x4f9   :  { %v3189_v8 = vsub.f32 %v2943_v16, %v3085_v52 }
 0x4fa   :  { %v3165_v60 = vsub.f32 %v3149_v56, %v3157_v57  ;;  %v3158_v61 = vmul.f32 %v3086_v58, %v3086_v58  ;;  %v3150_v0 = vmul.f32 0.125, %v3132_v59  ;;  %v3190_v15 = vsub.f32 %v2945_v19, %v3086_v58 }
 0x4fc   :  { %v3173_v1 = vadd.f32 0.8, %v3165_v60  ;;  %v3166_v4 = vsub.f32 %v3150_v0, %v3158_v61 }
 0x4fe   :  { %7972 = vrsqrt.f32 %v3173_v1  ;;  %v3174_v5 = vadd.f32 0.8, %v3166_v4 }
 0x500   :  { %7974 = vrsqrt.f32 %v3174_v5 }
 0x50b   :  { %v7973_v10 = vpop.eup %7972 }
 0x50c   :  { %v3197_v31 = vmul.f32 %v7973_v10, %v3189_v8 }
 0x50d   :  { %v7975_v37 = vpop.eup %7974 }
 0x50e   :  { %v3246_v18 = vmul.f32 %v3221_v9, %v3197_v31  ;;  %v3198_v41 = vmul.f32 %v7975_v37, %v3190_v15 }
 0x510   :  { %v3295_v20 = vadd.f32 %v3270_v11, %v3246_v18  ;;  %v3247_v16 = vmul.f32 %v3225_v34, %v3198_v41 }
 0x512   :  { %vm3303_vm12 = vcmp.gt.f32.partialorder %v3295_v20, 0.0  ;;  %v3311_v21 = vmul.f32 0.2, %v3295_v20  ;;  %v3296_v22 = vadd.f32 %v3274_v39, %v3247_v16 }
 0x514   :  { %v3319_v23 = vsel %vm3303_vm12, %v3295_v20, %v3311_v21  ;;  %vm3304_vm13 = vcmp.gt.f32.partialorder %v3296_v22, 0.0  ;;  %v3312_v25 = vmul.f32 0.2, %v3296_v22 }
 0x515   :  { %v9215_v24 = vpack.c.bf16 %v3319_v23, %v3319_v23  ;;  %v9220_v23 = vsub.s32 6, %v9089_v13 }
 0x516   :  { %v3320_v19 = vsel %vm3304_vm13, %v3296_v22, %v3312_v25  ;;  %v3232_v25 = vsub.s32 7, %v9089_v13 }
 0x517   :  { %v9217_v26 = vpack.c.bf16 %v3320_v19, %v3320_v19 }
 0x525   :  { %v2983_v44 = vpop.f32.mrf.mxu0 }
 0x527   :  { %v3024_v27 = vpop.f32.mrf.mxu1  ;;  %v2985_v29 = vpop.f32.mrf.mxu0 }
 0x528   :  { %v3025_v28 = vadd.f32 %v3024_v27, %v2983_v44  ;;  %v3229_v44 = vrot.slane %v9173_v42, %v9220_v23 }
 0x529   :  { %v3026_v45 = vpop.f32.mrf.mxu1  ;;  %v2987_v35 = vpop.f32.mrf.mxu0 }
 0x52a   :  { %v3069_v30 = vrot.slane %v3025_v28, 4  ;;  %v3095_v32 = vmul.f32 %v3025_v28, %v3025_v28  ;;  %v3027_v33 = vadd.f32 %v3026_v45, %v2985_v29  ;;  %v3278_v45 = vrot.slane %v9175_v43, %v9220_v23 }
 0x52b   :  { %v3028_v36 = vpop.f32.mrf.mxu1  ;;  %v2988_v49 = vpop.f32.mrf.mxu0 }
 0x52c   :  { %v3070_v40 = vadd.f32 %v3069_v30, %v3025_v28  ;;  %v3133_v46 = vrot.slane %v3095_v32, 4  ;;  %v3075_v47 = vrot.slane %v3027_v33, 4  ;;  %v3096_v48 = vmul.f32 %v3027_v33, %v3027_v33 }
 0x52d   :  { %v3029_v50 = vpop.f32.mrf.mxu1 }
 0x52e   :  { %v3071_v51 = vrot.slane %v3070_v40, 2  ;;  %v3134_v52 = vadd.f32 %v3133_v46, %v3095_v32  ;;  %v3076_v53 = vadd.f32 %v3075_v47, %v3027_v33  ;;  %v3139_v54 = vrot.slane %v3096_v48, 4 }
 0x52f   :  { %v3233_v32 = vrot.slane %v9173_v42, %v3232_v25  ;;  %v3282_v46 = vrot.slane %v9175_v43, %v3232_v25 }
 0x530   :  { %v3072_v55 = vadd.f32 %v3071_v51, %v3070_v40  ;;  %v3135_v56 = vrot.slane %v3134_v52, 2  ;;  %v3077_v57 = vrot.slane %v3076_v53, 2  ;;  %v3140_v58 = vadd.f32 %v3139_v54, %v3096_v48 }
 0x532   :  { %v3073_v59 = vrot.slane %v3072_v55, 1  ;;  %v3136_v60 = vadd.f32 %v3135_v56, %v3134_v52  ;;  %v3078_v61 = vadd.f32 %v3077_v57, %v3076_v53  ;;  %v3141_v0 = vrot.slane %v3140_v58, 2 }
 0x534   :  { %v3074_v1 = vadd.f32 %v3073_v59, %v3072_v55  ;;  %v3137_v4 = vrot.slane %v3136_v60, 1  ;;  %v3079_v5 = vrot.slane %v3078_v61, 1  ;;  %v3142_v8 = vadd.f32 %v3141_v0, %v3140_v58 }
 0x536   :  { %v3087_v9 = vmul.f32 0.125, %v3074_v1  ;;  %v3138_v10 = vadd.f32 %v3137_v4, %v3136_v60  ;;  %v3080_v31 = vadd.f32 %v3079_v5, %v3078_v61  ;;  %v3143_v11 = vrot.slane %v3142_v8, 1 }
 0x538   :  { %v3151_v15 = vmul.f32 0.125, %v3138_v10  ;;  %v3159_v34 = vmul.f32 %v3087_v9, %v3087_v9  ;;  %v3088_v37 = vmul.f32 0.125, %v3080_v31  ;;  %v3144_v18 = vadd.f32 %v3143_v11, %v3142_v8 }
 0x539   :  { %v3191_v19 = vsub.f32 %v3025_v28, %v3087_v9 }
 0x53a   :  { %v3167_v41 = vsub.f32 %v3151_v15, %v3159_v34  ;;  %v3160_v39 = vmul.f32 %v3088_v37, %v3088_v37  ;;  %v3152_v20 = vmul.f32 0.125, %v3144_v18  ;;  %v3192_v30 = vsub.f32 %v3027_v33, %v3088_v37 }
 0x53c   :  { %v3175_v16 = vadd.f32 0.8, %v3167_v41  ;;  %v3168_v21 = vsub.f32 %v3152_v20, %v3160_v39 }
 0x53e   :  { %7976 = vrsqrt.f32 %v3175_v16  ;;  %v3176_v22 = vadd.f32 0.8, %v3168_v21 }
 0x540   :  { %7978 = vrsqrt.f32 %v3176_v22 }
 0x54b   :  { %v7977_v27 = vpop.eup %7976 }
 0x54c   :  { %v3199_v29 = vmul.f32 %v7977_v27, %v3191_v19 }
 0x54d   :  { %v7979_v35 = vpop.eup %7978 }
 0x54e   :  { %v3248_v36 = vmul.f32 %v3229_v44, %v3199_v29  ;;  %v3200_v40 = vmul.f32 %v7979_v35, %v3192_v30 }
 0x550   :  { %v3297_v47 = vadd.f32 %v3278_v45, %v3248_v36  ;;  %v3249_v48 = vmul.f32 %v3233_v32, %v3200_v40 }
 0x552   :  { %vm3305_vm14 = vcmp.gt.f32.partialorder %v3297_v47, 0.0  ;;  %v3313_v13 = vmul.f32 0.2, %v3297_v47  ;;  %v3298_v28 = vadd.f32 %v3282_v46, %v3249_v48 }
 0x554   :  { %v3321_v49 = vsel %vm3305_vm14, %v3297_v47, %v3313_v13  ;;  %vm3306_vm15 = vcmp.gt.f32.partialorder %v3298_v28, 0.0  ;;  %v3314_v51 = vmul.f32 0.2, %v3298_v28 }
 0x555   :  { %v9229_v50 = vpack.c.bf16 %v3321_v49, %v3321_v49 }
 0x556   :  { %v3322_v52 = vsel %vm3306_vm15, %v3298_v28, %v3314_v51 }
 0x557   :  { %v9231_v53 = vpack.c.bf16 %v3322_v52, %v3322_v52 }
 0x558   :  { %8950 = dma.done.wait [#allocation4 + $0x1], 57344 }
 0x559   :  { %8951 = vsyncadd [#allocation4 + $0x1], 4294909952  ;;  %6220 = vmatprep.mubr.bf16.mxu0 %v9187_v3  ;;  %6261 = vmatprep.mubr.bf16.mxu1 %v9199_v12  ;;  %v7980_v42 = vld [vmem:[#allocation3 + $0x18c] ss:$28 sps:$4 sm:$0xff]   ;;  %v7986_v55 = vld [vmem:[#allocation3 + $0x154] ss:$28 sps:$4 sm:$0xff]  }
 0x55a   :  { %v7982_v43 = vld [vmem:[#allocation3 + $0x50c] ss:$28 sps:$4 sm:$0xff]   ;;  %6188 = vmatprep.subr.bf16.mxu0 %v7980_v42  ;;  %v7988_v56 = vld [vmem:[#allocation3 + $0x4d4] ss:$28 sps:$4 sm:$0xff]   ;;  %v7992_v59 = vld [vmem:[#allocation3 + $0x11c] ss:$28 sps:$4 sm:$0xff]  }
 0x55b   :  { %v7984_v33 = vld [vmem:[#allocation3 + $0x188] ss:$28 sps:$4 sm:$0xff]   ;;  %6229 = vmatprep.subr.bf16.mxu1 %v7982_v43  ;;  %v7990_v57 = vld [vmem:[#allocation3 + $0x150] ss:$28 sps:$4 sm:$0xff]   ;;  %v7994_v60 = vld [vmem:[#allocation3 + $0x49c] ss:$28 sps:$4 sm:$0xff]  }
 0x55c   :  { %v7985_v54 = vld [vmem:[#allocation3 + $0x508] ss:$28 sps:$4 sm:$0xff]   ;;  %6189 = vmatpush1.bf16.msra.mxu0 %v7984_v33  ;;  %v7991_v58 = vld [vmem:[#allocation3 + $0x4d0] ss:$28 sps:$4 sm:$0xff]   ;;  %v7996_v61 = vld [vmem:[#allocation3 + $0x118] ss:$28 sps:$4 sm:$0xff]  }
 0x55d   :  { %6230 = vmatpush1.bf16.msra.mxu1 %v7985_v54  ;;  %6190 = vmatprep.subr.bf16.mxu0 %v7986_v55  ;;  %v7997_v0 = vld [vmem:[#allocation3 + $0x498] ss:$28 sps:$4 sm:$0xff]   ;;  %v7998_v1 = vld [vmem:[#allocation3 + $0xe4] ss:$28 sps:$4 sm:$0xff]   ;;  %v8004_v9 = vld [vmem:[#allocation3 + $0xac] ss:$28 sps:$4 sm:$0xff]  }
 0x55e   :  { %6231 = vmatprep.subr.bf16.mxu1 %v7988_v56  ;;  %v8000_v4 = vld [vmem:[#allocation3 + $0x464] ss:$28 sps:$4 sm:$0xff]   ;;  %v8006_v10 = vld [vmem:[#allocation3 + $0x42c] ss:$28 sps:$4 sm:$0xff]   ;;  %v8010_v15 = vld [vmem:[#allocation3 + $0x74] ss:$28 sps:$4 sm:$0xff]  }
 0x55f   :  { %v8002_v5 = vld [vmem:[#allocation3 + $0xe0] ss:$28 sps:$4 sm:$0xff]   ;;  %v8008_v31 = vld [vmem:[#allocation3 + $0xa8] ss:$28 sps:$4 sm:$0xff]   ;;  %v8012_v34 = vld [vmem:[#allocation3 + $0x3f4] ss:$28 sps:$4 sm:$0xff]  }
 0x560   :  { %6191 = vmatpush1.bf16.msra.mxu0 %v7990_v57  ;;  %v8003_v8 = vld [vmem:[#allocation3 + $0x460] ss:$28 sps:$4 sm:$0xff]   ;;  %v8009_v11 = vld [vmem:[#allocation3 + $0x428] ss:$28 sps:$4 sm:$0xff]   ;;  %v8014_v37 = vld [vmem:[#allocation3 + $0x70] ss:$28 sps:$4 sm:$0xff]  }
 0x561   :  { %6232 = vmatpush1.bf16.msra.mxu1 %v7991_v58  ;;  %6192 = vmatprep.subr.bf16.mxu0 %v7992_v59  ;;  %v8015_v18 = vld [vmem:[#allocation3 + $0x3f0] ss:$28 sps:$4 sm:$0xff]   ;;  %v8016_v41 = vld [vmem:[#allocation3 + $0x3c] ss:$28 sps:$4 sm:$0xff]   ;;  %v8022_v21 = vld [vmem:[#allocation3 + $0x4] ss:$28 sps:$4 sm:$0xff]  }
 0x562   :  { %6233 = vmatprep.subr.bf16.mxu1 %v7994_v60  ;;  %v8018_v39 = vld [vmem:[#allocation3 + $0x3bc] ss:$28 sps:$4 sm:$0xff]   ;;  %v8024_v22 = vld [vmem:[#allocation3 + $0x384] ss:$28 sps:$4 sm:$0xff]   ;;  %v8028_v44 = vld [vmem:[#allocation3 + $0x34c] ss:$28 sps:$4 sm:$0xff]  }
 0x563   :  { %v8020_v20 = vld [vmem:[#allocation3 + $0x38] ss:$28 sps:$4 sm:$0xff]   ;;  %v8026_v25 = vld [vmem:[#allocation3] ss:$28 sps:$4 sm:$0xff]   ;;  %v8030_v27 = vld [vmem:[#allocation3 + $0x6cc] ss:$28 sps:$4 sm:$0xff]  }
 0x564   :  { %6193 = vmatpush1.bf16.msra.mxu0 %v7996_v61  ;;  %v8021_v16 = vld [vmem:[#allocation3 + $0x3b8] ss:$28 sps:$4 sm:$0xff]   ;;  %v8027_v19 = vld [vmem:[#allocation3 + $0x380] ss:$28 sps:$4 sm:$0xff]   ;;  %v8032_v29 = vld [vmem:[#allocation3 + $0x348] ss:$28 sps:$4 sm:$0xff]  }
 0x565   :  { %6234 = vmatpush1.bf16.msra.mxu1 %v7997_v0  ;;  %6194 = vmatprep.subr.bf16.mxu0 %v7998_v1  ;;  %v8033_v45 = vld [vmem:[#allocation3 + $0x6c8] ss:$28 sps:$4 sm:$0xff]   ;;  %v8034_v30 = vld [vmem:[#allocation3 + $0x314] ss:$28 sps:$4 sm:$0xff]   ;;  %v8040_v40 = vld [vmem:[#allocation3 + $0x2dc] ss:$28 sps:$4 sm:$0xff]  }
 0x566   :  { %6235 = vmatprep.subr.bf16.mxu1 %v8000_v4  ;;  %v8036_v32 = vld [vmem:[#allocation3 + $0x694] ss:$28 sps:$4 sm:$0xff]   ;;  %v8042_v46 = vld [vmem:[#allocation3 + $0x65c] ss:$28 sps:$4 sm:$0xff]   ;;  %v8046_v13 = vld [vmem:[#allocation3 + $0x2a4] ss:$28 sps:$4 sm:$0xff]  }
 0x567   :  { %v8038_v35 = vld [vmem:[#allocation3 + $0x310] ss:$28 sps:$4 sm:$0xff]   ;;  %v8044_v47 = vld [vmem:[#allocation3 + $0x2d8] ss:$28 sps:$4 sm:$0xff]   ;;  %v8048_v28 = vld [vmem:[#allocation3 + $0x624] ss:$28 sps:$4 sm:$0xff]  }
 0x568   :  { %6195 = vmatpush1.bf16.msra.mxu0 %v8002_v5  ;;  %v8039_v36 = vld [vmem:[#allocation3 + $0x690] ss:$28 sps:$4 sm:$0xff]   ;;  %v8045_v48 = vld [vmem:[#allocation3 + $0x658] ss:$28 sps:$4 sm:$0xff]   ;;  %v8050_v49 = vld [vmem:[#allocation3 + $0x2a0] ss:$28 sps:$4 sm:$0xff]  }
 0x569   :  { %6236 = vmatpush1.bf16.msra.mxu1 %v8003_v8  ;;  %6196 = vmatprep.subr.bf16.mxu0 %v8004_v9  ;;  %v8051_v51 = vld [vmem:[#allocation3 + $0x620] ss:$28 sps:$4 sm:$0xff]   ;;  %v8052_v52 = vld [vmem:[#allocation3 + $0x26c] ss:$28 sps:$4 sm:$0xff]   ;;  %v8058_v54 = vld [vmem:[#allocation3 + $0x234] ss:$28 sps:$4 sm:$0xff]  }
 0x56a   :  { %6237 = vmatprep.subr.bf16.mxu1 %v8006_v10  ;;  %v8054_v42 = vld [vmem:[#allocation3 + $0x5ec] ss:$28 sps:$4 sm:$0xff]   ;;  %v8060_v55 = vld [vmem:[#allocation3 + $0x5b4] ss:$28 sps:$4 sm:$0xff]   ;;  %v8064_v58 = vld [vmem:[#allocation3 + $0x1fc] ss:$28 sps:$4 sm:$0xff]  }
 0x56b   :  { %v8056_v43 = vld [vmem:[#allocation3 + $0x268] ss:$28 sps:$4 sm:$0xff]   ;;  %v8062_v56 = vld [vmem:[#allocation3 + $0x230] ss:$28 sps:$4 sm:$0xff]   ;;  %v8066_v59 = vld [vmem:[#allocation3 + $0x57c] ss:$28 sps:$4 sm:$0xff]  }
 0x56c   :  { %6197 = vmatpush1.bf16.msra.mxu0 %v8008_v31  ;;  %v8057_v33 = vld [vmem:[#allocation3 + $0x5e8] ss:$28 sps:$4 sm:$0xff]   ;;  %v8063_v57 = vld [vmem:[#allocation3 + $0x5b0] ss:$28 sps:$4 sm:$0xff]   ;;  %v8068_v60 = vld [vmem:[#allocation3 + $0x1f8] ss:$28 sps:$4 sm:$0xff]  }
 0x56d   :  { %6238 = vmatpush1.bf16.msra.mxu1 %v8009_v11  ;;  %6198 = vmatprep.subr.bf16.mxu0 %v8010_v15  ;;  %v8069_v61 = vld [vmem:[#allocation3 + $0x578] ss:$28 sps:$4 sm:$0xff]   ;;  %v8070_v0 = vld [vmem:[#allocation3 + $0x1c4] ss:$28 sps:$4 sm:$0xff]   ;;  %v8078_v8 = vld [vmem:[#allocation3 + $0x88c] ss:$28 sps:$4 sm:$0xff]  }
 0x56e   :  { %6239 = vmatprep.subr.bf16.mxu1 %v8012_v34  ;;  %v8072_v1 = vld [vmem:[#allocation3 + $0x544] ss:$28 sps:$4 sm:$0xff]   ;;  %v8081_v9 = vld [vmem:[#allocation3 + $0xc0c] ss:$28 sps:$4 sm:$0xff]   ;;  %v8084_v11 = vld [vmem:[#allocation3 + $0x854] ss:$28 sps:$4 sm:$0xff]  }
 0x56f   :  { %v8074_v4 = vld [vmem:[#allocation3 + $0x1c0] ss:$28 sps:$4 sm:$0xff]   ;;  %v8076_v10 = vld [vmem:[#allocation3 + $0x888] ss:$28 sps:$4 sm:$0xff]   ;;  %v8087_v15 = vld [vmem:[#allocation3 + $0xbd4] ss:$28 sps:$4 sm:$0xff]  }
 0x570   :  { %6199 = vmatpush1.bf16.msra.mxu0 %v8014_v37  ;;  %v8075_v5 = vld [vmem:[#allocation3 + $0x540] ss:$28 sps:$4 sm:$0xff]   ;;  %v8079_v31 = vld [vmem:[#allocation3 + $0xc08] ss:$28 sps:$4 sm:$0xff]   ;;  %v8082_v34 = vld [vmem:[#allocation3 + $0x850] ss:$28 sps:$4 sm:$0xff]  }
 0x571   :  { %6240 = vmatpush1.bf16.msra.mxu1 %v8015_v18  ;;  %6200 = vmatprep.subr.bf16.mxu0 %v8016_v41  ;;  %v8085_v37 = vld [vmem:[#allocation3 + $0xbd0] ss:$28 sps:$4 sm:$0xff]   ;;  %v8090_v18 = vld [vmem:[#allocation3 + $0x81c] ss:$28 sps:$4 sm:$0xff]   ;;  %s8977_s9 = smov [#allocation25]  }
 0x572   :  { %6241 = vmatprep.subr.bf16.mxu1 %v8018_v39  ;;  %v8093_v41 = vld [vmem:[#allocation3 + $0xb9c] ss:$28 sps:$4 sm:$0xff]   ;;  %s6860_s12 = sshll.u32 %s8977_s9, 4  ;;  %s6861_s12 = int_to_ptr.vmem [resolvable:$true] %s6860_s12 }
 0x573   :  { %v8088_v39 = vld [vmem:[#allocation3 + $0x818] ss:$28 sps:$4 sm:$0xff]   ;;  %s8914_s22 = scalar_lea.vmem %s6861_s12, 896  ;;  %p8919_p1 = scmp.lt.s32.totalorder %s6861_s12, %s6861_s12 }
 0x574   :  { %6201 = vmatpush1.bf16.msra.mxu0 %v8020_v20  ;;  %v8091_v20 = vld [vmem:[#allocation3 + $0xb98] ss:$28 sps:$4 sm:$0xff]   ;;  %p8915_p0 = scmp.ne.s32.totalorder %s6861_s12, %s8914_s22  ;;  %p8920_p2 = scmp.lt.s32.totalorder %s8914_s22, %s8914_s22 }
 0x575   :  { %6242 = vmatpush1.bf16.msra.mxu1 %v8021_v16  ;;  %6202 = vmatprep.subr.bf16.mxu0 %v8022_v21  ;;  %v8096_v16 = vld [vmem:[#allocation3 + $0x7e4] ss:$28 sps:$4 sm:$0xff]  }
 0x576   :  { %6243 = vmatprep.subr.bf16.mxu1 %v8024_v22  ;;  %v8099_v21 = vld [vmem:[#allocation3 + $0xb64] ss:$28 sps:$4 sm:$0xff]   ;;  %p8921_p3 = por %p8920_p2, %p8919_p1 }
 0x577   :  { %v8094_v22 = vld [vmem:[#allocation3 + $0x7e0] ss:$28 sps:$4 sm:$0xff]  }
 0x578   :  { %6203 = vmatpush1.bf16.msra.mxu0 %v8026_v25  ;;  %v8097_v25 = vld [vmem:[#allocation3 + $0xb60] ss:$28 sps:$4 sm:$0xff]   ;;  %p8922_p4 = pnand %p8921_p3, %p8915_p0 }
 0x579   :  { %6244 = vmatpush1.bf16.msra.mxu1 %v8027_v19  ;;  %6204 = vmatprep.subr.bf16.mxu0 %v8028_v44  ;;  %v8102_v19 = vld [vmem:[#allocation3 + $0x7ac] ss:$28 sps:$4 sm:$0xff]  }
 0x57a   :  { %6245 = vmatprep.subr.bf16.mxu1 %v8030_v27  ;;  %v8105_v44 = vld [vmem:[#allocation3 + $0xb2c] ss:$28 sps:$4 sm:$0xff]  }
 0x57b   :  { %v8100_v27 = vld [vmem:[#allocation3 + $0x7a8] ss:$28 sps:$4 sm:$0xff]  }
 0x57c   :  { %6205 = vmatpush2.bf16.msra.mxu0 %v8032_v29  ;;  %v8103_v29 = vld [vmem:[#allocation3 + $0xb28] ss:$28 sps:$4 sm:$0xff]  }
 0x57d   :  { %6246 = vmatpush2.bf16.msra.mxu1 %v8033_v45  ;;  %6206 = vmatprep.subr.bf16.mxu0 %v8034_v30  ;;  %v8108_v45 = vld [vmem:[#allocation3 + $0x774] ss:$28 sps:$4 sm:$0xff]  }
 0x57e   :  { %6247 = vmatprep.subr.bf16.mxu1 %v8036_v32  ;;  %v8111_v30 = vld [vmem:[#allocation3 + $0xaf4] ss:$28 sps:$4 sm:$0xff]  }
 0x57f   :  { %v8106_v32 = vld [vmem:[#allocation3 + $0x770] ss:$28 sps:$4 sm:$0xff]  }
 0x580   :  { %6207 = vmatpush2.bf16.msra.mxu0 %v8038_v35  ;;  %v8109_v35 = vld [vmem:[#allocation3 + $0xaf0] ss:$28 sps:$4 sm:$0xff]  }
 0x581   :  { %6248 = vmatpush2.bf16.msra.mxu1 %v8039_v36  ;;  %6208 = vmatprep.subr.bf16.mxu0 %v8040_v40  ;;  %v8114_v36 = vld [vmem:[#allocation3 + $0x73c] ss:$28 sps:$4 sm:$0xff]  }
 0x582   :  { %6249 = vmatprep.subr.bf16.mxu1 %v8042_v46  ;;  %v8117_v40 = vld [vmem:[#allocation3 + $0xabc] ss:$28 sps:$4 sm:$0xff]  }
 0x583   :  { %v8112_v46 = vld [vmem:[#allocation3 + $0x738] ss:$28 sps:$4 sm:$0xff]  }
 0x584   :  { %6209 = vmatpush2.bf16.msra.mxu0 %v8044_v47  ;;  %v8115_v47 = vld [vmem:[#allocation3 + $0xab8] ss:$28 sps:$4 sm:$0xff]  }
 0x585   :  { %6250 = vmatpush2.bf16.msra.mxu1 %v8045_v48  ;;  %6210 = vmatprep.subr.bf16.mxu0 %v8046_v13  ;;  %v8120_v48 = vld [vmem:[#allocation3 + $0x704] ss:$28 sps:$4 sm:$0xff]  }
 0x586   :  { %6251 = vmatprep.subr.bf16.mxu1 %v8048_v28  ;;  %v8123_v13 = vld [vmem:[#allocation3 + $0xa84] ss:$28 sps:$4 sm:$0xff]  }
 0x587   :  { %v8118_v28 = vld [vmem:[#allocation3 + $0x700] ss:$28 sps:$4 sm:$0xff]  }
 0x588   :  { %6211 = vmatpush2.bf16.msra.mxu0 %v8050_v49  ;;  %v8121_v49 = vld [vmem:[#allocation3 + $0xa80] ss:$28 sps:$4 sm:$0xff]  }
 0x589   :  { %6252 = vmatpush2.bf16.msra.mxu1 %v8051_v51  ;;  %6212 = vmatprep.subr.bf16.mxu0 %v8052_v52  ;;  %v8126_v51 = vld [vmem:[#allocation3 + $0xa4c] ss:$28 sps:$4 sm:$0xff]  }
 0x58a   :  { %6253 = vmatprep.subr.bf16.mxu1 %v8054_v42  ;;  %v8129_v52 = vld [vmem:[#allocation3 + $0xdcc] ss:$28 sps:$4 sm:$0xff]  }
 0x58b   :  { %v8124_v42 = vld [vmem:[#allocation3 + $0xa48] ss:$28 sps:$4 sm:$0xff]  }
 0x58c   :  { %6213 = vmatpush2.bf16.msra.mxu0 %v8056_v43  ;;  %v8127_v43 = vld [vmem:[#allocation3 + $0xdc8] ss:$28 sps:$4 sm:$0xff]  }
 0x58d   :  { %6254 = vmatpush2.bf16.msra.mxu1 %v8057_v33  ;;  %6214 = vmatprep.subr.bf16.mxu0 %v8058_v54  ;;  %v8132_v33 = vld [vmem:[#allocation3 + $0xa14] ss:$28 sps:$4 sm:$0xff]  }
 0x58e   :  { %6255 = vmatprep.subr.bf16.mxu1 %v8060_v55  ;;  %v8135_v54 = vld [vmem:[#allocation3 + $0xd94] ss:$28 sps:$4 sm:$0xff]  }
 0x58f   :  { %v8130_v55 = vld [vmem:[#allocation3 + $0xa10] ss:$28 sps:$4 sm:$0xff]  }
 0x590   :  { %6215 = vmatpush2.bf16.msra.mxu0 %v8062_v56  ;;  %v8133_v56 = vld [vmem:[#allocation3 + $0xd90] ss:$28 sps:$4 sm:$0xff]  }
 0x591   :  { %6256 = vmatpush2.bf16.msra.mxu1 %v8063_v57  ;;  %6216 = vmatprep.subr.bf16.mxu0 %v8064_v58  ;;  %v8138_v57 = vld [vmem:[#allocation3 + $0x9dc] ss:$28 sps:$4 sm:$0xff]  }
 0x592   :  { %6257 = vmatprep.subr.bf16.mxu1 %v8066_v59  ;;  %v8141_v58 = vld [vmem:[#allocation3 + $0xd5c] ss:$28 sps:$4 sm:$0xff]  }
 0x593   :  { %v8136_v59 = vld [vmem:[#allocation3 + $0x9d8] ss:$28 sps:$4 sm:$0xff]  }
 0x594   :  { %6217 = vmatpush2.bf16.msra.mxu0 %v8068_v60  ;;  %v8139_v60 = vld [vmem:[#allocation3 + $0xd58] ss:$28 sps:$4 sm:$0xff]  }
 0x595   :  { %6258 = vmatpush2.bf16.msra.mxu1 %v8069_v61  ;;  %6218 = vmatprep.subr.bf16.mxu0 %v8070_v0  ;;  %v8144_v61 = vld [vmem:[#allocation3 + $0x9a4] ss:$28 sps:$4 sm:$0xff]  }
 0x596   :  { %6259 = vmatprep.subr.bf16.mxu1 %v8072_v1  ;;  %v8147_v0 = vld [vmem:[#allocation3 + $0xd24] ss:$28 sps:$4 sm:$0xff]  }
 0x597   :  { %v8142_v1 = vld [vmem:[#allocation3 + $0x9a0] ss:$28 sps:$4 sm:$0xff]  }
 0x598   :  { %6219 = vmatpush2.bf16.msra.mxu0 %v8074_v4  ;;  %v8145_v4 = vld [vmem:[#allocation3 + $0xd20] ss:$28 sps:$4 sm:$0xff]  }
 0x599   :  { %6260 = vmatpush2.bf16.msra.mxu1 %v8075_v5  ;;  %6270 = vmatprep.subr.bf16.mxu0 %v8078_v8  ;;  %v8150_v5 = vld [vmem:[#allocation3 + $0x96c] ss:$28 sps:$4 sm:$0xff]  }
 0x59a   :  { %6311 = vmatprep.subr.bf16.mxu1 %v8081_v9  ;;  %v8153_v8 = vld [vmem:[#allocation3 + $0xcec] ss:$28 sps:$4 sm:$0xff]  }
 0x59b   :  { %6221 = vmatmul.mubr.bf16.vlgmr.msra.gmra.mxu0 %v9185_v63  ;;  %v8148_v9 = vld [vmem:[#allocation3 + $0x968] ss:$28 sps:$4 sm:$0xff]  }
 0x59c   :  { %6262 = vmatmul.mubr.bf16.vlgmr.msra.gmra.mxu1 %v9197_v38  ;;  %6271 = vmatpush1.bf16.msra.mxu0 %v8076_v10  ;;  %v8151_v10 = vld [vmem:[#allocation3 + $0xce8] ss:$28 sps:$4 sm:$0xff]  }
 0x59d   :  { %6312 = vmatpush1.bf16.msra.mxu1 %v8079_v31  ;;  %6272 = vmatprep.subr.bf16.mxu0 %v8084_v11  ;;  %v8156_v31 = vld [vmem:[#allocation3 + $0x934] ss:$28 sps:$4 sm:$0xff]  }
 0x59e   :  { %6313 = vmatprep.subr.bf16.mxu1 %v8087_v15  ;;  %6302 = vmatprep.mubr.bf16.mxu0 %v9217_v26  ;;  %v8159_v11 = vld [vmem:[#allocation3 + $0xcb4] ss:$28 sps:$4 sm:$0xff]  }
 0x59f   :  { %6343 = vmatprep.mubr.bf16.mxu1 %v9231_v53  ;;  %v8154_v15 = vld [vmem:[#allocation3 + $0x930] ss:$28 sps:$4 sm:$0xff]  }
 0x5a0   :  { %6273 = vmatpush1.bf16.msra.mxu0 %v8082_v34  ;;  %v8157_v34 = vld [vmem:[#allocation3 + $0xcb0] ss:$28 sps:$4 sm:$0xff]  }
 0x5a1   :  { %6314 = vmatpush1.bf16.msra.mxu1 %v8085_v37  ;;  %6274 = vmatprep.subr.bf16.mxu0 %v8090_v18  ;;  %v8162_v37 = vld [vmem:[#allocation3 + $0x8fc] ss:$28 sps:$4 sm:$0xff]  }
 0x5a2   :  { %6315 = vmatprep.subr.bf16.mxu1 %v8093_v41  ;;  %v8165_v18 = vld [vmem:[#allocation3 + $0xc7c] ss:$28 sps:$4 sm:$0xff]  }
 0x5a3   :  { %v8160_v41 = vld [vmem:[#allocation3 + $0x8f8] ss:$28 sps:$4 sm:$0xff]  }
 0x5a4   :  { %6275 = vmatpush1.bf16.msra.mxu0 %v8088_v39  ;;  %v8163_v39 = vld [vmem:[#allocation3 + $0xc78] ss:$28 sps:$4 sm:$0xff]  }
 0x5a5   :  { %6316 = vmatpush1.bf16.msra.mxu1 %v8091_v20  ;;  %6276 = vmatprep.subr.bf16.mxu0 %v8096_v16  ;;  %v8168_v20 = vld [vmem:[#allocation3 + $0x8c4] ss:$28 sps:$4 sm:$0xff]  }
 0x5a6   :  { %6317 = vmatprep.subr.bf16.mxu1 %v8099_v21  ;;  %v8171_v16 = vld [vmem:[#allocation3 + $0xc44] ss:$28 sps:$4 sm:$0xff]  }
 0x5a7   :  { %v8166_v21 = vld [vmem:[#allocation3 + $0x8c0] ss:$28 sps:$4 sm:$0xff]  }
 0x5a8   :  { %6277 = vmatpush1.bf16.msra.mxu0 %v8094_v22  ;;  %v8169_v22 = vld [vmem:[#allocation3 + $0xc40] ss:$28 sps:$4 sm:$0xff]  }
 0x5a9   :  { %6318 = vmatpush1.bf16.msra.mxu1 %v8097_v25  ;;  %6278 = vmatprep.subr.bf16.mxu0 %v8102_v19  ;;  %v8174_v25 = vld [vmem:[#allocation3 + $0x194] ss:$28 sps:$4 sm:$0xff]  }
 0x5aa   :  { %6319 = vmatprep.subr.bf16.mxu1 %v8105_v44  ;;  %v8177_v19 = vld [vmem:[#allocation3 + $0x514] ss:$28 sps:$4 sm:$0xff]  }
 0x5ab   :  { %v8172_v44 = vld [vmem:[#allocation3 + $0x190] ss:$28 sps:$4 sm:$0xff]  }
 0x5ac   :  { %6279 = vmatpush1.bf16.msra.mxu0 %v8100_v27  ;;  %v8175_v27 = vld [vmem:[#allocation3 + $0x510] ss:$28 sps:$4 sm:$0xff]  }
 0x5ad   :  { %6320 = vmatpush1.bf16.msra.mxu1 %v8103_v29  ;;  %6280 = vmatprep.subr.bf16.mxu0 %v8108_v45  ;;  %v8180_v29 = vld [vmem:[#allocation3 + $0x15c] ss:$28 sps:$4 sm:$0xff]  }
 0x5ae   :  { %6321 = vmatprep.subr.bf16.mxu1 %v8111_v30  ;;  %v8183_v45 = vld [vmem:[#allocation3 + $0x4dc] ss:$28 sps:$4 sm:$0xff]  }
 0x5af   :  { %v8178_v30 = vld [vmem:[#allocation3 + $0x158] ss:$28 sps:$4 sm:$0xff]  }
 0x5b0   :  { %6281 = vmatpush1.bf16.msra.mxu0 %v8106_v32  ;;  %v8181_v32 = vld [vmem:[#allocation3 + $0x4d8] ss:$28 sps:$4 sm:$0xff]  }
 0x5b1   :  { %6322 = vmatpush1.bf16.msra.mxu1 %v8109_v35  ;;  %6282 = vmatprep.subr.bf16.mxu0 %v8114_v36  ;;  %v8186_v35 = vld [vmem:[#allocation3 + $0x124] ss:$28 sps:$4 sm:$0xff]  }
 0x5b2   :  { %6323 = vmatprep.subr.bf16.mxu1 %v8117_v40  ;;  %v8189_v36 = vld [vmem:[#allocation3 + $0x4a4] ss:$28 sps:$4 sm:$0xff]  }
 0x5b3   :  { %v8184_v40 = vld [vmem:[#allocation3 + $0x120] ss:$28 sps:$4 sm:$0xff]  }
 0x5b4   :  { %6283 = vmatpush1.bf16.msra.mxu0 %v8112_v46  ;;  %v8187_v46 = vld [vmem:[#allocation3 + $0x4a0] ss:$28 sps:$4 sm:$0xff]  }
 0x5b5   :  { %6324 = vmatpush1.bf16.msra.mxu1 %v8115_v47  ;;  %6284 = vmatprep.subr.bf16.mxu0 %v8120_v48  ;;  %v8192_v47 = vld [vmem:[#allocation3 + $0xec] ss:$28 sps:$4 sm:$0xff]  }
 0x5b6   :  { %6325 = vmatprep.subr.bf16.mxu1 %v8123_v13  ;;  %v8195_v48 = vld [vmem:[#allocation3 + $0x46c] ss:$28 sps:$4 sm:$0xff]  }
 0x5b7   :  { %v8190_v13 = vld [vmem:[#allocation3 + $0xe8] ss:$28 sps:$4 sm:$0xff]  }
 0x5b8   :  { %6285 = vmatpush1.bf16.msra.mxu0 %v8118_v28  ;;  %v8193_v28 = vld [vmem:[#allocation3 + $0x468] ss:$28 sps:$4 sm:$0xff]  }
 0x5b9   :  { %6326 = vmatpush1.bf16.msra.mxu1 %v8121_v49  ;;  %6286 = vmatprep.subr.bf16.mxu0 %v8126_v51  ;;  %v8198_v49 = vld [vmem:[#allocation3 + $0xb4] ss:$28 sps:$4 sm:$0xff]  }
 0x5ba   :  { %6327 = vmatprep.subr.bf16.mxu1 %v8129_v52  ;;  %v8201_v51 = vld [vmem:[#allocation3 + $0x434] ss:$28 sps:$4 sm:$0xff]  }
 0x5bb   :  { %v8196_v52 = vld [vmem:[#allocation3 + $0xb0] ss:$28 sps:$4 sm:$0xff]  }
 0x5bc   :  { %6287 = vmatpush2.bf16.msra.mxu0 %v8124_v42  ;;  %v8199_v42 = vld [vmem:[#allocation3 + $0x430] ss:$28 sps:$4 sm:$0xff]  }
 0x5bd   :  { %6328 = vmatpush2.bf16.msra.mxu1 %v8127_v43  ;;  %6288 = vmatprep.subr.bf16.mxu0 %v8132_v33  ;;  %v8204_v43 = vld [vmem:[#allocation3 + $0x7c] ss:$28 sps:$4 sm:$0xff]  }
 0x5be   :  { %6329 = vmatprep.subr.bf16.mxu1 %v8135_v54  ;;  %v8207_v33 = vld [vmem:[#allocation3 + $0x3fc] ss:$28 sps:$4 sm:$0xff]  }
 0x5bf   :  { %v8202_v54 = vld [vmem:[#allocation3 + $0x78] ss:$28 sps:$4 sm:$0xff]  }
 0x5c0   :  { %6289 = vmatpush2.bf16.msra.mxu0 %v8130_v55  ;;  %v8205_v55 = vld [vmem:[#allocation3 + $0x3f8] ss:$28 sps:$4 sm:$0xff]  }
 0x5c1   :  { %6330 = vmatpush2.bf16.msra.mxu1 %v8133_v56  ;;  %6290 = vmatprep.subr.bf16.mxu0 %v8138_v57  ;;  %v8210_v56 = vld [vmem:[#allocation3 + $0x44] ss:$28 sps:$4 sm:$0xff]  }
 0x5c2   :  { %6331 = vmatprep.subr.bf16.mxu1 %v8141_v58  ;;  %v8213_v57 = vld [vmem:[#allocation3 + $0x3c4] ss:$28 sps:$4 sm:$0xff]  }
 0x5c3   :  { %v8208_v58 = vld [vmem:[#allocation3 + $0x40] ss:$28 sps:$4 sm:$0xff]  }
 0x5c4   :  { %6291 = vmatpush2.bf16.msra.mxu0 %v8136_v59  ;;  %v8211_v59 = vld [vmem:[#allocation3 + $0x3c0] ss:$28 sps:$4 sm:$0xff]  }
 0x5c5   :  { %6332 = vmatpush2.bf16.msra.mxu1 %v8139_v60  ;;  %6292 = vmatprep.subr.bf16.mxu0 %v8144_v61  ;;  %v8216_v60 = vld [vmem:[#allocation3 + $0xc] ss:$28 sps:$4 sm:$0xff]  }
 0x5c6   :  { %6333 = vmatprep.subr.bf16.mxu1 %v8147_v0  ;;  %v8219_v61 = vld [vmem:[#allocation3 + $0x38c] ss:$28 sps:$4 sm:$0xff]  }
 0x5c7   :  { %v8214_v0 = vld [vmem:[#allocation3 + $0x8] ss:$28 sps:$4 sm:$0xff]  }
 0x5c8   :  { %6293 = vmatpush2.bf16.msra.mxu0 %v8142_v1  ;;  %v8217_v1 = vld [vmem:[#allocation3 + $0x388] ss:$28 sps:$4 sm:$0xff]  }
 0x5c9   :  { %6334 = vmatpush2.bf16.msra.mxu1 %v8145_v4  ;;  %6294 = vmatprep.subr.bf16.mxu0 %v8150_v5  ;;  %v8222_v4 = vld [vmem:[#allocation3 + $0x354] ss:$28 sps:$4 sm:$0xff]  }
 0x5ca   :  { %6335 = vmatprep.subr.bf16.mxu1 %v8153_v8  ;;  %v8225_v5 = vld [vmem:[#allocation3 + $0x6d4] ss:$28 sps:$4 sm:$0xff]  }
 0x5cb   :  { %v8220_v8 = vld [vmem:[#allocation3 + $0x350] ss:$28 sps:$4 sm:$0xff]  }
 0x5cc   :  { %6295 = vmatpush2.bf16.msra.mxu0 %v8148_v9  ;;  %v8223_v9 = vld [vmem:[#allocation3 + $0x6d0] ss:$28 sps:$4 sm:$0xff]  }
 0x5cd   :  { %6336 = vmatpush2.bf16.msra.mxu1 %v8151_v10  ;;  %6296 = vmatprep.subr.bf16.mxu0 %v8156_v31  ;;  %v8228_v10 = vld [vmem:[#allocation3 + $0x31c] ss:$28 sps:$4 sm:$0xff]  }
 0x5ce   :  { %6337 = vmatprep.subr.bf16.mxu1 %v8159_v11  ;;  %v8231_v31 = vld [vmem:[#allocation3 + $0x69c] ss:$28 sps:$4 sm:$0xff]  }
 0x5cf   :  { %v8226_v11 = vld [vmem:[#allocation3 + $0x318] ss:$28 sps:$4 sm:$0xff]  }
 0x5d0   :  { %6297 = vmatpush2.bf16.msra.mxu0 %v8154_v15  ;;  %v8229_v15 = vld [vmem:[#allocation3 + $0x698] ss:$28 sps:$4 sm:$0xff]  }
 0x5d1   :  { %6338 = vmatpush2.bf16.msra.mxu1 %v8157_v34  ;;  %6298 = vmatprep.subr.bf16.mxu0 %v8162_v37  ;;  %v8234_v34 = vld [vmem:[#allocation3 + $0x2e4] ss:$28 sps:$4 sm:$0xff]  }
 0x5d2   :  { %6339 = vmatprep.subr.bf16.mxu1 %v8165_v18  ;;  %v8237_v37 = vld [vmem:[#allocation3 + $0x664] ss:$28 sps:$4 sm:$0xff]  }
 0x5d3   :  { %v8232_v18 = vld [vmem:[#allocation3 + $0x2e0] ss:$28 sps:$4 sm:$0xff]  }
 0x5d4   :  { %6299 = vmatpush2.bf16.msra.mxu0 %v8160_v41  ;;  %v8235_v41 = vld [vmem:[#allocation3 + $0x660] ss:$28 sps:$4 sm:$0xff]  }
 0x5d5   :  { %6340 = vmatpush2.bf16.msra.mxu1 %v8163_v39  ;;  %6300 = vmatprep.subr.bf16.mxu0 %v8168_v20  ;;  %v8240_v39 = vld [vmem:[#allocation3 + $0x2ac] ss:$28 sps:$4 sm:$0xff]  }
 0x5d6   :  { %6341 = vmatprep.subr.bf16.mxu1 %v8171_v16  ;;  %v8243_v20 = vld [vmem:[#allocation3 + $0x62c] ss:$28 sps:$4 sm:$0xff]  }
 0x5d7   :  { %v8238_v16 = vld [vmem:[#allocation3 + $0x2a8] ss:$28 sps:$4 sm:$0xff]  }
 0x5d8   :  { %6301 = vmatpush2.bf16.msra.mxu0 %v8166_v21  ;;  %v8241_v21 = vld [vmem:[#allocation3 + $0x628] ss:$28 sps:$4 sm:$0xff]  }
 0x5d9   :  { %6342 = vmatpush2.bf16.msra.mxu1 %v8169_v22  ;;  %6352 = vmatprep.subr.bf16.mxu0 %v8174_v25  ;;  %v8246_v22 = vld [vmem:[#allocation3 + $0x274] ss:$28 sps:$4 sm:$0xff]  }
 0x5da   :  { %6393 = vmatprep.subr.bf16.mxu1 %v8177_v19  ;;  %v8249_v25 = vld [vmem:[#allocation3 + $0x5f4] ss:$28 sps:$4 sm:$0xff]  }
 0x5db   :  { %6303 = vmatmul.mubr.bf16.vlgmr.msra.gmra.mxu0 %v9215_v24  ;;  %v8244_v19 = vld [vmem:[#allocation3 + $0x270] ss:$28 sps:$4 sm:$0xff]  }
 0x5dc   :  { %6344 = vmatmul.mubr.bf16.vlgmr.msra.gmra.mxu1 %v9229_v50  ;;  %6353 = vmatpush1.bf16.msra.mxu0 %v8172_v44  ;;  %v8247_v44 = vld [vmem:[#allocation3 + $0x5f0] ss:$28 sps:$4 sm:$0xff]  }
 0x5dd   :  { %6394 = vmatpush1.bf16.msra.mxu1 %v8175_v27  ;;  %6354 = vmatprep.subr.bf16.mxu0 %v8180_v29  ;;  %v8252_v27 = vld [vmem:[#allocation3 + $0x23c] ss:$28 sps:$4 sm:$0xff]  }
 0x5de   :  { %6395 = vmatprep.subr.bf16.mxu1 %v8183_v45  ;;  %6384 = vmatprep.mubr.bf16.mxu0 %v9187_v3  ;;  %v8255_v29 = vld [vmem:[#allocation3 + $0x5bc] ss:$28 sps:$4 sm:$0xff]  }
 0x5df   :  { %6425 = vmatprep.mubr.bf16.mxu1 %v9199_v12  ;;  %v8250_v45 = vld [vmem:[#allocation3 + $0x238] ss:$28 sps:$4 sm:$0xff]  }
 0x5e0   :  { %6355 = vmatpush1.bf16.msra.mxu0 %v8178_v30  ;;  %v8253_v30 = vld [vmem:[#allocation3 + $0x5b8] ss:$28 sps:$4 sm:$0xff]  }
 0x5e1   :  { %6396 = vmatpush1.bf16.msra.mxu1 %v8181_v32  ;;  %6356 = vmatprep.subr.bf16.mxu0 %v8186_v35  ;;  %v8258_v32 = vld [vmem:[#allocation3 + $0x204] ss:$28 sps:$4 sm:$0xff]  }
 0x5e2   :  { %6397 = vmatprep.subr.bf16.mxu1 %v8189_v36  ;;  %v8261_v35 = vld [vmem:[#allocation3 + $0x584] ss:$28 sps:$4 sm:$0xff]  }
 0x5e3   :  { %v8256_v36 = vld [vmem:[#allocation3 + $0x200] ss:$28 sps:$4 sm:$0xff]  }
 0x5e4   :  { %6357 = vmatpush1.bf16.msra.mxu0 %v8184_v40  ;;  %v8259_v40 = vld [vmem:[#allocation3 + $0x580] ss:$28 sps:$4 sm:$0xff]  }
 0x5e5   :  { %6398 = vmatpush1.bf16.msra.mxu1 %v8187_v46  ;;  %6358 = vmatprep.subr.bf16.mxu0 %v8192_v47  ;;  %v8264_v46 = vld [vmem:[#allocation3 + $0x1cc] ss:$28 sps:$4 sm:$0xff]  }
 0x5e6   :  { %6399 = vmatprep.subr.bf16.mxu1 %v8195_v48  ;;  %v8267_v47 = vld [vmem:[#allocation3 + $0x54c] ss:$28 sps:$4 sm:$0xff]  }
 0x5e7   :  { %v8262_v48 = vld [vmem:[#allocation3 + $0x1c8] ss:$28 sps:$4 sm:$0xff]  }
 0x5e8   :  { %6359 = vmatpush1.bf16.msra.mxu0 %v8190_v13  ;;  %v8265_v13 = vld [vmem:[#allocation3 + $0x548] ss:$28 sps:$4 sm:$0xff]  }
 0x5e9   :  { %6400 = vmatpush1.bf16.msra.mxu1 %v8193_v28  ;;  %6360 = vmatprep.subr.bf16.mxu0 %v8198_v49  ;;  %v8270_v28 = vld [vmem:[#allocation3 + $0x894] ss:$28 sps:$4 sm:$0xff]  }
 0x5ea   :  { %6401 = vmatprep.subr.bf16.mxu1 %v8201_v51  ;;  %v8273_v49 = vld [vmem:[#allocation3 + $0xc14] ss:$28 sps:$4 sm:$0xff]  }
 0x5eb   :  { %v8268_v51 = vld [vmem:[#allocation3 + $0x890] ss:$28 sps:$4 sm:$0xff]  }
 0x5ec   :  { %6361 = vmatpush1.bf16.msra.mxu0 %v8196_v52  ;;  %v8271_v52 = vld [vmem:[#allocation3 + $0xc10] ss:$28 sps:$4 sm:$0xff]  }
 0x5ed   :  { %6402 = vmatpush1.bf16.msra.mxu1 %v8199_v42  ;;  %6362 = vmatprep.subr.bf16.mxu0 %v8204_v43  ;;  %v8276_v42 = vld [vmem:[#allocation3 + $0x85c] ss:$28 sps:$4 sm:$0xff]  }
 0x5ee   :  { %6403 = vmatprep.subr.bf16.mxu1 %v8207_v33  ;;  %v8279_v43 = vld [vmem:[#allocation3 + $0xbdc] ss:$28 sps:$4 sm:$0xff]  }
 0x5ef   :  { %v8274_v33 = vld [vmem:[#allocation3 + $0x858] ss:$28 sps:$4 sm:$0xff]  }
 0x5f0   :  { %6363 = vmatpush1.bf16.msra.mxu0 %v8202_v54  ;;  %v8277_v54 = vld [vmem:[#allocation3 + $0xbd8] ss:$28 sps:$4 sm:$0xff]  }
 0x5f1   :  { %6404 = vmatpush1.bf16.msra.mxu1 %v8205_v55  ;;  %6364 = vmatprep.subr.bf16.mxu0 %v8210_v56  ;;  %v8282_v55 = vld [vmem:[#allocation3 + $0x824] ss:$28 sps:$4 sm:$0xff]  }
 0x5f2   :  { %6405 = vmatprep.subr.bf16.mxu1 %v8213_v57  ;;  %v8285_v56 = vld [vmem:[#allocation3 + $0xba4] ss:$28 sps:$4 sm:$0xff]  }
 0x5f3   :  { %v8280_v57 = vld [vmem:[#allocation3 + $0x820] ss:$28 sps:$4 sm:$0xff]  }
 0x5f4   :  { %6365 = vmatpush1.bf16.msra.mxu0 %v8208_v58  ;;  %v8283_v58 = vld [vmem:[#allocation3 + $0xba0] ss:$28 sps:$4 sm:$0xff]  }
 0x5f5   :  { %6406 = vmatpush1.bf16.msra.mxu1 %v8211_v59  ;;  %6366 = vmatprep.subr.bf16.mxu0 %v8216_v60  ;;  %v8288_v59 = vld [vmem:[#allocation3 + $0x7ec] ss:$28 sps:$4 sm:$0xff]  }
 0x5f6   :  { %6407 = vmatprep.subr.bf16.mxu1 %v8219_v61  ;;  %v8291_v60 = vld [vmem:[#allocation3 + $0xb6c] ss:$28 sps:$4 sm:$0xff]  }
 0x5f7   :  { %v8286_v61 = vld [vmem:[#allocation3 + $0x7e8] ss:$28 sps:$4 sm:$0xff]  }
 0x5f8   :  { %6367 = vmatpush1.bf16.msra.mxu0 %v8214_v0  ;;  %v8289_v0 = vld [vmem:[#allocation3 + $0xb68] ss:$28 sps:$4 sm:$0xff]  }
 0x5f9   :  { %6408 = vmatpush1.bf16.msra.mxu1 %v8217_v1  ;;  %6368 = vmatprep.subr.bf16.mxu0 %v8222_v4  ;;  %v8294_v1 = vld [vmem:[#allocation3 + $0x7b4] ss:$28 sps:$4 sm:$0xff]  }
 0x5fa   :  { %6409 = vmatprep.subr.bf16.mxu1 %v8225_v5  ;;  %v8297_v4 = vld [vmem:[#allocation3 + $0xb34] ss:$28 sps:$4 sm:$0xff]  }
 0x5fb   :  { %v8292_v5 = vld [vmem:[#allocation3 + $0x7b0] ss:$28 sps:$4 sm:$0xff]  }
 0x5fc   :  { %6369 = vmatpush2.bf16.msra.mxu0 %v8220_v8  ;;  %v8295_v8 = vld [vmem:[#allocation3 + $0xb30] ss:$28 sps:$4 sm:$0xff]  }
 0x5fd   :  { %6410 = vmatpush2.bf16.msra.mxu1 %v8223_v9  ;;  %6370 = vmatprep.subr.bf16.mxu0 %v8228_v10  ;;  %v8300_v9 = vld [vmem:[#allocation3 + $0x77c] ss:$28 sps:$4 sm:$0xff]  }
 0x5fe   :  { %6411 = vmatprep.subr.bf16.mxu1 %v8231_v31  ;;  %v8303_v10 = vld [vmem:[#allocation3 + $0xafc] ss:$28 sps:$4 sm:$0xff]  }
 0x5ff   :  { %v8298_v31 = vld [vmem:[#allocation3 + $0x778] ss:$28 sps:$4 sm:$0xff]  }
 0x600   :  { %6371 = vmatpush2.bf16.msra.mxu0 %v8226_v11  ;;  %v8301_v11 = vld [vmem:[#allocation3 + $0xaf8] ss:$28 sps:$4 sm:$0xff]  }
 0x601   :  { %6412 = vmatpush2.bf16.msra.mxu1 %v8229_v15  ;;  %6372 = vmatprep.subr.bf16.mxu0 %v8234_v34  ;;  %v8306_v15 = vld [vmem:[#allocation3 + $0x744] ss:$28 sps:$4 sm:$0xff]  }
 0x602   :  { %6413 = vmatprep.subr.bf16.mxu1 %v8237_v37  ;;  %v8309_v34 = vld [vmem:[#allocation3 + $0xac4] ss:$28 sps:$4 sm:$0xff]  }
 0x603   :  { %v8304_v37 = vld [vmem:[#allocation3 + $0x740] ss:$28 sps:$4 sm:$0xff]  }
 0x604   :  { %6373 = vmatpush2.bf16.msra.mxu0 %v8232_v18  ;;  %v8307_v18 = vld [vmem:[#allocation3 + $0xac0] ss:$28 sps:$4 sm:$0xff]  }
 0x605   :  { %6414 = vmatpush2.bf16.msra.mxu1 %v8235_v41  ;;  %6374 = vmatprep.subr.bf16.mxu0 %v8240_v39  ;;  %v8312_v41 = vld [vmem:[#allocation3 + $0x70c] ss:$28 sps:$4 sm:$0xff]  }
 0x606   :  { %6415 = vmatprep.subr.bf16.mxu1 %v8243_v20  ;;  %v8315_v39 = vld [vmem:[#allocation3 + $0xa8c] ss:$28 sps:$4 sm:$0xff]  }
 0x607   :  { %v8310_v20 = vld [vmem:[#allocation3 + $0x708] ss:$28 sps:$4 sm:$0xff]  }
 0x608   :  { %6375 = vmatpush2.bf16.msra.mxu0 %v8238_v16  ;;  %v8313_v16 = vld [vmem:[#allocation3 + $0xa88] ss:$28 sps:$4 sm:$0xff]  }
 0x609   :  { %6416 = vmatpush2.bf16.msra.mxu1 %v8241_v21  ;;  %6376 = vmatprep.subr.bf16.mxu0 %v8246_v22  ;;  %v8318_v21 = vld [vmem:[#allocation3 + $0xa54] ss:$28 sps:$4 sm:$0xff]  }
 0x60a   :  { %6417 = vmatprep.subr.bf16.mxu1 %v8249_v25  ;;  %v8321_v22 = vld [vmem:[#allocation3 + $0xdd4] ss:$28 sps:$4 sm:$0xff]  }
 0x60b   :  { %v8316_v25 = vld [vmem:[#allocation3 + $0xa50] ss:$28 sps:$4 sm:$0xff]  }
 0x60c   :  { %6377 = vmatpush2.bf16.msra.mxu0 %v8244_v19  ;;  %v8319_v19 = vld [vmem:[#allocation3 + $0xdd0] ss:$28 sps:$4 sm:$0xff]  }
 0x60d   :  { %6418 = vmatpush2.bf16.msra.mxu1 %v8247_v44  ;;  %6378 = vmatprep.subr.bf16.mxu0 %v8252_v27  ;;  %v8324_v44 = vld [vmem:[#allocation3 + $0xa1c] ss:$28 sps:$4 sm:$0xff]  }
 0x60e   :  { %6419 = vmatprep.subr.bf16.mxu1 %v8255_v29  ;;  %v8327_v27 = vld [vmem:[#allocation3 + $0xd9c] ss:$28 sps:$4 sm:$0xff]  }
 0x60f   :  { %v8322_v29 = vld [vmem:[#allocation3 + $0xa18] ss:$28 sps:$4 sm:$0xff]  }
 0x610   :  { %6379 = vmatpush2.bf16.msra.mxu0 %v8250_v45  ;;  %v8325_v45 = vld [vmem:[#allocation3 + $0xd98] ss:$28 sps:$4 sm:$0xff]  }
 0x611   :  { %6420 = vmatpush2.bf16.msra.mxu1 %v8253_v30  ;;  %6380 = vmatprep.subr.bf16.mxu0 %v8258_v32  ;;  %v8330_v30 = vld [vmem:[#allocation3 + $0x9e4] ss:$28 sps:$4 sm:$0xff]  }
 0x612   :  { %6421 = vmatprep.subr.bf16.mxu1 %v8261_v35  ;;  %v8333_v32 = vld [vmem:[#allocation3 + $0xd64] ss:$28 sps:$4 sm:$0xff]  }
 0x613   :  { %v8328_v35 = vld [vmem:[#allocation3 + $0x9e0] ss:$28 sps:$4 sm:$0xff]  }
 0x614   :  { %6381 = vmatpush2.bf16.msra.mxu0 %v8256_v36  ;;  %v8331_v36 = vld [vmem:[#allocation3 + $0xd60] ss:$28 sps:$4 sm:$0xff]  }
 0x615   :  { %6422 = vmatpush2.bf16.msra.mxu1 %v8259_v40  ;;  %6382 = vmatprep.subr.bf16.mxu0 %v8264_v46  ;;  %v8336_v40 = vld [vmem:[#allocation3 + $0x9ac] ss:$28 sps:$4 sm:$0xff]  }
 0x616   :  { %6423 = vmatprep.subr.bf16.mxu1 %v8267_v47  ;;  %v8339_v46 = vld [vmem:[#allocation3 + $0xd2c] ss:$28 sps:$4 sm:$0xff]  }
 0x617   :  { %v8334_v47 = vld [vmem:[#allocation3 + $0x9a8] ss:$28 sps:$4 sm:$0xff]  }
 0x618   :  { %6383 = vmatpush2.bf16.msra.mxu0 %v8262_v48  ;;  %v8337_v48 = vld [vmem:[#allocation3 + $0xd28] ss:$28 sps:$4 sm:$0xff]  }
 0x619   :  { %6424 = vmatpush2.bf16.msra.mxu1 %v8265_v13  ;;  %6434 = vmatprep.subr.bf16.mxu0 %v8270_v28  ;;  %v8342_v13 = vld [vmem:[#allocation3 + $0x974] ss:$28 sps:$4 sm:$0xff]  }
 0x61a   :  { %6475 = vmatprep.subr.bf16.mxu1 %v8273_v49  ;;  %v8345_v28 = vld [vmem:[#allocation3 + $0xcf4] ss:$28 sps:$4 sm:$0xff]  }
 0x61b   :  { %6385 = vmatmul.mubr.bf16.vlgmr.msra.gmra.mxu0 %v9185_v63  ;;  %v8340_v49 = vld [vmem:[#allocation3 + $0x970] ss:$28 sps:$4 sm:$0xff]  }
 0x61c   :  { %6426 = vmatmul.mubr.bf16.vlgmr.msra.gmra.mxu1 %v9197_v38  ;;  %6435 = vmatpush1.bf16.msra.mxu0 %v8268_v51  ;;  %v8343_v51 = vld [vmem:[#allocation3 + $0xcf0] ss:$28 sps:$4 sm:$0xff]  }
 0x61d   :  { %6476 = vmatpush1.bf16.msra.mxu1 %v8271_v52  ;;  %6436 = vmatprep.subr.bf16.mxu0 %v8276_v42  ;;  %v8348_v52 = vld [vmem:[#allocation3 + $0x93c] ss:$28 sps:$4 sm:$0xff]  }
 0x61e   :  { %6477 = vmatprep.subr.bf16.mxu1 %v8279_v43  ;;  %6466 = vmatprep.mubr.bf16.mxu0 %v9217_v26  ;;  %v8351_v42 = vld [vmem:[#allocation3 + $0xcbc] ss:$28 sps:$4 sm:$0xff]  }
 0x61f   :  { %6507 = vmatprep.mubr.bf16.mxu1 %v9231_v53  ;;  %v8346_v43 = vld [vmem:[#allocation3 + $0x938] ss:$28 sps:$4 sm:$0xff]  }
 0x620   :  { %6437 = vmatpush1.bf16.msra.mxu0 %v8274_v33  ;;  %v8349_v33 = vld [vmem:[#allocation3 + $0xcb8] ss:$28 sps:$4 sm:$0xff]  }
 0x621   :  { %6478 = vmatpush1.bf16.msra.mxu1 %v8277_v54  ;;  %6438 = vmatprep.subr.bf16.mxu0 %v8282_v55  ;;  %v8354_v54 = vld [vmem:[#allocation3 + $0x904] ss:$28 sps:$4 sm:$0xff]  }
 0x622   :  { %6479 = vmatprep.subr.bf16.mxu1 %v8285_v56  ;;  %v8357_v55 = vld [vmem:[#allocation3 + $0xc84] ss:$28 sps:$4 sm:$0xff]  }
 0x623   :  { %v8352_v56 = vld [vmem:[#allocation3 + $0x900] ss:$28 sps:$4 sm:$0xff]  }
 0x624   :  { %6439 = vmatpush1.bf16.msra.mxu0 %v8280_v57  ;;  %v8355_v57 = vld [vmem:[#allocation3 + $0xc80] ss:$28 sps:$4 sm:$0xff]  }
 0x625   :  { %6480 = vmatpush1.bf16.msra.mxu1 %v8283_v58  ;;  %6440 = vmatprep.subr.bf16.mxu0 %v8288_v59  ;;  %v8360_v58 = vld [vmem:[#allocation3 + $0x8cc] ss:$28 sps:$4 sm:$0xff]  }
 0x626   :  { %6481 = vmatprep.subr.bf16.mxu1 %v8291_v60  ;;  %v8363_v59 = vld [vmem:[#allocation3 + $0xc4c] ss:$28 sps:$4 sm:$0xff]  }
 0x627   :  { %v8358_v60 = vld [vmem:[#allocation3 + $0x8c8] ss:$28 sps:$4 sm:$0xff]  }
 0x628   :  { %6441 = vmatpush1.bf16.msra.mxu0 %v8286_v61  ;;  %v8361_v61 = vld [vmem:[#allocation3 + $0xc48] ss:$28 sps:$4 sm:$0xff]  }
 0x629   :  { %6482 = vmatpush1.bf16.msra.mxu1 %v8289_v0  ;;  %6442 = vmatprep.subr.bf16.mxu0 %v8294_v1  ;;  %v8366_v0 = vld [vmem:[#allocation3 + $0x19c] ss:$28 sps:$4 sm:$0xff]  }
 0x62a   :  { %6483 = vmatprep.subr.bf16.mxu1 %v8297_v4  ;;  %v8369_v1 = vld [vmem:[#allocation3 + $0x51c] ss:$28 sps:$4 sm:$0xff]  }
 0x62b   :  { %v8364_v4 = vld [vmem:[#allocation3 + $0x198] ss:$28 sps:$4 sm:$0xff]  }
 0x62c   :  { %6443 = vmatpush1.bf16.msra.mxu0 %v8292_v5  ;;  %v8367_v5 = vld [vmem:[#allocation3 + $0x518] ss:$28 sps:$4 sm:$0xff]  }
 0x62d   :  { %6484 = vmatpush1.bf16.msra.mxu1 %v8295_v8  ;;  %6444 = vmatprep.subr.bf16.mxu0 %v8300_v9  ;;  %v8372_v8 = vld [vmem:[#allocation3 + $0x164] ss:$28 sps:$4 sm:$0xff]  }
 0x62e   :  { %6485 = vmatprep.subr.bf16.mxu1 %v8303_v10  ;;  %v8375_v9 = vld [vmem:[#allocation3 + $0x4e4] ss:$28 sps:$4 sm:$0xff]  }
 0x62f   :  { %v8370_v10 = vld [vmem:[#allocation3 + $0x160] ss:$28 sps:$4 sm:$0xff]  }
 0x630   :  { %6445 = vmatpush1.bf16.msra.mxu0 %v8298_v31 }
 0x631   :  { %6486 = vmatpush1.bf16.msra.mxu1 %v8301_v11  ;;  %6446 = vmatprep.subr.bf16.mxu0 %v8306_v15  ;;  %v8373_v15 = vld [vmem:[#allocation3 + $0x4e0] ss:$28 sps:$4 sm:$0xff]  }
 0x632   :  { %6487 = vmatprep.subr.bf16.mxu1 %v8309_v34  ;;  %v8378_v34 = vld [vmem:[#allocation3 + $0x12c] ss:$28 sps:$4 sm:$0xff]  }
 0x634   :  { %6447 = vmatpush1.bf16.msra.mxu0 %v8304_v37 }
 0x635   :  { %6488 = vmatpush1.bf16.msra.mxu1 %v8307_v18  ;;  %6448 = vmatprep.subr.bf16.mxu0 %v8312_v41  ;;  %v8381_v41 = vld [vmem:[#allocation3 + $0x4ac] ss:$28 sps:$4 sm:$0xff]  }
 0x636   :  { %6489 = vmatprep.subr.bf16.mxu1 %v8315_v39  ;;  %v8376_v39 = vld [vmem:[#allocation3 + $0x128] ss:$28 sps:$4 sm:$0xff]  }
 0x638   :  { %6449 = vmatpush1.bf16.msra.mxu0 %v8310_v20 }
 0x639   :  { %6490 = vmatpush1.bf16.msra.mxu1 %v8313_v16  ;;  %6450 = vmatprep.subr.bf16.mxu0 %v8318_v21  ;;  %v8379_v21 = vld [vmem:[#allocation3 + $0x4a8] ss:$28 sps:$4 sm:$0xff]  }
 0x63a   :  { %6491 = vmatprep.subr.bf16.mxu1 %v8321_v22  ;;  %v8384_v22 = vld [vmem:[#allocation3 + $0xf4] ss:$28 sps:$4 sm:$0xff]  }
 0x63c   :  { %6451 = vmatpush2.bf16.msra.mxu0 %v8316_v25 }
 0x63d   :  { %6492 = vmatpush2.bf16.msra.mxu1 %v8319_v19  ;;  %6452 = vmatprep.subr.bf16.mxu0 %v8324_v44  ;;  %v8387_v44 = vld [vmem:[#allocation3 + $0x474] ss:$28 sps:$4 sm:$0xff]  }
 0x63e   :  { %6493 = vmatprep.subr.bf16.mxu1 %v8327_v27  ;;  %v8382_v27 = vld [vmem:[#allocation3 + $0xf0] ss:$28 sps:$4 sm:$0xff]  }
 0x640   :  { %6453 = vmatpush2.bf16.msra.mxu0 %v8322_v29  ;;  %v8385_v29 = vld [vmem:[#allocation3 + $0x470] ss:$28 sps:$4 sm:$0xff]  }
 0x641   :  { %6494 = vmatpush2.bf16.msra.mxu1 %v8325_v45  ;;  %6454 = vmatprep.subr.bf16.mxu0 %v8330_v30  ;;  %v8390_v45 = vld [vmem:[#allocation3 + $0xbc] ss:$28 sps:$4 sm:$0xff]  }
 0x642   :  { %6495 = vmatprep.subr.bf16.mxu1 %v8333_v32  ;;  %v8393_v30 = vld [vmem:[#allocation3 + $0x43c] ss:$28 sps:$4 sm:$0xff]  }
 0x643   :  { %v8388_v32 = vld [vmem:[#allocation3 + $0xb8] ss:$28 sps:$4 sm:$0xff]  }
 0x644   :  { %6455 = vmatpush2.bf16.msra.mxu0 %v8328_v35  ;;  %v8391_v35 = vld [vmem:[#allocation3 + $0x438] ss:$28 sps:$4 sm:$0xff]  }
 0x645   :  { %6496 = vmatpush2.bf16.msra.mxu1 %v8331_v36  ;;  %6456 = vmatprep.subr.bf16.mxu0 %v8336_v40  ;;  %v8396_v36 = vld [vmem:[#allocation3 + $0x84] ss:$28 sps:$4 sm:$0xff]  }
 0x646   :  { %6497 = vmatprep.subr.bf16.mxu1 %v8339_v46  ;;  %v8399_v40 = vld [vmem:[#allocation3 + $0x404] ss:$28 sps:$4 sm:$0xff]  }
 0x647   :  { %v8394_v46 = vld [vmem:[#allocation3 + $0x80] ss:$28 sps:$4 sm:$0xff]  }
 0x648   :  { %6457 = vmatpush2.bf16.msra.mxu0 %v8334_v47  ;;  %v8397_v47 = vld [vmem:[#allocation3 + $0x400] ss:$28 sps:$4 sm:$0xff]  }
 0x649   :  { %6498 = vmatpush2.bf16.msra.mxu1 %v8337_v48  ;;  %6458 = vmatprep.subr.bf16.mxu0 %v8342_v13  ;;  %v8402_v48 = vld [vmem:[#allocation3 + $0x4c] ss:$28 sps:$4 sm:$0xff]  }
 0x64a   :  { %6499 = vmatprep.subr.bf16.mxu1 %v8345_v28  ;;  %v8405_v13 = vld [vmem:[#allocation3 + $0x3cc] ss:$28 sps:$4 sm:$0xff]  }
 0x64b   :  { %v8400_v28 = vld [vmem:[#allocation3 + $0x48] ss:$28 sps:$4 sm:$0xff]  }
 0x64c   :  { %6459 = vmatpush2.bf16.msra.mxu0 %v8340_v49  ;;  %v8403_v49 = vld [vmem:[#allocation3 + $0x3c8] ss:$28 sps:$4 sm:$0xff]  }
 0x64d   :  { %6500 = vmatpush2.bf16.msra.mxu1 %v8343_v51  ;;  %6460 = vmatprep.subr.bf16.mxu0 %v8348_v52  ;;  %v8408_v51 = vld [vmem:[#allocation3 + $0x14] ss:$28 sps:$4 sm:$0xff]  }
 0x64e   :  { %6501 = vmatprep.subr.bf16.mxu1 %v8351_v42  ;;  %v8411_v52 = vld [vmem:[#allocation3 + $0x394] ss:$28 sps:$4 sm:$0xff]  }
 0x64f   :  { %v8406_v42 = vld [vmem:[#allocation3 + $0x10] ss:$28 sps:$4 sm:$0xff]  }
 0x650   :  { %6461 = vmatpush2.bf16.msra.mxu0 %v8346_v43  ;;  %v8409_v43 = vld [vmem:[#allocation3 + $0x390] ss:$28 sps:$4 sm:$0xff]  }
 0x651   :  { %6502 = vmatpush2.bf16.msra.mxu1 %v8349_v33  ;;  %6462 = vmatprep.subr.bf16.mxu0 %v8354_v54  ;;  %v8414_v33 = vld [vmem:[#allocation3 + $0x35c] ss:$28 sps:$4 sm:$0xff]  }
 0x652   :  { %6503 = vmatprep.subr.bf16.mxu1 %v8357_v55  ;;  %v8417_v54 = vld [vmem:[#allocation3 + $0x6dc] ss:$28 sps:$4 sm:$0xff]  }
 0x653   :  { %v8412_v55 = vld [vmem:[#allocation3 + $0x358] ss:$28 sps:$4 sm:$0xff]  }
 0x654   :  { %6463 = vmatpush2.bf16.msra.mxu0 %v8352_v56  ;;  %v8415_v56 = vld [vmem:[#allocation3 + $0x6d8] ss:$28 sps:$4 sm:$0xff]  }
 0x655   :  { %6504 = vmatpush2.bf16.msra.mxu1 %v8355_v57  ;;  %6464 = vmatprep.subr.bf16.mxu0 %v8360_v58  ;;  %v8420_v57 = vld [vmem:[#allocation3 + $0x324] ss:$28 sps:$4 sm:$0xff]  }
 0x656   :  { %6505 = vmatprep.subr.bf16.mxu1 %v8363_v59  ;;  %v8423_v58 = vld [vmem:[#allocation3 + $0x6a4] ss:$28 sps:$4 sm:$0xff]  }
 0x657   :  { %v8418_v59 = vld [vmem:[#allocation3 + $0x320] ss:$28 sps:$4 sm:$0xff]  }
 0x658   :  { %6465 = vmatpush2.bf16.msra.mxu0 %v8358_v60  ;;  %v8421_v60 = vld [vmem:[#allocation3 + $0x6a0] ss:$28 sps:$4 sm:$0xff]  }
 0x659   :  { %6506 = vmatpush2.bf16.msra.mxu1 %v8361_v61  ;;  %6516 = vmatprep.subr.bf16.mxu0 %v8366_v0  ;;  %v8426_v61 = vld [vmem:[#allocation3 + $0x2ec] ss:$28 sps:$4 sm:$0xff]  }
 0x65a   :  { %6557 = vmatprep.subr.bf16.mxu1 %v8369_v1  ;;  %v8429_v0 = vld [vmem:[#allocation3 + $0x66c] ss:$28 sps:$4 sm:$0xff]  }
 0x65b   :  { %v9247_v31 = vpop.f32.mrf.mxu0  ;;  %6467 = vmatmul.mubr.bf16.vlgmr.msra.gmra.mxu0 %v9215_v24  ;;  %v8424_v1 = vld [vmem:[#allocation3 + $0x2e8] ss:$28 sps:$4 sm:$0xff]  }
 0x65c   :  { %v9249_v11 = vpop.f32.mrf.mxu1  ;;  %6508 = vmatmul.mubr.bf16.vlgmr.msra.gmra.mxu1 %v9229_v50  ;;  %6517 = vmatpush1.bf16.msra.mxu0 %v8364_v4  ;;  %v8427_v4 = vld [vmem:[#allocation3 + $0x668] ss:$28 sps:$4 sm:$0xff]  }
 0x65d   :  { %6558 = vmatpush1.bf16.msra.mxu1 %v8367_v5  ;;  %v9253_v37 = vpop.f32.mrf.mxu0  ;;  %6518 = vmatprep.subr.bf16.mxu0 %v8372_v8  ;;  %v8432_v5 = vld [vmem:[#allocation3 + $0x2b4] ss:$28 sps:$4 sm:$0xff]  }
 0x65e   :  { %v9255_v18 = vpop.f32.mrf.mxu1  ;;  %6559 = vmatprep.subr.bf16.mxu1 %v8375_v9  ;;  %6548 = vmatprep.mubr.bf16.mxu0 %v9187_v3  ;;  %v8435_v8 = vld [vmem:[#allocation3 + $0x634] ss:$28 sps:$4 sm:$0xff]  }
 0x65f   :  { %6589 = vmatprep.mubr.bf16.mxu1 %v9199_v12  ;;  %v6226_v20 = vpop.f32.mrf.mxu0  ;;  %v8430_v9 = vld [vmem:[#allocation3 + $0x2b0] ss:$28 sps:$4 sm:$0xff]  }
 0x660   :  { %v6267_v16 = vpop.f32.mrf.mxu1  ;;  %6519 = vmatpush1.bf16.msra.mxu0 %v8370_v10  ;;  %v8433_v10 = vld [vmem:[#allocation3 + $0x630] ss:$28 sps:$4 sm:$0xff]   ;;  %v8444_v20 = vld [vmem:[#allocation3 + $0x244] ss:$28 sps:$4 sm:$0xff]  }
 0x661   :  { %6560 = vmatpush1.bf16.msra.mxu1 %v8373_v15  ;;  %v6227_v25 = vpop.f32.mrf.mxu0  ;;  %6520 = vmatprep.subr.bf16.mxu0 %v8378_v34  ;;  %v8438_v15 = vld [vmem:[#allocation3 + $0x27c] ss:$28 sps:$4 sm:$0xff]   ;;  %v8447_v16 = vld [vmem:[#allocation3 + $0x5c4] ss:$28 sps:$4 sm:$0xff]  }
 0x662   :  { %v6268_v19 = vpop.f32.mrf.mxu1  ;;  %6561 = vmatprep.subr.bf16.mxu1 %v8381_v41  ;;  %v8441_v34 = vld [vmem:[#allocation3 + $0x5fc] ss:$28 sps:$4 sm:$0xff]   ;;  %v8450_v25 = vld [vmem:[#allocation3 + $0x20c] ss:$28 sps:$4 sm:$0xff]  }
 0x663   :  { %v8436_v41 = vld [vmem:[#allocation3 + $0x278] ss:$28 sps:$4 sm:$0xff]   ;;  %v9259_v19 = vld [vmem:[#allocation23] sm:$0xff] }
 0x664   :  { %6521 = vmatpush1.bf16.msra.mxu0 %v8376_v39  ;;  %v8439_v39 = vld [vmem:[#allocation3 + $0x5f8] ss:$28 sps:$4 sm:$0xff]  }
 0x665   :  { %6562 = vmatpush1.bf16.msra.mxu1 %v8379_v21  ;;  %6522 = vmatprep.subr.bf16.mxu0 %v8384_v22  ;;  %v8442_v21 = vld [vmem:[#allocation3 + $0x240] ss:$28 sps:$4 sm:$0xff]  }
 0x666   :  { %6563 = vmatprep.subr.bf16.mxu1 %v8387_v44  ;;  %v8445_v22 = vld [vmem:[#allocation3 + $0x5c0] ss:$28 sps:$4 sm:$0xff]   ;;  %v8453_v44 = vld [vmem:[#allocation3 + $0x58c] ss:$28 sps:$4 sm:$0xff]  }
 0x668   :  { %6523 = vmatpush1.bf16.msra.mxu0 %v8382_v27  ;;  %v8448_v27 = vld [vmem:[#allocation3 + $0x208] ss:$28 sps:$4 sm:$0xff]  }
 0x669   :  { %6564 = vmatpush1.bf16.msra.mxu1 %v8385_v29  ;;  %6524 = vmatprep.subr.bf16.mxu0 %v8390_v45  ;;  %v8451_v29 = vld [vmem:[#allocation3 + $0x588] ss:$28 sps:$4 sm:$0xff]   ;;  %v8456_v45 = vld [vmem:[#allocation3 + $0x1d4] ss:$28 sps:$4 sm:$0xff]  }
 0x66a   :  { %6565 = vmatprep.subr.bf16.mxu1 %v8393_v30  ;;  %v8459_v30 = vld [vmem:[#allocation3 + $0x554] ss:$28 sps:$4 sm:$0xff]  }
 0x66c   :  { %6525 = vmatpush1.bf16.msra.mxu0 %v8388_v32  ;;  %v3852_v32 = vrot.slane %v9259_v19, %v9092_v14  ;;  %v8468_v14 = vld [vmem:[#allocation3 + $0x864] ss:$28 sps:$4 sm:$0xff]  }
 0x66d   :  { %6566 = vmatpush1.bf16.msra.mxu1 %v8391_v35  ;;  %6526 = vmatprep.subr.bf16.mxu0 %v8396_v36  ;;  %v8454_v35 = vld [vmem:[#allocation3 + $0x1d0] ss:$28 sps:$4 sm:$0xff]  }
 0x66e   :  { %6567 = vmatprep.subr.bf16.mxu1 %v8399_v40  ;;  %v8457_v36 = vld [vmem:[#allocation3 + $0x550] ss:$28 sps:$4 sm:$0xff]   ;;  %v3856_v40 = vrot.slane %v9259_v19, %v9095_v17 }
 0x670   :  { %6527 = vmatpush1.bf16.msra.mxu0 %v8394_v46  ;;  %v8462_v46 = vld [vmem:[#allocation3 + $0x89c] ss:$28 sps:$4 sm:$0xff]  }
 0x671   :  { %6568 = vmatpush1.bf16.msra.mxu1 %v8397_v47  ;;  %6528 = vmatprep.subr.bf16.mxu0 %v8402_v48  ;;  %v8465_v47 = vld [vmem:[#allocation3 + $0xc1c] ss:$28 sps:$4 sm:$0xff]   ;;  %v6223_v48 = vadd.f32 %v9247_v31, %v3852_v32  ;;  %v8504_v32 = vld [vmem:[#allocation3 + $0x714] ss:$28 sps:$4 sm:$0xff]  }
 0x672   :  { %6569 = vmatprep.subr.bf16.mxu1 %v8405_v13  ;;  %v6225_v13 = vadd.f32 %v9253_v37, %v3856_v40  ;;  %v8466_v37 = vld [vmem:[#allocation3 + $0x860] ss:$28 sps:$4 sm:$0xff]   ;;  %v8505_v40 = vld [vmem:[#allocation3 + $0xa90] ss:$28 sps:$4 sm:$0xff]  }
 0x673   :  { %v6264_v17 = vadd.f32 %v9249_v11, %v6223_v48  ;;  %v8508_v48 = vld [vmem:[#allocation3 + $0xa58] ss:$28 sps:$4 sm:$0xff]  }
 0x674   :  { %6529 = vmatpush1.bf16.msra.mxu0 %v8400_v28  ;;  %v8460_v28 = vld [vmem:[#allocation3 + $0x898] ss:$28 sps:$4 sm:$0xff]   ;;  %v6266_v31 = vadd.f32 %v9255_v18, %v6225_v13 }
 0x675   :  { %6570 = vmatpush1.bf16.msra.mxu1 %v8403_v49  ;;  %6530 = vmatprep.subr.bf16.mxu0 %v8408_v51  ;;  %v8463_v49 = vld [vmem:[#allocation3 + $0xc18] ss:$28 sps:$4 sm:$0xff]   ;;  %v8471_v51 = vld [vmem:[#allocation3 + $0xbe4] ss:$28 sps:$4 sm:$0xff]  }
 0x676   :  { %6571 = vmatprep.subr.bf16.mxu1 %v8411_v52  ;;  %v8511_v13 = vld [vmem:[#allocation3 + $0xdd8] ss:$28 sps:$4 sm:$0xff]  }
 0x678   :  { %6531 = vmatpush1.bf16.msra.mxu0 %v8406_v42 }
 0x679   :  { %6572 = vmatpush1.bf16.msra.mxu1 %v8409_v43  ;;  %6532 = vmatprep.subr.bf16.mxu0 %v8414_v33  ;;  %v8469_v33 = vld [vmem:[#allocation3 + $0xbe0] ss:$28 sps:$4 sm:$0xff]  }
 0x67a   :  { %6573 = vmatprep.subr.bf16.mxu1 %v8417_v54 }
 0x67c   :  { %6533 = vmatpush2.bf16.msra.mxu0 %v8412_v55 }
 0x67d   :  { %6574 = vmatpush2.bf16.msra.mxu1 %v8415_v56  ;;  %6534 = vmatprep.subr.bf16.mxu0 %v8420_v57  ;;  %v8474_v56 = vld [vmem:[#allocation3 + $0x82c] ss:$28 sps:$4 sm:$0xff]  }
 0x67e   :  { %6575 = vmatprep.subr.bf16.mxu1 %v8423_v58  ;;  %v8477_v57 = vld [vmem:[#allocation3 + $0xbac] ss:$28 sps:$4 sm:$0xff]  }
 0x680   :  { %6535 = vmatpush2.bf16.msra.mxu0 %v8418_v59 }
 0x681   :  { %6576 = vmatpush2.bf16.msra.mxu1 %v8421_v60  ;;  %6536 = vmatprep.subr.bf16.mxu0 %v8426_v61  ;;  %v8472_v61 = vld [vmem:[#allocation3 + $0x828] ss:$28 sps:$4 sm:$0xff]  }
 0x682   :  { %6577 = vmatprep.subr.bf16.mxu1 %v8429_v0  ;;  %v8475_v0 = vld [vmem:[#allocation3 + $0xba8] ss:$28 sps:$4 sm:$0xff]  }
 0x684   :  { %6537 = vmatpush2.bf16.msra.mxu0 %v8424_v1 }
 0x685   :  { %6578 = vmatpush2.bf16.msra.mxu1 %v8427_v4  ;;  %6538 = vmatprep.subr.bf16.mxu0 %v8432_v5  ;;  %v8480_v5 = vld [vmem:[#allocation3 + $0x7f4] ss:$28 sps:$4 sm:$0xff]  }
 0x686   :  { %6579 = vmatprep.subr.bf16.mxu1 %v8435_v8  ;;  %v8483_v8 = vld [vmem:[#allocation3 + $0xb74] ss:$28 sps:$4 sm:$0xff]  }
 0x688   :  { %6539 = vmatpush2.bf16.msra.mxu0 %v8430_v9  ;;  %v8478_v9 = vld [vmem:[#allocation3 + $0x7f0] ss:$28 sps:$4 sm:$0xff]  }
 0x689   :  { %6580 = vmatpush2.bf16.msra.mxu1 %v8433_v10  ;;  %6540 = vmatprep.subr.bf16.mxu0 %v8438_v15  ;;  %v8481_v10 = vld [vmem:[#allocation3 + $0xb70] ss:$28 sps:$4 sm:$0xff]   ;;  %v8486_v15 = vld [vmem:[#allocation3 + $0x7bc] ss:$28 sps:$4 sm:$0xff]  }
 0x68a   :  { %6581 = vmatprep.subr.bf16.mxu1 %v8441_v34  ;;  %v8489_v34 = vld [vmem:[#allocation3 + $0xb3c] ss:$28 sps:$4 sm:$0xff]  }
 0x68c   :  { %6541 = vmatpush2.bf16.msra.mxu0 %v8436_v41  ;;  %v8484_v41 = vld [vmem:[#allocation3 + $0x7b8] ss:$28 sps:$4 sm:$0xff]  }
 0x68d   :  { %6582 = vmatpush2.bf16.msra.mxu1 %v8439_v39  ;;  %6542 = vmatprep.subr.bf16.mxu0 %v8444_v20  ;;  %v8487_v39 = vld [vmem:[#allocation3 + $0xb38] ss:$28 sps:$4 sm:$0xff]   ;;  %v8492_v20 = vld [vmem:[#allocation3 + $0x784] ss:$28 sps:$4 sm:$0xff]  }
 0x68e   :  { %6583 = vmatprep.subr.bf16.mxu1 %v8447_v16  ;;  %v8495_v16 = vld [vmem:[#allocation3 + $0xb04] ss:$28 sps:$4 sm:$0xff]  }
 0x690   :  { %6543 = vmatpush2.bf16.msra.mxu0 %v8442_v21  ;;  %v8490_v21 = vld [vmem:[#allocation3 + $0x780] ss:$28 sps:$4 sm:$0xff]  }
 0x691   :  { %6584 = vmatpush2.bf16.msra.mxu1 %v8445_v22  ;;  %6544 = vmatprep.subr.bf16.mxu0 %v8450_v25  ;;  %v8493_v22 = vld [vmem:[#allocation3 + $0xb00] ss:$28 sps:$4 sm:$0xff]  }
 0x692   :  { %6585 = vmatprep.subr.bf16.mxu1 %v8453_v44  ;;  %v8498_v44 = vld [vmem:[#allocation3 + $0x74c] ss:$28 sps:$4 sm:$0xff]  }
 0x694   :  { %6545 = vmatpush2.bf16.msra.mxu0 %v8448_v27  ;;  %v8501_v27 = vld [vmem:[#allocation3 + $0xacc] ss:$28 sps:$4 sm:$0xff]  }
 0x695   :  { %6586 = vmatpush2.bf16.msra.mxu1 %v8451_v29  ;;  %6546 = vmatprep.subr.bf16.mxu0 %v8456_v45  ;;  %v8496_v45 = vld [vmem:[#allocation3 + $0x748] ss:$28 sps:$4 sm:$0xff]  }
 0x696   :  { %6587 = vmatprep.subr.bf16.mxu1 %v8459_v30  ;;  %v8499_v30 = vld [vmem:[#allocation3 + $0xac8] ss:$28 sps:$4 sm:$0xff]  }
 0x698   :  { %6547 = vmatpush2.bf16.msra.mxu0 %v8454_v35  ;;  %v8507_v35 = vld [vmem:[#allocation3 + $0xa94] ss:$28 sps:$4 sm:$0xff]  }
 0x699   :  { %6588 = vmatpush2.bf16.msra.mxu1 %v8457_v36  ;;  %6598 = vmatprep.subr.bf16.mxu0 %v8462_v46  ;;  %v8502_v36 = vld [vmem:[#allocation3 + $0x710] ss:$28 sps:$4 sm:$0xff]   ;;  %v8510_v46 = vld [vmem:[#allocation3 + $0xa5c] ss:$28 sps:$4 sm:$0xff]  }
 0x69a   :  { %6639 = vmatprep.subr.bf16.mxu1 %v8465_v47  ;;  %v8513_v47 = vld [vmem:[#allocation3 + $0xddc] ss:$28 sps:$4 sm:$0xff]  }
 0x69b   :  { %v6304_v52 = vpop.f32.mrf.mxu0  ;;  %6549 = vmatmul.mubr.bf16.vlgmr.msra.gmra.mxu0 %v9185_v63 }
 0x69c   :  { %v6345_v42 = vpop.f32.mrf.mxu1  ;;  %6590 = vmatmul.mubr.bf16.vlgmr.msra.gmra.mxu1 %v9197_v38  ;;  %v6305_v43 = vadd.f32 %v6304_v52, %v6264_v17  ;;  %6599 = vmatpush1.bf16.msra.mxu0 %v8460_v28  ;;  %v8516_v28 = vld [vmem:[#allocation3 + $0xa24] ss:$28 sps:$4 sm:$0xff]   ;;  %v8522_v17 = vld [vmem:[#allocation3 + $0x9ec] ss:$28 sps:$4 sm:$0xff]  }
 0x69d   :  { %6640 = vmatpush1.bf16.msra.mxu1 %v8463_v49  ;;  %v6306_v54 = vpop.f32.mrf.mxu0  ;;  %6600 = vmatprep.subr.bf16.mxu0 %v8468_v14  ;;  %v8519_v49 = vld [vmem:[#allocation3 + $0xda4] ss:$28 sps:$4 sm:$0xff]   ;;  %v8525_v52 = vld [vmem:[#allocation3 + $0xd6c] ss:$28 sps:$4 sm:$0xff]  }
 0x69e   :  { %v6347_v55 = vpop.f32.mrf.mxu1  ;;  %6641 = vmatprep.subr.bf16.mxu1 %v8471_v51  ;;  %v6346_v11 = vadd.f32 %v6345_v42, %v6305_v43  ;;  %v6307_v58 = vadd.f32 %v6306_v54, %v6266_v31  ;;  %6630 = vmatprep.mubr.bf16.mxu0 %v9217_v26  ;;  %v8514_v14 = vld [vmem:[#allocation3 + $0xa20] ss:$28 sps:$4 sm:$0xff]   ;;  %v8520_v42 = vld [vmem:[#allocation3 + $0x9e8] ss:$28 sps:$4 sm:$0xff]   ;;  %v8528_v43 = vld [vmem:[#allocation3 + $0x9b4] ss:$28 sps:$4 sm:$0xff]  }
 0x69f   :  { %6671 = vmatprep.mubr.bf16.mxu1 %v9231_v53  ;;  %v6308_v59 = vpop.f32.mrf.mxu0  ;;  %v8517_v51 = vld [vmem:[#allocation3 + $0xda0] ss:$28 sps:$4 sm:$0xff]   ;;  %v8523_v31 = vld [vmem:[#allocation3 + $0xd68] ss:$28 sps:$4 sm:$0xff]   ;;  %v8529_v54 = vld [vmem:[#allocation3 + $0xd30] ss:$28 sps:$4 sm:$0xff]  }
 0x6a0   :  { %v6349_v60 = vpop.f32.mrf.mxu1  ;;  %8620 = vtanh.f32 %v6346_v11  ;;  %v6348_v18 = vadd.f32 %v6347_v55, %v6307_v58  ;;  %6601 = vmatpush1.bf16.msra.mxu0 %v8466_v37  ;;  %v8531_v37 = vld [vmem:[#allocation3 + $0xd34] ss:$28 sps:$4 sm:$0xff]   ;;  %v8534_v55 = vld [vmem:[#allocation3 + $0x97c] ss:$28 sps:$4 sm:$0xff]   ;;  %v8540_v58 = vld [vmem:[#allocation3 + $0x944] ss:$28 sps:$4 sm:$0xff]  }
 0x6a1   :  { %6642 = vmatpush1.bf16.msra.mxu1 %v8469_v33  ;;  %v6309_v1 = vpop.f32.mrf.mxu0  ;;  %6602 = vmatprep.subr.bf16.mxu0 %v8474_v56  ;;  %v8526_v33 = vld [vmem:[#allocation3 + $0x9b0] ss:$28 sps:$4 sm:$0xff]   ;;  %v8537_v56 = vld [vmem:[#allocation3 + $0xcfc] ss:$28 sps:$4 sm:$0xff]   ;;  %v8543_v59 = vld [vmem:[#allocation3 + $0xcc4] ss:$28 sps:$4 sm:$0xff]  }
 0x6a2   :  { %v6350_v4 = vpop.f32.mrf.mxu1  ;;  %6643 = vmatprep.subr.bf16.mxu1 %v8477_v57  ;;  %8622 = vtanh.f32 %v6348_v18  ;;  %v8532_v57 = vld [vmem:[#allocation3 + $0x978] ss:$28 sps:$4 sm:$0xff]   ;;  %v8538_v60 = vld [vmem:[#allocation3 + $0x940] ss:$28 sps:$4 sm:$0xff]   ;;  %v8544_v1 = vld [vmem:[#allocation3 + $0x908] ss:$28 sps:$4 sm:$0xff]  }
 0x6a3   :  { %v8535_v11 = vld [vmem:[#allocation3 + $0xcf8] ss:$28 sps:$4 sm:$0xff]   ;;  %v8541_v18 = vld [vmem:[#allocation3 + $0xcc0] ss:$28 sps:$4 sm:$0xff]   ;;  %v8547_v4 = vld [vmem:[#allocation3 + $0xc88] ss:$28 sps:$4 sm:$0xff]  }
 0x6a4   :  { %6603 = vmatpush1.bf16.msra.mxu0 %v8472_v61  ;;  %v8546_v61 = vld [vmem:[#allocation3 + $0x90c] ss:$28 sps:$4 sm:$0xff]  }
 0x6a5   :  { %6644 = vmatpush1.bf16.msra.mxu1 %v8475_v0  ;;  %6604 = vmatprep.subr.bf16.mxu0 %v8480_v5  ;;  %v8549_v0 = vld [vmem:[#allocation3 + $0xc8c] ss:$28 sps:$4 sm:$0xff]   ;;  %v8552_v5 = vld [vmem:[#allocation3 + $0x8d4] ss:$28 sps:$4 sm:$0xff]  }
 0x6a6   :  { %6645 = vmatprep.subr.bf16.mxu1 %v8483_v8  ;;  %v8555_v8 = vld [vmem:[#allocation3 + $0xc54] ss:$28 sps:$4 sm:$0xff]  }
 0x6a8   :  { %6605 = vmatpush1.bf16.msra.mxu0 %v8478_v9  ;;  %v8550_v9 = vld [vmem:[#allocation3 + $0x8d0] ss:$28 sps:$4 sm:$0xff]  }
 0x6a9   :  { %6646 = vmatpush1.bf16.msra.mxu1 %v8481_v10  ;;  %6606 = vmatprep.subr.bf16.mxu0 %v8486_v15  ;;  %v8553_v10 = vld [vmem:[#allocation3 + $0xc50] ss:$28 sps:$4 sm:$0xff]   ;;  %v8556_v15 = vld [vmem:[#allocation3 + $0x360] ss:$28 sps:$4 sm:$0xff]  }
 0x6aa   :  { %6647 = vmatprep.subr.bf16.mxu1 %v8489_v34  ;;  %v8557_v34 = vld [vmem:[#allocation3 + $0x6e0] ss:$28 sps:$4 sm:$0xff]  }
 0x6ac   :  { %6607 = vmatpush1.bf16.msra.mxu0 %v8484_v41  ;;  %v8558_v41 = vld [vmem:[#allocation3 + $0x1a0] ss:$28 sps:$4 sm:$0xff]  }
 0x6ad   :  { %6648 = vmatpush1.bf16.msra.mxu1 %v8487_v39  ;;  %v8621_v25 = vpop.eup %8620  ;;  %6608 = vmatprep.subr.bf16.mxu0 %v8492_v20  ;;  %v8559_v39 = vld [vmem:[#allocation3 + $0x520] ss:$28 sps:$4 sm:$0xff]   ;;  %v8560_v20 = vld [vmem:[#allocation3 + $0x328] ss:$28 sps:$4 sm:$0xff]  }
 0x6ae   :  { %6649 = vmatprep.subr.bf16.mxu1 %v8495_v16  ;;  %6847 = vst [vmem:[#allocation25] sm:$0xff] %v8621_v25  ;;  %v8561_v16 = vld [vmem:[#allocation3 + $0x6a8] ss:$28 sps:$4 sm:$0xff]  }
 0x6af   :  { %v8623_v29 = vpop.eup %8622  ;;  %v8562_v25 = vld [vmem:[#allocation3 + $0x168] ss:$28 sps:$4 sm:$0xff]  }
 0x6b0   :  { %6848 = vst [vmem:[#allocation25 + $0x8] sm:$0xff] %v8623_v29  ;;  %6609 = vmatpush1.bf16.msra.mxu0 %v8490_v21 }
 0x6b1   :  { %6650 = vmatpush1.bf16.msra.mxu1 %v8493_v22  ;;  %6610 = vmatprep.subr.bf16.mxu0 %v8498_v44  ;;  %v8563_v44 = vld [vmem:[#allocation3 + $0x4e8] ss:$28 sps:$4 sm:$0xff]  }
 0x6b2   :  { %6651 = vmatprep.subr.bf16.mxu1 %v8501_v27 }
 0x6b4   :  { %6611 = vmatpush1.bf16.msra.mxu0 %v8496_v45  ;;  %v8564_v45 = vld [vmem:[#allocation3 + $0x2f0] ss:$28 sps:$4 sm:$0xff]  }
 0x6b5   :  { %6652 = vmatpush1.bf16.msra.mxu1 %v8499_v30  ;;  %6612 = vmatprep.subr.bf16.mxu0 %v8504_v32  ;;  %v8565_v30 = vld [vmem:[#allocation3 + $0x670] ss:$28 sps:$4 sm:$0xff]  }
 0x6b6   :  { %6653 = vmatprep.subr.bf16.mxu1 %v8507_v35 }
 0x6b8   :  { %6613 = vmatpush1.bf16.msra.mxu0 %v8502_v36  ;;  %v8566_v36 = vld [vmem:[#allocation3 + $0x130] ss:$28 sps:$4 sm:$0xff]  }
 0x6b9   :  { %6654 = vmatpush1.bf16.msra.mxu1 %v8505_v40  ;;  %6614 = vmatprep.subr.bf16.mxu0 %v8510_v46  ;;  %v8567_v40 = vld [vmem:[#allocation3 + $0x4b0] ss:$28 sps:$4 sm:$0xff]  }
 0x6ba   :  { %6655 = vmatprep.subr.bf16.mxu1 %v8513_v47 }
 0x6bc   :  { %6615 = vmatpush2.bf16.msra.mxu0 %v8508_v48  ;;  %v8568_v48 = vld [vmem:[#allocation3 + $0x2b8] ss:$28 sps:$4 sm:$0xff]  }
 0x6bd   :  { %6656 = vmatpush2.bf16.msra.mxu1 %v8511_v13  ;;  %6616 = vmatprep.subr.bf16.mxu0 %v8516_v28  ;;  %v8569_v13 = vld [vmem:[#allocation3 + $0x638] ss:$28 sps:$4 sm:$0xff]  }
 0x6be   :  { %6657 = vmatprep.subr.bf16.mxu1 %v8519_v49  ;;  %v8570_v28 = vld [vmem:[#allocation3 + $0xf8] ss:$28 sps:$4 sm:$0xff]  }
 0x6bf   :  { %v8571_v49 = vld [vmem:[#allocation3 + $0x478] ss:$28 sps:$4 sm:$0xff]  }
 0x6c0   :  { %6617 = vmatpush2.bf16.msra.mxu0 %v8514_v14  ;;  %v8574_v14 = vld [vmem:[#allocation3 + $0xc0] ss:$28 sps:$4 sm:$0xff]  }
 0x6c1   :  { %6658 = vmatpush2.bf16.msra.mxu1 %v8517_v51  ;;  %6618 = vmatprep.subr.bf16.mxu0 %v8522_v17  ;;  %v8575_v51 = vld [vmem:[#allocation3 + $0x440] ss:$28 sps:$4 sm:$0xff]   ;;  %v8576_v17 = vld [vmem:[#allocation3 + $0x248] ss:$28 sps:$4 sm:$0xff]  }
 0x6c2   :  { %6659 = vmatprep.subr.bf16.mxu1 %v8525_v52  ;;  %v8577_v52 = vld [vmem:[#allocation3 + $0x5c8] ss:$28 sps:$4 sm:$0xff]  }
 0x6c4   :  { %6619 = vmatpush2.bf16.msra.mxu0 %v8520_v42  ;;  %v8578_v42 = vld [vmem:[#allocation3 + $0x88] ss:$28 sps:$4 sm:$0xff]  }
 0x6c5   :  { %6660 = vmatpush2.bf16.msra.mxu1 %v8523_v31  ;;  %6620 = vmatprep.subr.bf16.mxu0 %v8528_v43  ;;  %v8579_v31 = vld [vmem:[#allocation3 + $0x408] ss:$28 sps:$4 sm:$0xff]   ;;  %v8580_v43 = vld [vmem:[#allocation3 + $0x210] ss:$28 sps:$4 sm:$0xff]  }
 0x6c6   :  { %6661 = vmatprep.subr.bf16.mxu1 %v8531_v37  ;;  %v8581_v37 = vld [vmem:[#allocation3 + $0x590] ss:$28 sps:$4 sm:$0xff]  }
 0x6c8   :  { %6621 = vmatpush2.bf16.msra.mxu0 %v8526_v33  ;;  %v8582_v33 = vld [vmem:[#allocation3 + $0x50] ss:$28 sps:$4 sm:$0xff]  }
 0x6c9   :  { %6662 = vmatpush2.bf16.msra.mxu1 %v8529_v54  ;;  %6622 = vmatprep.subr.bf16.mxu0 %v8534_v55  ;;  %v8583_v54 = vld [vmem:[#allocation3 + $0x3d0] ss:$28 sps:$4 sm:$0xff]   ;;  %v8584_v55 = vld [vmem:[#allocation3 + $0x1d8] ss:$28 sps:$4 sm:$0xff]  }
 0x6ca   :  { %6663 = vmatprep.subr.bf16.mxu1 %v8537_v56  ;;  %v8585_v56 = vld [vmem:[#allocation3 + $0x558] ss:$28 sps:$4 sm:$0xff]  }
 0x6cc   :  { %6623 = vmatpush2.bf16.msra.mxu0 %v8532_v57  ;;  %v8586_v57 = vld [vmem:[#allocation3 + $0x18] ss:$28 sps:$4 sm:$0xff]  }
 0x6cd   :  { %6664 = vmatpush2.bf16.msra.mxu1 %v8535_v11  ;;  %6624 = vmatprep.subr.bf16.mxu0 %v8540_v58  ;;  %v8587_v11 = vld [vmem:[#allocation3 + $0x398] ss:$28 sps:$4 sm:$0xff]   ;;  %v8588_v58 = vld [vmem:[#allocation3 + $0xa60] ss:$28 sps:$4 sm:$0xff]  }
 0x6ce   :  { %6665 = vmatprep.subr.bf16.mxu1 %v8543_v59  ;;  %v8589_v59 = vld [vmem:[#allocation3 + $0xde0] ss:$28 sps:$4 sm:$0xff]  }
 0x6d0   :  { %6625 = vmatpush2.bf16.msra.mxu0 %v8538_v60  ;;  %v8590_v60 = vld [vmem:[#allocation3 + $0x8a0] ss:$28 sps:$4 sm:$0xff]  }
 0x6d1   :  { %6666 = vmatpush2.bf16.msra.mxu1 %v8541_v18  ;;  %6626 = vmatprep.subr.bf16.mxu0 %v8546_v61  ;;  %v8591_v18 = vld [vmem:[#allocation3 + $0xc20] ss:$28 sps:$4 sm:$0xff]   ;;  %v8592_v61 = vld [vmem:[#allocation3 + $0xa28] ss:$28 sps:$4 sm:$0xff]  }
 0x6d2   :  { %6667 = vmatprep.subr.bf16.mxu1 %v8549_v0  ;;  %v8593_v0 = vld [vmem:[#allocation3 + $0xda8] ss:$28 sps:$4 sm:$0xff]  }
 0x6d4   :  { %6627 = vmatpush2.bf16.msra.mxu0 %v8544_v1  ;;  %v8594_v1 = vld [vmem:[#allocation3 + $0x868] ss:$28 sps:$4 sm:$0xff]  }
 0x6d5   :  { %6668 = vmatpush2.bf16.msra.mxu1 %v8547_v4  ;;  %6628 = vmatprep.subr.bf16.mxu0 %v8552_v5  ;;  %v8595_v4 = vld [vmem:[#allocation3 + $0xbe8] ss:$28 sps:$4 sm:$0xff]   ;;  %v8596_v5 = vld [vmem:[#allocation3 + $0x9f0] ss:$28 sps:$4 sm:$0xff]  }
 0x6d6   :  { %6669 = vmatprep.subr.bf16.mxu1 %v8555_v8  ;;  %v8597_v8 = vld [vmem:[#allocation3 + $0xd70] ss:$28 sps:$4 sm:$0xff]  }
 0x6d8   :  { %6629 = vmatpush2.bf16.msra.mxu0 %v8550_v9  ;;  %v8598_v9 = vld [vmem:[#allocation3 + $0x830] ss:$28 sps:$4 sm:$0xff]  }
 0x6d9   :  { %6670 = vmatpush2.bf16.msra.mxu1 %v8553_v10  ;;  %7692 = vmatprep.subr.bf16.mxu0 %v8556_v15  ;;  %v8599_v10 = vld [vmem:[#allocation3 + $0xbb0] ss:$28 sps:$4 sm:$0xff]   ;;  %v8602_v15 = vld [vmem:[#allocation3 + $0x7f8] ss:$28 sps:$4 sm:$0xff]  }
 0x6da   :  { %7714 = vmatprep.subr.bf16.mxu1 %v8557_v34  ;;  %v8603_v34 = vld [vmem:[#allocation3 + $0xb78] ss:$28 sps:$4 sm:$0xff]  }
 0x6db   :  { %v9273_v21 = vpop.f32.mrf.mxu0  ;;  %6631 = vmatmul.mubr.bf16.vlgmr.msra.gmra.mxu0 %v9215_v24 }
 0x6dc   :  { %v9275_v22 = vpop.f32.mrf.mxu1  ;;  %6672 = vmatmul.mubr.bf16.vlgmr.msra.gmra.mxu1 %v9229_v50  ;;  %7693 = vmatpush3.bf16.msra.mxu0 %v8558_v41  ;;  %v8604_v41 = vld [vmem:[#allocation3 + $0x980] ss:$28 sps:$4 sm:$0xff]  }
 0x6dd   :  { %7715 = vmatpush3.bf16.msra.mxu1 %v8559_v39  ;;  %v9279_v27 = vpop.f32.mrf.mxu0  ;;  %7694 = vmatprep.subr.bf16.mxu0 %v8560_v20  ;;  %v8605_v39 = vld [vmem:[#allocation3 + $0xd00] ss:$28 sps:$4 sm:$0xff]   ;;  %v8608_v20 = vld [vmem:[#allocation3 + $0x948] ss:$28 sps:$4 sm:$0xff]  }
 0x6de   :  { %v9281_v29 = vpop.f32.mrf.mxu1  ;;  %7716 = vmatprep.subr.bf16.mxu1 %v8561_v16  ;;  %6712 = vmatprep.mubr.bf16.mxu0 %v9187_v3  ;;  %v8572_v3 = vld [vmem:[#allocation3 + $0x280] ss:$28 sps:$4 sm:$0xff]   ;;  %v8609_v16 = vld [vmem:[#allocation3 + $0xcc8] ss:$28 sps:$4 sm:$0xff]  }
 0x6df   :  { %6752 = vmatprep.mubr.bf16.mxu1 %v9199_v12  ;;  %v6390_v32 = vpop.f32.mrf.mxu0  ;;  %v8573_v12 = vld [vmem:[#allocation3 + $0x600] ss:$28 sps:$4 sm:$0xff]  }
 0x6e0   :  { %v6431_v35 = vpop.f32.mrf.mxu1  ;;  %7695 = vmatpush3.bf16.msra.mxu0 %v8562_v25  ;;  %v8610_v25 = vld [vmem:[#allocation3 + $0x788] ss:$28 sps:$4 sm:$0xff]   ;;  %v8614_v32 = vld [vmem:[#allocation3 + $0x750] ss:$28 sps:$4 sm:$0xff]  }
 0x6e1   :  { %7717 = vmatpush3.bf16.msra.mxu1 %v8563_v44  ;;  %v6391_v46 = vpop.f32.mrf.mxu0  ;;  %7696 = vmatprep.subr.bf16.mxu0 %v8564_v45  ;;  %v8611_v44 = vld [vmem:[#allocation3 + $0xb08] ss:$28 sps:$4 sm:$0xff]   ;;  %v8612_v45 = vld [vmem:[#allocation3 + $0x910] ss:$28 sps:$4 sm:$0xff]  }
 0x6e2   :  { %v6432_v47 = vpop.f32.mrf.mxu1  ;;  %7718 = vmatprep.subr.bf16.mxu1 %v8565_v30  ;;  %v8613_v30 = vld [vmem:[#allocation3 + $0xc90] ss:$28 sps:$4 sm:$0xff]   ;;  %v3860_v46 = vrot.slane %v9259_v19, %v9132_v62 }
 0x6e3   :  { %v8615_v35 = vld [vmem:[#allocation3 + $0xad0] ss:$28 sps:$4 sm:$0xff]   ;;  %v3864_v47 = vrot.slane %v9259_v19, %v9137_v2 }
 0x6e4   :  { %7697 = vmatpush3.bf16.msra.mxu0 %v8566_v36  ;;  %v8616_v36 = vld [vmem:[#allocation3 + $0x8d8] ss:$28 sps:$4 sm:$0xff]  }
 0x6e5   :  { %7719 = vmatpush3.bf16.msra.mxu1 %v8567_v40  ;;  %7698 = vmatprep.subr.bf16.mxu0 %v8568_v48  ;;  %v8617_v40 = vld [vmem:[#allocation3 + $0xc58] ss:$28 sps:$4 sm:$0xff]  }
 0x6e6   :  { %7720 = vmatprep.subr.bf16.mxu1 %v8569_v13  ;;  %v8618_v48 = vld [vmem:[#allocation3 + $0x718] ss:$28 sps:$4 sm:$0xff]  }
 0x6e7   :  { %v8619_v13 = vld [vmem:[#allocation3 + $0xa98] ss:$28 sps:$4 sm:$0xff]  }
 0x6e8   :  { %7699 = vmatpush3.bf16.msra.mxu0 %v8570_v28  ;;  %v6387_v28 = vadd.f32 %v9273_v21, %v3860_v46 }
 0x6e9   :  { %7721 = vmatpush3.bf16.msra.mxu1 %v8571_v49  ;;  %7700 = vmatprep.subr.bf16.mxu0 %v8572_v3  ;;  %v6389_v49 = vadd.f32 %v9279_v27, %v3864_v47 }
 0x6ea   :  { %7722 = vmatprep.subr.bf16.mxu1 %v8573_v12  ;;  %v6428_v3 = vadd.f32 %v9275_v22, %v6387_v28 }
 0x6eb   :  { %v6430_v62 = vadd.f32 %v9281_v29, %v6389_v49 }
 0x6ec   :  { %7701 = vmatpush3.bf16.msra.mxu0 %v8574_v14 }
 0x6ed   :  { %7723 = vmatpush3.bf16.msra.mxu1 %v8575_v51  ;;  %7702 = vmatprep.subr.bf16.mxu0 %v8576_v17 }
 0x6ee   :  { %7724 = vmatprep.subr.bf16.mxu1 %v8577_v52 }
 0x6f0   :  { %7703 = vmatpush3.bf16.msra.mxu0 %v8578_v42 }
 0x6f1   :  { %7725 = vmatpush3.bf16.msra.mxu1 %v8579_v31  ;;  %7704 = vmatprep.subr.bf16.mxu0 %v8580_v43 }
 0x6f2   :  { %7726 = vmatprep.subr.bf16.mxu1 %v8581_v37 }
 0x6f4   :  { %7705 = vmatpush3.bf16.msra.mxu0 %v8582_v33 }
 0x6f5   :  { %7727 = vmatpush3.bf16.msra.mxu1 %v8583_v54  ;;  %7706 = vmatprep.subr.bf16.mxu0 %v8584_v55 }
 0x6f6   :  { %7728 = vmatprep.subr.bf16.mxu1 %v8585_v56 }
 0x6f8   :  { %7707 = vmatpush3.bf16.msra.mxu0 %v8586_v57 }
 0x6f9   :  { %7729 = vmatpush3.bf16.msra.mxu1 %v8587_v11  ;;  %7736 = vmatprep.subr.bf16.mxu0 %v8588_v58  ;;  %v3868_v58 = vrot.slane %v9259_v19, %v9202_v7 }
 0x6fa   :  { %7758 = vmatprep.subr.bf16.mxu1 %v8589_v59  ;;  %v3872_v59 = vrot.slane %v9259_v19, %v9205_v6 }
 0x6fb   :  { %6713 = vmatmul.mubr.bf16.vlgmr.msra.gmra.mxu0 %v9185_v63  ;;  %v8600_v63 = vld [vmem:[#allocation3 + $0x9b8] ss:$28 sps:$4 sm:$0xff]  }
 0x6fc   :  { %6753 = vmatmul.mubr.bf16.vlgmr.msra.gmra.mxu1 %v9197_v38  ;;  %7737 = vmatpush3.bf16.msra.mxu0 %v8590_v60  ;;  %v8601_v38 = vld [vmem:[#allocation3 + $0xd38] ss:$28 sps:$4 sm:$0xff]  }
 0x6fd   :  { %7759 = vmatpush3.bf16.msra.mxu1 %v8591_v18  ;;  %7738 = vmatprep.subr.bf16.mxu0 %v8592_v61 }
 0x6fe   :  { %7760 = vmatprep.subr.bf16.mxu1 %v8593_v0  ;;  %6792 = vmatprep.mubr.bf16.mxu0 %v9217_v26  ;;  %v8606_v26 = vld [vmem:[#allocation3 + $0x7c0] ss:$28 sps:$4 sm:$0xff]  }
 0x6ff   :  { %6832 = vmatprep.mubr.bf16.mxu1 %v9231_v53  ;;  %v8607_v53 = vld [vmem:[#allocation3 + $0xb40] ss:$28 sps:$4 sm:$0xff]  }
 0x700   :  { %7739 = vmatpush3.bf16.msra.mxu0 %v8594_v1 }
 0x701   :  { %7761 = vmatpush3.bf16.msra.mxu1 %v8595_v4  ;;  %7740 = vmatprep.subr.bf16.mxu0 %v8596_v5 }
 0x702   :  { %7762 = vmatprep.subr.bf16.mxu1 %v8597_v8 }
 0x704   :  { %7741 = vmatpush3.bf16.msra.mxu0 %v8598_v9 }
 0x705   :  { %7763 = vmatpush3.bf16.msra.mxu1 %v8599_v10  ;;  %7742 = vmatprep.subr.bf16.mxu0 %v8600_v63 }
 0x706   :  { %7764 = vmatprep.subr.bf16.mxu1 %v8601_v38 }
 0x708   :  { %7743 = vmatpush3.bf16.msra.mxu0 %v8602_v15 }
 0x709   :  { %7765 = vmatpush3.bf16.msra.mxu1 %v8603_v34  ;;  %7744 = vmatprep.subr.bf16.mxu0 %v8604_v41 }
 0x70a   :  { %7766 = vmatprep.subr.bf16.mxu1 %v8605_v39 }
 0x70c   :  { %7745 = vmatpush3.bf16.msra.mxu0 %v8606_v26 }
 0x70d   :  { %7767 = vmatpush3.bf16.msra.mxu1 %v8607_v53  ;;  %7746 = vmatprep.subr.bf16.mxu0 %v8608_v20 }
 0x70e   :  { %7768 = vmatprep.subr.bf16.mxu1 %v8609_v16 }
 0x710   :  { %7747 = vmatpush3.bf16.msra.mxu0 %v8610_v25 }
 0x711   :  { %7769 = vmatpush3.bf16.msra.mxu1 %v8611_v44  ;;  %7748 = vmatprep.subr.bf16.mxu0 %v8612_v45 }
 0x712   :  { %7770 = vmatprep.subr.bf16.mxu1 %v8613_v30 }
 0x714   :  { %7749 = vmatpush3.bf16.msra.mxu0 %v8614_v32  ;;  %v3876_v32 = vrot.slane %v9259_v19, %v9220_v23 }
 0x715   :  { %7771 = vmatpush3.bf16.msra.mxu1 %v8615_v35  ;;  %7750 = vmatprep.subr.bf16.mxu0 %v8616_v36 }
 0x716   :  { %7772 = vmatprep.subr.bf16.mxu1 %v8617_v40 }
 0x718   :  { %7751 = vmatpush3.bf16.msra.mxu0 %v8618_v48 }
 0x719   :  { %7773 = vmatpush3.bf16.msra.mxu1 %v8619_v13 }
 0x71b   :  { %v6468_v12 = vpop.f32.mrf.mxu0  ;;  %6793 = vmatmul.mubr.bf16.vlgmr.msra.gmra.mxu0 %v9215_v24 }
 0x71c   :  { %v6509_v14 = vpop.f32.mrf.mxu1  ;;  %6833 = vmatmul.mubr.bf16.vlgmr.msra.gmra.mxu1 %v9229_v50  ;;  %v6469_v2 = vadd.f32 %v6468_v12, %v6428_v3 }
 0x71d   :  { %v6470_v51 = vpop.f32.mrf.mxu0 }
 0x71e   :  { %v6511_v17 = vpop.f32.mrf.mxu1  ;;  %v6510_v52 = vadd.f32 %v6509_v14, %v6469_v2  ;;  %v6471_v42 = vadd.f32 %v6470_v51, %v6430_v62 }
 0x71f   :  { %v6472_v21 = vpop.f32.mrf.mxu0 }
 0x720   :  { %v6513_v31 = vpop.f32.mrf.mxu1  ;;  %8624 = vtanh.f32 %v6510_v52  ;;  %v6512_v27 = vadd.f32 %v6511_v17, %v6471_v42 }
 0x721   :  { %v6473_v43 = vpop.f32.mrf.mxu0 }
 0x722   :  { %v6514_v37 = vpop.f32.mrf.mxu1  ;;  %8626 = vtanh.f32 %v6512_v27 }
 0x72d   :  { %v8625_v22 = vpop.eup %8624 }
 0x72e   :  { %6849 = vst [vmem:[#allocation25 + $0x10] sm:$0xff] %v8625_v22 }
 0x72f   :  { %v8627_v33 = vpop.eup %8626 }
 0x730   :  { %6850 = vst [vmem:[#allocation25 + $0x18] sm:$0xff] %v8627_v33 }
 0x75b   :  { %v6550_v24 = vpop.f32.mrf.mxu0 }
 0x75c   :  { %v6591_v50 = vpop.f32.mrf.mxu1  ;;  %v6551_v60 = vadd.f32 %v6550_v24, %v3868_v58 }
 0x75d   :  { %v6552_v54 = vpop.f32.mrf.mxu0 }
 0x75e   :  { %v6593_v29 = vpop.f32.mrf.mxu1  ;;  %v6553_v18 = vadd.f32 %v6552_v54, %v3872_v59  ;;  %v6592_v61 = vadd.f32 %v6591_v50, %v6551_v60 }
 0x75f   :  { %v6554_v55 = vpop.f32.mrf.mxu0 }
 0x760   :  { %v6595_v56 = vpop.f32.mrf.mxu1  ;;  %v6594_v4 = vadd.f32 %v6593_v29, %v6553_v18 }
 0x761   :  { %v6555_v57 = vpop.f32.mrf.mxu0 }
 0x762   :  { %v6596_v11 = vpop.f32.mrf.mxu1 }
 0x79b   :  { %v6632_v0 = vpop.f32.mrf.mxu0 }
 0x79c   :  { %v6673_v1 = vpop.f32.mrf.mxu1  ;;  %v6633_v5 = vadd.f32 %v6632_v0, %v6592_v61 }
 0x79d   :  { %v6634_v8 = vpop.f32.mrf.mxu0 }
 0x79e   :  { %v6675_v9 = vpop.f32.mrf.mxu1  ;;  %v6674_v10 = vadd.f32 %v6673_v1, %v6633_v5  ;;  %v6635_v63 = vadd.f32 %v6634_v8, %v6594_v4 }
 0x79f   :  { %v6636_v38 = vpop.f32.mrf.mxu0 }
 0x7a0   :  { %v6677_v15 = vpop.f32.mrf.mxu1  ;;  %8628 = vtanh.f32 %v6674_v10  ;;  %v6676_v34 = vadd.f32 %v6675_v9, %v6635_v63 }
 0x7a1   :  { %v6637_v41 = vpop.f32.mrf.mxu0 }
 0x7a2   :  { %v6678_v7 = vpop.f32.mrf.mxu1  ;;  %8630 = vtanh.f32 %v6676_v34 }
 0x7ad   :  { %v8629_v39 = vpop.eup %8628 }
 0x7ae   :  { %6851 = vst [vmem:[#allocation25 + $0x20] sm:$0xff] %v8629_v39 }
 0x7af   :  { %v8631_v6 = vpop.eup %8630 }
 0x7b0   :  { %6852 = vst [vmem:[#allocation25 + $0x28] sm:$0xff] %v8631_v6 }
 0x7bb   :  { %v7708_v26 = vpop.f32.mrf.mxu0 }
 0x7bc   :  { %v7730_v53 = vpop.f32.mrf.mxu1 }
 0x7bd   :  { %v7709_v20 = vpop.f32.mrf.mxu0 }
 0x7be   :  { %v7731_v16 = vpop.f32.mrf.mxu1  ;;  %v7710_v35 = vadd.f32 %v7709_v20, %v7708_v26 }
 0x7bf   :  { %v7711_v25 = vpop.f32.mrf.mxu0  ;;  %v7732_v40 = vadd.f32 %v7731_v16, %v7730_v53 }
 0x7c0   :  { %v7733_v44 = vpop.f32.mrf.mxu1  ;;  %v6715_v36 = vadd.f32 %v7710_v35, %v3876_v32 }
 0x7c1   :  { %v7712_v45 = vpop.f32.mrf.mxu0 }
 0x7c2   :  { %v7734_v30 = vpop.f32.mrf.mxu1  ;;  %v6755_v28 = vadd.f32 %v7732_v40, %v6715_v36 }
 0x7db   :  { %v7752_v46 = vpop.f32.mrf.mxu0 }
 0x7dc   :  { %v7774_v47 = vpop.f32.mrf.mxu1 }
 0x7dd   :  { %v7753_v48 = vpop.f32.mrf.mxu0 }
 0x7de   :  { %v7775_v13 = vpop.f32.mrf.mxu1  ;;  %v7754_v49 = vadd.f32 %v7753_v48, %v7752_v46 }
 0x7df   :  { %v7755_v3 = vpop.f32.mrf.mxu0  ;;  %v7776_v62 = vadd.f32 %v7775_v13, %v7774_v47 }
 0x7e0   :  { %v7777_v12 = vpop.f32.mrf.mxu1  ;;  %v6795_v14 = vadd.f32 %v7754_v49, %v6755_v28 }
 0x7e1   :  { %v7756_v2 = vpop.f32.mrf.mxu0 }
 0x7e2   :  { %v7778_v51 = vpop.f32.mrf.mxu1  ;;  %v6835_v17 = vadd.f32 %v7776_v62, %v6795_v14 }
 0x7e4   :  { %8632 = vtanh.f32 %v6835_v17 }
 0x7f1   :  { %v8633_v23 = vpop.eup %8632 }
 0x7f2   :  { %6853 = vst [vmem:[#allocation25 + $0x30] sm:$0xff] %v8633_v23 }
 0x7f3   :  { %8925 = shalt.err (!%p8922_p4)
}
 0x7f4   :  { %6863 = dma.vmem_to_hbm [thread:$0]  %s6861_s12, 896, %s9322_s14, [#allocation7]  }
 0x7f5   :  { %8952 = dma.done.wait [#allocation7], 896  }
 0x7f6   :  { %8953 = vsyncadd [#allocation7], 4294966400 }
 0x7f7   :  { %6867 = vsyncpa [#allocation6], 1 }
 0x7f8   :  { %6868 = vsyncpa [#allocation9], 1 }
 0x7f9   :  { %6869 = vsyncpa [#allocation12], 1 }
 0x7fa   :  { %6870 = vsyncpa [#allocation15], 1 }
 0x7fb   :  { %6871 = vsyncpa [#allocation18], 1 }
 0x7fc   :  { %6872 = vsyncpa [#allocation21], 1 }
 0x7fd   :  { %6873 = vsyncpa [#allocation24], 1 }
 0x7fe   :  { %6874 = vsyncpa [#allocation7], 1 }
 0x7ff   :  { %6875 = vsyncmov [#allocation4] }
 0x802   :  { %s6876_s24 = vpop.sfrf %6875 }
 0x803   :  { %p7681_p5 = scmp.ne.s32.totalorder %s6876_s24, 0 }
 0x805   :  { %6880 = shalt.err (%p7681_p5)  }
 0x806   :  { %6882 = vsyncmov [#allocation4 + $0x1] }
 0x809   :  { %s6883_s4 = vpop.sfrf %6882 }
 0x80a   :  { %p7682_p6 = scmp.ne.s32.totalorder %s6883_s4, 0 }
 0x80c   :  { %6887 = shalt.err (%p7682_p6)  }

</bundles_post_ra>
